<compile_context>
chip_gen: v6e
topology: v6e:2x2x1
jax: 0.10.0
libtpu: 0.0.40
codegen_flags: <defaults>
</compile_context>

<pallas_src>
import functools

import jax
import jax.numpy as jnp
from jax import lax
from jax.experimental import pallas as pl
from jax.experimental.pallas import tpu as pltpu  # noqa: F401  (TPU backend)


def _full_spec(shape):
    nd = len(shape)
    return pl.BlockSpec(shape, lambda i, _nd=nd: (0,) * _nd)


# ----------------------------- Pallas kernels -----------------------------

def _conv_pool_relu_kernel(p_ref, w_ref, b_ref, o_ref, *, npix):
    # p_ref: (4*npix, K) im2col patches; rows [g*npix:(g+1)*npix] hold pooling
    #        offset g = di*2+dj, ordered (b, ph, pw) inside each group.
    # w_ref: (K, Cout); b_ref: (1, Cout); o_ref: (npix, Cout)
    acc = jnp.dot(p_ref[...], w_ref[...], preferred_element_type=jnp.float32)
    acc = acc + b_ref[...]
    m01 = jnp.maximum(acc[0 * npix:1 * npix, :], acc[1 * npix:2 * npix, :])
    m23 = jnp.maximum(acc[2 * npix:3 * npix, :], acc[3 * npix:4 * npix, :])
    o_ref[...] = jnp.maximum(jnp.maximum(m01, m23), 0.0)   # max_pool2d + relu


def _conv2_head_kernel(p2_ref, w2_ref, b2_ref, wcat_ref, b1_ref, scat_ref,
                       g_ref, be_ref, w3_ref, b3_ref, wfc_ref, bfc_ref, o_ref,
                       *, batch, n_pix, eps):
    # conv2 (im2col matmul) + 2x2 max-pool + relu
    acc = jnp.dot(p2_ref[...], w2_ref[...], preferred_element_type=jnp.float32)
    acc = acc + b2_ref[...]
    npix = batch * n_pix
    m01 = jnp.maximum(acc[0 * npix:1 * npix, :], acc[1 * npix:2 * npix, :])
    m23 = jnp.maximum(acc[2 * npix:3 * npix, :], acc[3 * npix:4 * npix, :])
    y2 = jnp.maximum(jnp.maximum(m01, m23), 0.0)        # (batch*n_pix, C2)

    # PyTorch x.view(-1, 64) channel-mixing flatten fused with fc1:
    #   h[b*n_pix+q, o] = sum_{s,t} y2[b*n_pix+t, group*q+s] * fc1_w[o, s*n_pix+t]
    # expressed as matmuls only (no in-kernel transpose/reshape relayouts):
    #   Q_b   = y2_b^T @ Wcat                       (transpose-A dot on the MXU)
    #   h_b   = Scat @ vstack_s(Q_b[:, s*H:(s+1)*H]) (one-hot selection matmul)
    wcat = wcat_ref[...]                                # (n_pix, ngrp*H)
    scat = scat_ref[...]                                # (n_pix, ngrp*C2)
    n_hid = b1_ref.shape[-1]                            # 128
    ngrp = wcat.shape[1] // n_hid                       # 4
    hs = []
    for bi in range(batch):
        y2b = y2[bi * n_pix:(bi + 1) * n_pix, :]        # (n_pix, C2)
        q = lax.dot_general(y2b, wcat, (((0,), (0,)), ((), ())),
                            preferred_element_type=jnp.float32)   # (C2, ngrp*H)
        qcat = jnp.concatenate(
            [q[:, s * n_hid:(s + 1) * n_hid] for s in range(ngrp)], axis=0)
        hs.append(jnp.dot(scat, qcat, preferred_element_type=jnp.float32))
    h = jnp.concatenate(hs, axis=0) + b1_ref[...]       # (batch*n_pix, H)
    h = jnp.maximum(h, 0.0)

    # BatchNorm1d (training mode): biased batch stats over axis 0, single pass
    mean = jnp.mean(h, axis=0, keepdims=True)
    var = jnp.mean(h * h, axis=0, keepdims=True) - mean * mean
    h = (h - mean) * lax.rsqrt(var + eps) * g_ref[...] + be_ref[...]

    # fc3 + relu
    h = jnp.dot(h, w3_ref[...], preferred_element_type=jnp.float32) + b3_ref[...]
    h = jnp.maximum(h, 0.0)

    # fc2 padded to 128 lanes (zero weight cols, -1e30 pad bias) + softmax
    logits = jnp.dot(h, wfc_ref[...], preferred_element_type=jnp.float32)
    logits = logits + bfc_ref[...]
    mx = jnp.max(logits, axis=-1, keepdims=True)
    e = jnp.exp(logits - mx)                            # pad lanes underflow to 0
    denom = jnp.sum(e, axis=-1, keepdims=True)
    # approx=True would move the divide to the EUP but risks the 1e-5 row-sum
    # tolerance; the exact reciprocal keeps softmax rows summing to 1.
    o_ref[...] = e * pl.reciprocal(denom, approx=False)


# ----------------------------- Pallas wrappers -----------------------------

def conv_pool_relu(patches, w_mat, b_row, npix):
    cout = w_mat.shape[1]
    return pl.pallas_call(
        functools.partial(_conv_pool_relu_kernel, npix=npix),
        out_shape=jax.ShapeDtypeStruct((npix, cout), jnp.float32),
        grid=(1,),
        in_specs=[_full_spec(patches.shape), _full_spec(w_mat.shape),
                  _full_spec(b_row.shape)],
        out_specs=_full_spec((npix, cout)),
    )(patches, w_mat, b_row)


def conv2_head(p2, w2, b2, wcat, b1, scat, gamma, beta, w3, b3, wfc, bfc,
               *, batch, n_pix, eps=1e-5):
    args = (p2, w2, b2, wcat, b1, scat, gamma, beta, w3, b3, wfc, bfc)
    out_shape = (batch * n_pix, wfc.shape[1])
    return pl.pallas_call(
        functools.partial(_conv2_head_kernel, batch=batch, n_pix=n_pix, eps=eps),
        out_shape=jax.ShapeDtypeStruct(out_shape, jnp.float32),
        grid=(1,),
        in_specs=[_full_spec(a.shape) for a in args],
        out_specs=_full_spec(out_shape),
    )(*args)


# ------------------------------- JAX glue ----------------------------------

def _im2col_pool_patches(y_nhwc, kh, kw):
    """VALID kh x kw conv patches from an NHWC tensor, rows pre-grouped for a
    2x2/2 max-pool: rows ordered (di*2+dj, b, ph, pw), columns (kh, kw, cin)."""
    B, H, W, C = y_nhwc.shape
    Ho, Wo = H - kh + 1, W - kw + 1
    Hp, Wp = Ho // 2, Wo // 2
    taps = [y_nhwc[:, a:a + Ho, c:c + Wo, :] for a in range(kh) for c in range(kw)]
    pats = jnp.stack(taps, axis=3)                       # (B, Ho, Wo, T, C)
    pats = pats[:, :2 * Hp, :2 * Wp]
    pats = pats.reshape(B, Hp, 2, Wp, 2, kh * kw, C)     # (B,ph,di,pw,dj,T,C)
    pats = pats.transpose(2, 4, 0, 1, 3, 5, 6)           # (di,dj,B,ph,pw,T,C)
    return pats.reshape(4 * B * Hp * Wp, kh * kw * C), (B, Hp, Wp)


def _pad_to(m, size, axis):
    pad = size - m.shape[axis]
    if pad <= 0:
        return m
    widths = [(0, 0)] * m.ndim
    widths[axis] = (0, pad)
    return jnp.pad(m, widths)


def classification_forward(x, p):
    B = x.shape[0]
    # NCHW (B,1,28,28) -> NHWC; with a single channel this is a pure reshape.
    x_nhwc = x.reshape(B, x.shape[2], x.shape[3], 1)

    # conv1 (1->32, k=5) + max_pool2d(2,2) + relu                 [kernel A]
    P1, (_, H1, W1) = _im2col_pool_patches(x_nhwc, 5, 5)
    P1 = _pad_to(P1, 32, axis=1)                                   # K 25 -> 32
    W1m = _pad_to(p['conv1_w'].transpose(2, 3, 1, 0).reshape(25, 32), 32, axis=0)
    y1 = conv_pool_relu(P1, W1m, p['conv1_b'].reshape(1, -1), B * H1 * W1)
    # y1: (B*H1*W1, 32), rows (b, h, w) — consumed as NHWC, no transpose.

    # conv2 im2col directly on the NHWC conv1 output (weights in kh,kw,cin order)
    P2, (_, H2, W2) = _im2col_pool_patches(y1.reshape(B, H1, W1, 32), 5, 5)
    P2 = _pad_to(P2, 896, axis=1)                                  # K 800 -> 896
    W2m = _pad_to(p['conv2_w'].transpose(2, 3, 1, 0).reshape(800, 64), 896, axis=0)

    # Head weights re-packed so the PyTorch x.view(-1, 64) flatten becomes
    # in-kernel matmuls (see _conv2_head_kernel).
    n_pix = H2 * W2                         # spatial positions per image (16)
    c2 = W2m.shape[1]                       # 64 conv2 channels
    group = c2 // n_pix                     # channels per flattened row (4)
    n_hid = p['fc1_w'].shape[0]             # 128
    wcat = (p['fc1_w'].reshape(n_hid, group, n_pix)
            .transpose(2, 1, 0).reshape(n_pix, group * n_hid))
    qi = jnp.arange(n_pix)[:, None]
    jj = jnp.arange(group * c2)[None, :]
    scat = ((jj % c2) == group * qi + jj // c2).astype(jnp.float32)  # (n_pix, group*c2)

    # fc2 padded to 128 output lanes: zero weight columns and -1e30 pad bias
    # so the padded classes get softmax weight exactly 0 (lane-dense store).
    n_cls = p['fc2_w'].shape[0]
    wfc = jnp.zeros((p['fc2_w'].shape[1], 128), jnp.float32).at[:, :n_cls].set(p['fc2_w'].T)
    bfc = jnp.full((1, 128), -1e30, jnp.float32).at[0, :n_cls].set(p['fc2_b'])

    out = conv2_head(P2, W2m, p['conv2_b'].reshape(1, -1),
                     wcat, p['fc1_b'].reshape(1, -1), scat,
                     p['bn_gamma'].reshape(1, -1), p['bn_beta'].reshape(1, -1),
                     p['fc3_w'].T, p['fc3_b'].reshape(1, -1),
                     wfc, bfc, batch=B, n_pix=n_pix)
    return out[:, :n_cls]


# ------------------------- pure-JAX reference ------------------------------

def reference_forward(x, p, eps=1e-5):
    dn = ('NCHW', 'OIHW', 'NCHW')

    def conv(z, w, b):
        return lax.conv_general_dilated(z, w, (1, 1), 'VALID',
                                        dimension_numbers=dn) + b[None, :, None, None]

    def pool(z):
        B, C, H, W = z.shape
        return z.reshape(B, C, H // 2, 2, W // 2, 2).max(axis=(3, 5))

    y = jnp.maximum(pool(conv(x, p['conv1_w'], p['conv1_b'])), 0.0)
    y = jnp.maximum(pool(conv(y, p['conv2_w'], p['conv2_b'])), 0.0)
    h = y.reshape(-1, 64)
    h = jnp.maximum(h @ p['fc1_w'].T + p['fc1_b'], 0.0)
    mean = h.mean(axis=0)
    var = ((h - mean) ** 2).mean(axis=0)
    h = (h - mean) / jnp.sqrt(var + eps) * p['bn_gamma'] + p['bn_beta']
    h = jnp.maximum(h @ p['fc3_w'].T + p['fc3_b'], 0.0)
    logits = h @ p['fc2_w'].T + p['fc2_b']
    return jax.nn.softmax(logits, axis=1)


# --------------------------------- main -------------------------------------

if __name__ == "__main__":
    key = jax.random.PRNGKey(0)
    k = jax.random.split(key, 11)
    # Deterministic synthetic parameters in the module's PyTorch shapes.
    params = {
        'conv1_w': jax.random.normal(k[0], (32, 1, 5, 5), jnp.float32) * 0.10,
        'conv1_b': jax.random.normal(k[1], (32,), jnp.float32) * 0.10,
        'conv2_w': jax.random.normal(k[2], (64, 32, 5, 5), jnp.float32) * 0.05,
        'conv2_b': jax.random.normal(k[3], (64,), jnp.float32) * 0.05,
        'fc1_w': jax.random.normal(k[4], (128, 64), jnp.float32) * 0.10,
        'fc1_b': jax.random.normal(k[5], (128,), jnp.float32) * 0.05,
        'fc3_w': jax.random.normal(k[6], (256, 128), jnp.float32) * 0.08,
        'fc3_b': jax.random.normal(k[7], (256,), jnp.float32) * 0.05,
        'fc2_w': jax.random.normal(k[8], (10, 256), jnp.float32) * 0.08,
        'fc2_b': jax.random.normal(k[9], (10,), jnp.float32) * 0.05,
        'bn_gamma': jnp.ones((128,), jnp.float32),   # PyTorch BatchNorm1d defaults
        'bn_beta': jnp.zeros((128,), jnp.float32),
    }
    # MNIST-like input: (B=2, C=1, 28, 28)  ->  output (B*16, 10) = (32, 10)
    x = jax.random.normal(k[10], (2, 1, 28, 28), jnp.float32)

    out = jax.jit(classification_forward)(x, params)
    out = jax.block_until_ready(out)

    ref = reference_forward(x, params)
    assert out.shape == (32, 10), out.shape
    max_err = float(jnp.max(jnp.abs(out - ref)))
    assert max_err < 1e-3, f"mismatch vs reference: {max_err}"
    assert float(jnp.max(jnp.abs(out.sum(axis=1) - 1.0))) < 1e-5
    print("KERNEL_OK")
</pallas_src>

<mosaic_0001>
module attributes {stable_mosaic.version = 11 : i64} {
  func.func @_conv_pool_relu_kernel(%arg0: i32, %arg1: memref<1152x32xf32, #tpu.memory_space<vmem>>, %arg2: memref<32x32xf32, #tpu.memory_space<vmem>>, %arg3: memref<1x32xf32, #tpu.memory_space<vmem>>, %arg4: memref<288x32xf32, #tpu.memory_space<vmem>>) attributes {dimension_semantics = [#tpu.dimension_semantics<arbitrary>], iteration_bounds = array<i64: 1>, scalar_prefetch = 0 : i64, scratch_operands = 0 : i64, tpu.core_type = #tpu.core_type<tc>, window_params = [{pipeline_mode = #tpu.pipeline_mode<synchronous>, transform_indices = @transform_0, window_bounds = array<i64: 1152, 32>}, {pipeline_mode = #tpu.pipeline_mode<synchronous>, transform_indices = @transform_1, window_bounds = array<i64: 32, 32>}, {pipeline_mode = #tpu.pipeline_mode<synchronous>, transform_indices = @transform_2, window_bounds = array<i64: 1, 32>}, {pipeline_mode = #tpu.pipeline_mode<synchronous>, transform_indices = @transform_3, window_bounds = array<i64: 288, 32>}]} {
    %c0 = arith.constant 0 : index
    %c0_0 = arith.constant 0 : index
    %0 = vector.load %arg1[%c0, %c0_0] : memref<1152x32xf32, #tpu.memory_space<vmem>>, vector<1152x32xf32>
    %c0_1 = arith.constant 0 : index
    %c0_2 = arith.constant 0 : index
    %1 = vector.load %arg2[%c0_1, %c0_2] : memref<32x32xf32, #tpu.memory_space<vmem>>, vector<32x32xf32>
    %cst = arith.constant dense<0.000000e+00> : vector<1152x32xf32>
    %2 = tpu.matmul %0, %1, %cst {dimension_numbers = #tpu.dot_dimension_numbers<[1], [0], [0], [1], [0, 0, 1, 1], [], []>} : vector<1152x32xf32>, vector<32x32xf32>, vector<1152x32xf32> -> vector<1152x32xf32>
    %c0_3 = arith.constant 0 : index
    %c0_4 = arith.constant 0 : index
    %3 = vector.load %arg3[%c0_3, %c0_4] : memref<1x32xf32, #tpu.memory_space<vmem>>, vector<1x32xf32>
    %4 = vector.broadcast %3 : vector<1x32xf32> to vector<1152x32xf32>
    %5 = arith.addf %2, %4 : vector<1152x32xf32>
    %6 = vector.extract_strided_slice %5 {offsets = [0, 0], sizes = [288, 32], strides = [1, 1]} : vector<1152x32xf32> to vector<288x32xf32>
    %7 = vector.extract_strided_slice %5 {offsets = [288, 0], sizes = [288, 32], strides = [1, 1]} : vector<1152x32xf32> to vector<288x32xf32>
    %8 = arith.maximumf %6, %7 : vector<288x32xf32>
    %9 = vector.extract_strided_slice %5 {offsets = [576, 0], sizes = [288, 32], strides = [1, 1]} : vector<1152x32xf32> to vector<288x32xf32>
    %10 = vector.extract_strided_slice %5 {offsets = [864, 0], sizes = [288, 32], strides = [1, 1]} : vector<1152x32xf32> to vector<288x32xf32>
    %11 = arith.maximumf %9, %10 : vector<288x32xf32>
    %12 = arith.maximumf %8, %11 : vector<288x32xf32>
    %cst_5 = arith.constant 0.000000e+00 : f32
    %13 = vector.broadcast %cst_5 : f32 to vector<288x32xf32>
    %14 = arith.maximumf %12, %13 : vector<288x32xf32>
    %c0_6 = arith.constant 0 : index
    %c0_7 = arith.constant 0 : index
    %15 = vector.load %arg4[%c0_6, %c0_7] : memref<288x32xf32, #tpu.memory_space<vmem>>, vector<288x32xf32>
    tpu.vector_store %arg4[%c0_6, %c0_7], %14 {strides = array<i32>} : memref<288x32xf32, #tpu.memory_space<vmem>>, vector<288x32xf32>,
    return
  }
  func.func @transform_0(%arg0: i32) -> (i32, i32) {
    %c0_i32 = arith.constant 0 : i32
    %c0_i32_0 = arith.constant 0 : i32
    %c0_i32_1 = arith.constant 0 : i32
    return %c0_i32, %c0_i32_0 : i32, i32
  }
  func.func @transform_1(%arg0: i32) -> (i32, i32) {
    %c0_i32 = arith.constant 0 : i32
    %c0_i32_0 = arith.constant 0 : i32
    %c0_i32_1 = arith.constant 0 : i32
    return %c0_i32, %c0_i32_0 : i32, i32
  }
  func.func @transform_2(%arg0: i32) -> (i32, i32) {
    %c0_i32 = arith.constant 0 : i32
    %c0_i32_0 = arith.constant 0 : i32
    %c0_i32_1 = arith.constant 0 : i32
    return %c0_i32, %c0_i32_0 : i32, i32
  }
  func.func @transform_3(%arg0: i32) -> (i32, i32) {
    %c0_i32 = arith.constant 0 : i32
    %c0_i32_0 = arith.constant 0 : i32
    %c0_i32_1 = arith.constant 0 : i32
    return %c0_i32, %c0_i32_0 : i32, i32
  }
}

module attributes {stable_mosaic.version = 11 : i64} {
  func.func @_conv2_head_kernel(%arg0: i32, %arg1: memref<128x896xf32, #tpu.memory_space<vmem>>, %arg2: memref<896x64xf32, #tpu.memory_space<vmem>>, %arg3: memref<1x64xf32, #tpu.memory_space<vmem>>, %arg4: memref<16x512xf32, #tpu.memory_space<vmem>>, %arg5: memref<1x128xf32, #tpu.memory_space<vmem>>, %arg6: memref<16x256xf32, #tpu.memory_space<vmem>>, %arg7: memref<1x128xf32, #tpu.memory_space<vmem>>, %arg8: memref<1x128xf32, #tpu.memory_space<vmem>>, %arg9: memref<128x256xf32, #tpu.memory_space<vmem>>, %arg10: memref<1x256xf32, #tpu.memory_space<vmem>>, %arg11: memref<256x128xf32, #tpu.memory_space<vmem>>, %arg12: memref<1x128xf32, #tpu.memory_space<vmem>>, %arg13: memref<32x128xf32, #tpu.memory_space<vmem>>) attributes {dimension_semantics = [#tpu.dimension_semantics<arbitrary>], iteration_bounds = array<i64: 1>, scalar_prefetch = 0 : i64, scratch_operands = 0 : i64, tpu.core_type = #tpu.core_type<tc>, window_params = [{pipeline_mode = #tpu.pipeline_mode<synchronous>, transform_indices = @transform_0, window_bounds = array<i64: 128, 896>}, {pipeline_mode = #tpu.pipeline_mode<synchronous>, transform_indices = @transform_1, window_bounds = array<i64: 896, 64>}, {pipeline_mode = #tpu.pipeline_mode<synchronous>, transform_indices = @transform_2, window_bounds = array<i64: 1, 64>}, {pipeline_mode = #tpu.pipeline_mode<synchronous>, transform_indices = @transform_3, window_bounds = array<i64: 16, 512>}, {pipeline_mode = #tpu.pipeline_mode<synchronous>, transform_indices = @transform_4, window_bounds = array<i64: 1, 128>}, {pipeline_mode = #tpu.pipeline_mode<synchronous>, transform_indices = @transform_5, window_bounds = array<i64: 16, 256>}, {pipeline_mode = #tpu.pipeline_mode<synchronous>, transform_indices = @transform_6, window_bounds = array<i64: 1, 128>}, {pipeline_mode = #tpu.pipeline_mode<synchronous>, transform_indices = @transform_7, window_bounds = array<i64: 1, 128>}, {pipeline_mode = #tpu.pipeline_mode<synchronous>, transform_indices = @transform_8, window_bounds = array<i64: 128, 256>}, {pipeline_mode = #tpu.pipeline_mode<synchronous>, transform_indices = @transform_9, window_bounds = array<i64: 1, 256>}, {pipeline_mode = #tpu.pipeline_mode<synchronous>, transform_indices = @transform_10, window_bounds = array<i64: 256, 128>}, {pipeline_mode = #tpu.pipeline_mode<synchronous>, transform_indices = @transform_11, window_bounds = array<i64: 1, 128>}, {pipeline_mode = #tpu.pipeline_mode<synchronous>, transform_indices = @transform_12, window_bounds = array<i64: 32, 128>}]} {
    %c0 = arith.constant 0 : index
    %c0_0 = arith.constant 0 : index
    %0 = vector.load %arg1[%c0, %c0_0] : memref<128x896xf32, #tpu.memory_space<vmem>>, vector<128x896xf32>
    %c0_1 = arith.constant 0 : index
    %c0_2 = arith.constant 0 : index
    %1 = vector.load %arg2[%c0_1, %c0_2] : memref<896x64xf32, #tpu.memory_space<vmem>>, vector<896x64xf32>
    %cst = arith.constant dense<0.000000e+00> : vector<128x64xf32>
    %2 = tpu.matmul %0, %1, %cst {dimension_numbers = #tpu.dot_dimension_numbers<[1], [0], [0], [1], [0, 0, 1, 1], [], []>} : vector<128x896xf32>, vector<896x64xf32>, vector<128x64xf32> -> vector<128x64xf32>
    %c0_3 = arith.constant 0 : index
    %c0_4 = arith.constant 0 : index
    %3 = vector.load %arg3[%c0_3, %c0_4] : memref<1x64xf32, #tpu.memory_space<vmem>>, vector<1x64xf32>
    %4 = vector.broadcast %3 : vector<1x64xf32> to vector<128x64xf32>
    %5 = arith.addf %2, %4 : vector<128x64xf32>
    %6 = vector.extract_strided_slice %5 {offsets = [0, 0], sizes = [32, 64], strides = [1, 1]} : vector<128x64xf32> to vector<32x64xf32>
    %7 = vector.extract_strided_slice %5 {offsets = [32, 0], sizes = [32, 64], strides = [1, 1]} : vector<128x64xf32> to vector<32x64xf32>
    %8 = arith.maximumf %6, %7 : vector<32x64xf32>
    %9 = vector.extract_strided_slice %5 {offsets = [64, 0], sizes = [32, 64], strides = [1, 1]} : vector<128x64xf32> to vector<32x64xf32>
    %10 = vector.extract_strided_slice %5 {offsets = [96, 0], sizes = [32, 64], strides = [1, 1]} : vector<128x64xf32> to vector<32x64xf32>
    %11 = arith.maximumf %9, %10 : vector<32x64xf32>
    %12 = arith.maximumf %8, %11 : vector<32x64xf32>
    %cst_5 = arith.constant 0.000000e+00 : f32
    %13 = vector.broadcast %cst_5 : f32 to vector<32x64xf32>
    %14 = arith.maximumf %12, %13 : vector<32x64xf32>
    %c0_6 = arith.constant 0 : index
    %c0_7 = arith.constant 0 : index
    %15 = vector.load %arg4[%c0_6, %c0_7] : memref<16x512xf32, #tpu.memory_space<vmem>>, vector<16x512xf32>
    %c0_8 = arith.constant 0 : index
    %c0_9 = arith.constant 0 : index
    %16 = vector.load %arg6[%c0_8, %c0_9] : memref<16x256xf32, #tpu.memory_space<vmem>>, vector<16x256xf32>
    %17 = vector.extract_strided_slice %14 {offsets = [0, 0], sizes = [16, 64], strides = [1, 1]} : vector<32x64xf32> to vector<16x64xf32>
    %cst_10 = arith.constant dense<0.000000e+00> : vector<64x512xf32>
    %18 = tpu.matmul %17, %15, %cst_10 {dimension_numbers = #tpu.dot_dimension_numbers<[0], [0], [1], [1], [0, 1, 1, 1], [], []>} : vector<16x64xf32>, vector<16x512xf32>, vector<64x512xf32> -> vector<64x512xf32>
    %19 = vector.extract_strided_slice %18 {offsets = [0, 0], sizes = [64, 128], strides = [1, 1]} : vector<64x512xf32> to vector<64x128xf32>
    %20 = vector.extract_strided_slice %18 {offsets = [0, 128], sizes = [64, 128], strides = [1, 1]} : vector<64x512xf32> to vector<64x128xf32>
    %21 = vector.extract_strided_slice %18 {offsets = [0, 256], sizes = [64, 128], strides = [1, 1]} : vector<64x512xf32> to vector<64x128xf32>
    %22 = vector.extract_strided_slice %18 {offsets = [0, 384], sizes = [64, 128], strides = [1, 1]} : vector<64x512xf32> to vector<64x128xf32>
    %23 = tpu.concatenate %19, %20, %21, %22 in 0 : vector<64x128xf32>, vector<64x128xf32>, vector<64x128xf32>, vector<64x128xf32> -> vector<256x128xf32>
    %cst_11 = arith.constant dense<0.000000e+00> : vector<16x128xf32>
    %24 = tpu.matmul %16, %23, %cst_11 {dimension_numbers = #tpu.dot_dimension_numbers<[1], [0], [0], [1], [0, 0, 1, 1], [], []>} : vector<16x256xf32>, vector<256x128xf32>, vector<16x128xf32> -> vector<16x128xf32>
    %25 = vector.extract_strided_slice %14 {offsets = [16, 0], sizes = [16, 64], strides = [1, 1]} : vector<32x64xf32> to vector<16x64xf32>
    %cst_12 = arith.constant dense<0.000000e+00> : vector<64x512xf32>
    %26 = tpu.matmul %25, %15, %cst_12 {dimension_numbers = #tpu.dot_dimension_numbers<[0], [0], [1], [1], [0, 1, 1, 1], [], []>} : vector<16x64xf32>, vector<16x512xf32>, vector<64x512xf32> -> vector<64x512xf32>
    %27 = vector.extract_strided_slice %26 {offsets = [0, 0], sizes = [64, 128], strides = [1, 1]} : vector<64x512xf32> to vector<64x128xf32>
    %28 = vector.extract_strided_slice %26 {offsets = [0, 128], sizes = [64, 128], strides = [1, 1]} : vector<64x512xf32> to vector<64x128xf32>
    %29 = vector.extract_strided_slice %26 {offsets = [0, 256], sizes = [64, 128], strides = [1, 1]} : vector<64x512xf32> to vector<64x128xf32>
    %30 = vector.extract_strided_slice %26 {offsets = [0, 384], sizes = [64, 128], strides = [1, 1]} : vector<64x512xf32> to vector<64x128xf32>
    %31 = tpu.concatenate %27, %28, %29, %30 in 0 : vector<64x128xf32>, vector<64x128xf32>, vector<64x128xf32>, vector<64x128xf32> -> vector<256x128xf32>
    %cst_13 = arith.constant dense<0.000000e+00> : vector<16x128xf32>
    %32 = tpu.matmul %16, %31, %cst_13 {dimension_numbers = #tpu.dot_dimension_numbers<[1], [0], [0], [1], [0, 0, 1, 1], [], []>} : vector<16x256xf32>, vector<256x128xf32>, vector<16x128xf32> -> vector<16x128xf32>
    %33 = tpu.concatenate %24, %32 in 0 : vector<16x128xf32>, vector<16x128xf32> -> vector<32x128xf32>
    %c0_14 = arith.constant 0 : index
    %c0_15 = arith.constant 0 : index
    %34 = vector.load %arg5[%c0_14, %c0_15] : memref<1x128xf32, #tpu.memory_space<vmem>>, vector<1x128xf32>
    %35 = vector.broadcast %34 : vector<1x128xf32> to vector<32x128xf32>
    %36 = arith.addf %33, %35 : vector<32x128xf32>
    %cst_16 = arith.constant 0.000000e+00 : f32
    %37 = vector.broadcast %cst_16 : f32 to vector<32x128xf32>
    %38 = arith.maximumf %36, %37 : vector<32x128xf32>
    %cst_17 = arith.constant dense<0.000000e+00> : vector<128xf32>
    %39 = vector.multi_reduction <add>, %38, %cst_17 [0] : vector<32x128xf32> to vector<128xf32>
    %40 = vector.shape_cast %39 : vector<128xf32> to vector<1x128xf32>
    %cst_18 = arith.constant 3.200000e+01 : f32
    %41 = vector.broadcast %cst_18 : f32 to vector<1x128xf32>
    %42 = arith.divf %40, %41 : vector<1x128xf32>
    %43 = arith.mulf %38, %38 : vector<32x128xf32>
    %cst_19 = arith.constant dense<0.000000e+00> : vector<128xf32>
    %44 = vector.multi_reduction <add>, %43, %cst_19 [0] : vector<32x128xf32> to vector<128xf32>
    %45 = vector.shape_cast %44 : vector<128xf32> to vector<1x128xf32>
    %cst_20 = arith.constant 3.200000e+01 : f32
    %46 = vector.broadcast %cst_20 : f32 to vector<1x128xf32>
    %47 = arith.divf %45, %46 : vector<1x128xf32>
    %48 = arith.mulf %42, %42 : vector<1x128xf32>
    %49 = arith.subf %47, %48 : vector<1x128xf32>
    %50 = vector.broadcast %42 : vector<1x128xf32> to vector<32x128xf32>
    %51 = arith.subf %38, %50 : vector<32x128xf32>
    %cst_21 = arith.constant 9.99999974E-6 : f32
    %52 = vector.broadcast %cst_21 : f32 to vector<1x128xf32>
    %53 = arith.addf %49, %52 : vector<1x128xf32>
    %54 = math.rsqrt %53 : vector<1x128xf32>
    %55 = vector.broadcast %54 : vector<1x128xf32> to vector<32x128xf32>
    %56 = arith.mulf %51, %55 : vector<32x128xf32>
    %c0_22 = arith.constant 0 : index
    %c0_23 = arith.constant 0 : index
    %57 = vector.load %arg7[%c0_22, %c0_23] : memref<1x128xf32, #tpu.memory_space<vmem>>, vector<1x128xf32>
    %58 = vector.broadcast %57 : vector<1x128xf32> to vector<32x128xf32>
    %59 = arith.mulf %56, %58 : vector<32x128xf32>
    %c0_24 = arith.constant 0 : index
    %c0_25 = arith.constant 0 : index
    %60 = vector.load %arg8[%c0_24, %c0_25] : memref<1x128xf32, #tpu.memory_space<vmem>>, vector<1x128xf32>
    %61 = vector.broadcast %60 : vector<1x128xf32> to vector<32x128xf32>
    %62 = arith.addf %59, %61 : vector<32x128xf32>
    %c0_26 = arith.constant 0 : index
    %c0_27 = arith.constant 0 : index
    %63 = vector.load %arg9[%c0_26, %c0_27] : memref<128x256xf32, #tpu.memory_space<vmem>>, vector<128x256xf32>
    %cst_28 = arith.constant dense<0.000000e+00> : vector<32x256xf32>
    %64 = tpu.matmul %62, %63, %cst_28 {dimension_numbers = #tpu.dot_dimension_numbers<[1], [0], [0], [1], [0, 0, 1, 1], [], []>} : vector<32x128xf32>, vector<128x256xf32>, vector<32x256xf32> -> vector<32x256xf32>
    %c0_29 = arith.constant 0 : index
    %c0_30 = arith.constant 0 : index
    %65 = vector.load %arg10[%c0_29, %c0_30] : memref<1x256xf32, #tpu.memory_space<vmem>>, vector<1x256xf32>
    %66 = vector.broadcast %65 : vector<1x256xf32> to vector<32x256xf32>
    %67 = arith.addf %64, %66 : vector<32x256xf32>
    %cst_31 = arith.constant 0.000000e+00 : f32
    %68 = vector.broadcast %cst_31 : f32 to vector<32x256xf32>
    %69 = arith.maximumf %67, %68 : vector<32x256xf32>
    %c0_32 = arith.constant 0 : index
    %c0_33 = arith.constant 0 : index
    %70 = vector.load %arg11[%c0_32, %c0_33] : memref<256x128xf32, #tpu.memory_space<vmem>>, vector<256x128xf32>
    %cst_34 = arith.constant dense<0.000000e+00> : vector<32x128xf32>
    %71 = tpu.matmul %69, %70, %cst_34 {dimension_numbers = #tpu.dot_dimension_numbers<[1], [0], [0], [1], [0, 0, 1, 1], [], []>} : vector<32x256xf32>, vector<256x128xf32>, vector<32x128xf32> -> vector<32x128xf32>
    %c0_35 = arith.constant 0 : index
    %c0_36 = arith.constant 0 : index
    %72 = vector.load %arg12[%c0_35, %c0_36] : memref<1x128xf32, #tpu.memory_space<vmem>>, vector<1x128xf32>
    %73 = vector.broadcast %72 : vector<1x128xf32> to vector<32x128xf32>
    %74 = arith.addf %71, %73 : vector<32x128xf32>
    %cst_37 = arith.constant dense<0xFF800000> : vector<32xf32>
    %75 = vector.multi_reduction <maximumf>, %74, %cst_37 [1] : vector<32x128xf32> to vector<32xf32>
    %76 = vector.shape_cast %75 : vector<32xf32> to vector<32x1xf32>
    %77 = vector.broadcast %76 : vector<32x1xf32> to vector<32x128xf32>
    %78 = arith.subf %74, %77 : vector<32x128xf32>
    %79 = math.exp %78 : vector<32x128xf32>
    %cst_38 = arith.constant dense<0.000000e+00> : vector<32xf32>
    %80 = vector.multi_reduction <add>, %79, %cst_38 [1] : vector<32x128xf32> to vector<32xf32>
    %81 = vector.shape_cast %80 : vector<32xf32> to vector<32x1xf32>
    %82 = tpu.reciprocal %81 : vector<32x1xf32> -> vector<32x1xf32>
    %83 = vector.broadcast %82 : vector<32x1xf32> to vector<32x128xf32>
    %84 = arith.mulf %79, %83 : vector<32x128xf32>
    %c0_39 = arith.constant 0 : index
    %c0_40 = arith.constant 0 : index
    %85 = vector.load %arg13[%c0_39, %c0_40] : memref<32x128xf32, #tpu.memory_space<vmem>>, vector<32x128xf32>
    tpu.vector_store %arg13[%c0_39, %c0_40], %84 {strides = array<i32>} : memref<32x128xf32, #tpu.memory_space<vmem>>, vector<32x128xf32>,
    return
  }
  func.func @transform_0(%arg0: i32) -> (i32, i32) {
    %c0_i32 = arith.constant 0 : i32
    %c0_i32_0 = arith.constant 0 : i32
    %c0_i32_1 = arith.constant 0 : i32
    return %c0_i32, %c0_i32_0 : i32, i32
  }
  func.func @transform_1(%arg0: i32) -> (i32, i32) {
    %c0_i32 = arith.constant 0 : i32
    %c0_i32_0 = arith.constant 0 : i32
    %c0_i32_1 = arith.constant 0 : i32
    return %c0_i32, %c0_i32_0 : i32, i32
  }
  func.func @transform_2(%arg0: i32) -> (i32, i32) {
    %c0_i32 = arith.constant 0 : i32
    %c0_i32_0 = arith.constant 0 : i32
    %c0_i32_1 = arith.constant 0 : i32
    return %c0_i32, %c0_i32_0 : i32, i32
  }
  func.func @transform_3(%arg0: i32) -> (i32, i32) {
    %c0_i32 = arith.constant 0 : i32
    %c0_i32_0 = arith.constant 0 : i32
    %c0_i32_1 = arith.constant 0 : i32
    return %c0_i32, %c0_i32_0 : i32, i32
  }
  func.func @transform_4(%arg0: i32) -> (i32, i32) {
    %c0_i32 = arith.constant 0 : i32
    %c0_i32_0 = arith.constant 0 : i32
    %c0_i32_1 = arith.constant 0 : i32
    return %c0_i32, %c0_i32_0 : i32, i32
  }
  func.func @transform_5(%arg0: i32) -> (i32, i32) {
    %c0_i32 = arith.constant 0 : i32
    %c0_i32_0 = arith.constant 0 : i32
    %c0_i32_1 = arith.constant 0 : i32
    return %c0_i32, %c0_i32_0 : i32, i32
  }
  func.func @transform_6(%arg0: i32) -> (i32, i32) {
    %c0_i32 = arith.constant 0 : i32
    %c0_i32_0 = arith.constant 0 : i32
    %c0_i32_1 = arith.constant 0 : i32
    return %c0_i32, %c0_i32_0 : i32, i32
  }
  func.func @transform_7(%arg0: i32) -> (i32, i32) {
    %c0_i32 = arith.constant 0 : i32
    %c0_i32_0 = arith.constant 0 : i32
    %c0_i32_1 = arith.constant 0 : i32
    return %c0_i32, %c0_i32_0 : i32, i32
  }
  func.func @transform_8(%arg0: i32) -> (i32, i32) {
    %c0_i32 = arith.constant 0 : i32
    %c0_i32_0 = arith.constant 0 : i32
    %c0_i32_1 = arith.constant 0 : i32
    return %c0_i32, %c0_i32_0 : i32, i32
  }
  func.func @transform_9(%arg0: i32) -> (i32, i32) {
    %c0_i32 = arith.constant 0 : i32
    %c0_i32_0 = arith.constant 0 : i32
    %c0_i32_1 = arith.constant 0 : i32
    return %c0_i32, %c0_i32_0 : i32, i32
  }
  func.func @transform_10(%arg0: i32) -> (i32, i32) {
    %c0_i32 = arith.constant 0 : i32
    %c0_i32_0 = arith.constant 0 : i32
    %c0_i32_1 = arith.constant 0 : i32
    return %c0_i32, %c0_i32_0 : i32, i32
  }
  func.func @transform_11(%arg0: i32) -> (i32, i32) {
    %c0_i32 = arith.constant 0 : i32
    %c0_i32_0 = arith.constant 0 : i32
    %c0_i32_1 = arith.constant 0 : i32
    return %c0_i32, %c0_i32_0 : i32, i32
  }
  func.func @transform_12(%arg0: i32) -> (i32, i32) {
    %c0_i32 = arith.constant 0 : i32
    %c0_i32_0 = arith.constant 0 : i32
    %c0_i32_1 = arith.constant 0 : i32
    return %c0_i32, %c0_i32_0 : i32, i32
  }
}

</mosaic_0001>

<bundles_post_ra>
// kernel: classification_forward.2
= control target key start
LH: loop header
LB: loop body
LE: loop exit
PB: predicated region body
PF: predicated region fallthrough
CT: control target
= control target key end

     0   :  { %vm169_vm0 = vcmask 261120   ;;  %s3213_s1 = inlined_call_operand.vmem [shape: f32[32,32], index: 1, kind: input, shape index: {}]   ;;  %s3214_s0 = inlined_call_operand.vmem [shape: f32[1152,32], index: 0, kind: input, shape index: {}]   ;;  %s3215_s2 = inlined_call_operand.vmem [shape: f32[1,32], index: 2, kind: input, shape index: {}]   ;;  %s3216_s3 = inlined_call_operand.vmem [shape: f32[288,32], index: 3, kind: output, shape index: {}]  }
   0x1   :  { %v161_v0 = vld [vmem:[%s3213_s1 + $0x18] sm:$0xff]  ;;  %v160_v1 = vld [vmem:[%s3213_s1 + $0x10] sm:$0xff]  ;;  %v159_v2 = vld [vmem:[%s3213_s1 + $0x8] sm:$0xff] }
   0x2   :  { %1864 = vmatprep.subr.mxu0 %v161_v0  ;;  %2088 = vmatprep.subr.mxu1 %v161_v0  ;;  %v158_v3 = vld [vmem:[%s3213_s1] sm:$0xff]  ;;  %v15_v6 = vld [vmem:[%s3214_s0 + $0x8] sm:$0xff]  ;;  %v16_v8 = vld [vmem:[%s3214_s0 + $0x10] sm:$0xff] }
   0x3   :  { %1865 = vmatpush3.msra.mxu0 %v161_v0  ;;  %2092 = vmatpush3.msra.mxu1 %v161_v0  ;;  %v14_v4 = vld [vmem:[%s3214_s0] sm:$0xff]  ;;  %v87_v7 = vld [vmem:[%s3214_s0 + $0x248] sm:$0xff]  ;;  %v88_v9 = vld [vmem:[%s3214_s0 + $0x250] sm:$0xff] }
   0x4   :  { %1866 = vmatprep.subr.mxu0 %v160_v1  ;;  %2089 = vmatprep.subr.mxu1 %v160_v1  ;;  %v86_v5 = vld [vmem:[%s3214_s0 + $0x240] sm:$0xff]  ;;  %v17_v10 = vld [vmem:[%s3214_s0 + $0x18] sm:$0xff]  ;;  %v19_v14 = vld [vmem:[%s3214_s0 + $0x28] sm:$0xff] }
   0x5   :  { %1867 = vmatpush3.msra.mxu0 %v160_v1  ;;  %2093 = vmatpush3.msra.mxu1 %v160_v1  ;;  %v89_v11 = vld [vmem:[%s3214_s0 + $0x258] sm:$0xff]  ;;  %v18_v12 = vld [vmem:[%s3214_s0 + $0x20] sm:$0xff]  ;;  %v91_v15 = vld [vmem:[%s3214_s0 + $0x268] sm:$0xff] }
   0x6   :  { %1868 = vmatprep.subr.mxu0 %v159_v2  ;;  %2090 = vmatprep.subr.mxu1 %v159_v2  ;;  %v90_v13 = vld [vmem:[%s3214_s0 + $0x260] sm:$0xff]  ;;  %v20_v16 = vld [vmem:[%s3214_s0 + $0x30] sm:$0xff]  ;;  %v21_v18 = vld [vmem:[%s3214_s0 + $0x38] sm:$0xff] }
   0x7   :  { %1869 = vmatpush3.msra.mxu0 %v159_v2  ;;  %2094 = vmatpush3.msra.mxu1 %v159_v2  ;;  %v92_v17 = vld [vmem:[%s3214_s0 + $0x270] sm:$0xff]  ;;  %v93_v19 = vld [vmem:[%s3214_s0 + $0x278] sm:$0xff]  ;;  %v22_v20 = vld [vmem:[%s3214_s0 + $0x40] sm:$0xff] }
   0x8   :  { %1870 = vmatprep.subr.mxu0 %v158_v3  ;;  %2091 = vmatprep.subr.mxu1 %v158_v3  ;;  %v94_v21 = vld [vmem:[%s3214_s0 + $0x280] sm:$0xff]  ;;  %v23_v22 = vld [vmem:[%s3214_s0 + $0x48] sm:$0xff]  ;;  %v24_v24 = vld [vmem:[%s3214_s0 + $0x50] sm:$0xff] }
   0x9   :  { %1871 = vmatpush3.msra.mxu0 %v158_v3  ;;  %2095 = vmatpush3.msra.mxu1 %v158_v3  ;;  %v95_v23 = vld [vmem:[%s3214_s0 + $0x288] sm:$0xff]  ;;  %v96_v25 = vld [vmem:[%s3214_s0 + $0x290] sm:$0xff]  ;;  %v25_v26 = vld [vmem:[%s3214_s0 + $0x58] sm:$0xff] }
   0xa   :  { %1872 = vmatprep.mubr.msk.f32.mxu0 %vm169_vm0, %v14_v4  ;;  %1980 = vmatprep.mubr.msk.f32.mxu1 %vm169_vm0, %v86_v5  ;;  %v97_v27 = vld [vmem:[%s3214_s0 + $0x298] sm:$0xff]  ;;  %v26_v28 = vld [vmem:[%s3214_s0 + $0x60] sm:$0xff]  ;;  %v27_v30 = vld [vmem:[%s3214_s0 + $0x68] sm:$0xff] }
   0xb   :  { %1873 = vmatmul.mubr.msk.f32.vlgmr.msra.gmra.mxu0 %vm169_vm0, %v15_v6  ;;  %1981 = vmatmul.mubr.msk.f32.vlgmr.msra.gmra.mxu1 %vm169_vm0, %v87_v7  ;;  %v98_v29 = vld [vmem:[%s3214_s0 + $0x2a0] sm:$0xff]  ;;  %v99_v31 = vld [vmem:[%s3214_s0 + $0x2a8] sm:$0xff]  ;;  %v28_v32 = vld [vmem:[%s3214_s0 + $0x70] sm:$0xff] }
   0xc   :  { %1875 = vmatprep.mubr.msk.f32.mxu0 %vm169_vm0, %v16_v8  ;;  %1983 = vmatprep.mubr.msk.f32.mxu1 %vm169_vm0, %v88_v9  ;;  %v100_v33 = vld [vmem:[%s3214_s0 + $0x2b0] sm:$0xff]  ;;  %v29_v34 = vld [vmem:[%s3214_s0 + $0x78] sm:$0xff]  ;;  %v30_v36 = vld [vmem:[%s3214_s0 + $0x80] sm:$0xff] }
   0xd   :  { %v101_v35 = vld [vmem:[%s3214_s0 + $0x2b8] sm:$0xff]  ;;  %v102_v37 = vld [vmem:[%s3214_s0 + $0x2c0] sm:$0xff]  ;;  %v31_v38 = vld [vmem:[%s3214_s0 + $0x88] sm:$0xff] }
   0xe   :  { %v103_v39 = vld [vmem:[%s3214_s0 + $0x2c8] sm:$0xff]  ;;  %v32_v40 = vld [vmem:[%s3214_s0 + $0x90] sm:$0xff]  ;;  %v33_v42 = vld [vmem:[%s3214_s0 + $0x98] sm:$0xff] }
   0xf   :  { %1876 = vmatmul.mubr.msk.f32.gmra.mxu0 %vm169_vm0, %v17_v10  ;;  %1984 = vmatmul.mubr.msk.f32.gmra.mxu1 %vm169_vm0, %v89_v11  ;;  %v104_v41 = vld [vmem:[%s3214_s0 + $0x2d0] sm:$0xff]  ;;  %v105_v43 = vld [vmem:[%s3214_s0 + $0x2d8] sm:$0xff]  ;;  %v34_v44 = vld [vmem:[%s3214_s0 + $0xa0] sm:$0xff] }
  0x10   :  { %1878 = vmatprep.mubr.msk.f32.mxu0 %vm169_vm0, %v18_v12  ;;  %1986 = vmatprep.mubr.msk.f32.mxu1 %vm169_vm0, %v90_v13  ;;  %v106_v45 = vld [vmem:[%s3214_s0 + $0x2e0] sm:$0xff]  ;;  %v35_v46 = vld [vmem:[%s3214_s0 + $0xa8] sm:$0xff]  ;;  %v36_v48 = vld [vmem:[%s3214_s0 + $0xb0] sm:$0xff] }
  0x11   :  { %v107_v47 = vld [vmem:[%s3214_s0 + $0x2e8] sm:$0xff]  ;;  %v108_v49 = vld [vmem:[%s3214_s0 + $0x2f0] sm:$0xff]  ;;  %v37_v50 = vld [vmem:[%s3214_s0 + $0xb8] sm:$0xff] }
  0x12   :  { %v109_v51 = vld [vmem:[%s3214_s0 + $0x2f8] sm:$0xff]  ;;  %v38_v52 = vld [vmem:[%s3214_s0 + $0xc0] sm:$0xff]  ;;  %v39_v54 = vld [vmem:[%s3214_s0 + $0xc8] sm:$0xff] }
  0x13   :  { %1879 = vmatmul.mubr.msk.f32.gmra.mxu0 %vm169_vm0, %v19_v14  ;;  %1987 = vmatmul.mubr.msk.f32.gmra.mxu1 %vm169_vm0, %v91_v15  ;;  %v110_v53 = vld [vmem:[%s3214_s0 + $0x300] sm:$0xff]  ;;  %v111_v55 = vld [vmem:[%s3214_s0 + $0x308] sm:$0xff]  ;;  %v40_v56 = vld [vmem:[%s3214_s0 + $0xd0] sm:$0xff] }
  0x14   :  { %1881 = vmatprep.mubr.msk.f32.mxu0 %vm169_vm0, %v20_v16  ;;  %1989 = vmatprep.mubr.msk.f32.mxu1 %vm169_vm0, %v92_v17  ;;  %v112_v57 = vld [vmem:[%s3214_s0 + $0x310] sm:$0xff]  ;;  %v41_v58 = vld [vmem:[%s3214_s0 + $0xd8] sm:$0xff]  ;;  %v42_v60 = vld [vmem:[%s3214_s0 + $0xe0] sm:$0xff] }
  0x15   :  { %v113_v59 = vld [vmem:[%s3214_s0 + $0x318] sm:$0xff]  ;;  %v114_v61 = vld [vmem:[%s3214_s0 + $0x320] sm:$0xff]  ;;  %v43_v62 = vld [vmem:[%s3214_s0 + $0xe8] sm:$0xff] }
  0x16   :  { %v115_v63 = vld [vmem:[%s3214_s0 + $0x328] sm:$0xff]  ;;  %v44_v0 = vld [vmem:[%s3214_s0 + $0xf0] sm:$0xff]  ;;  %v45_v2 = vld [vmem:[%s3214_s0 + $0xf8] sm:$0xff] }
  0x17   :  { %1882 = vmatmul.mubr.msk.f32.gmra.mxu0 %vm169_vm0, %v21_v18  ;;  %1990 = vmatmul.mubr.msk.f32.gmra.mxu1 %vm169_vm0, %v93_v19  ;;  %v116_v1 = vld [vmem:[%s3214_s0 + $0x330] sm:$0xff]  ;;  %v117_v3 = vld [vmem:[%s3214_s0 + $0x338] sm:$0xff]  ;;  %v46_v4 = vld [vmem:[%s3214_s0 + $0x100] sm:$0xff] }
  0x18   :  { %1884 = vmatprep.mubr.msk.f32.mxu0 %vm169_vm0, %v22_v20  ;;  %1992 = vmatprep.mubr.msk.f32.mxu1 %vm169_vm0, %v94_v21  ;;  %v118_v5 = vld [vmem:[%s3214_s0 + $0x340] sm:$0xff]  ;;  %v47_v6 = vld [vmem:[%s3214_s0 + $0x108] sm:$0xff]  ;;  %v48_v8 = vld [vmem:[%s3214_s0 + $0x110] sm:$0xff] }
  0x19   :  { %v119_v7 = vld [vmem:[%s3214_s0 + $0x348] sm:$0xff]  ;;  %v120_v9 = vld [vmem:[%s3214_s0 + $0x350] sm:$0xff]  ;;  %v49_v10 = vld [vmem:[%s3214_s0 + $0x118] sm:$0xff] }
  0x1a   :  { %v121_v11 = vld [vmem:[%s3214_s0 + $0x358] sm:$0xff]  ;;  %v50_v12 = vld [vmem:[%s3214_s0 + $0x120] sm:$0xff]  ;;  %v51_v14 = vld [vmem:[%s3214_s0 + $0x128] sm:$0xff] }
  0x1b   :  { %1885 = vmatmul.mubr.msk.f32.gmra.mxu0 %vm169_vm0, %v23_v22  ;;  %1993 = vmatmul.mubr.msk.f32.gmra.mxu1 %vm169_vm0, %v95_v23  ;;  %v122_v13 = vld [vmem:[%s3214_s0 + $0x360] sm:$0xff]  ;;  %v123_v15 = vld [vmem:[%s3214_s0 + $0x368] sm:$0xff]  ;;  %v52_v16 = vld [vmem:[%s3214_s0 + $0x130] sm:$0xff] }
  0x1c   :  { %1887 = vmatprep.mubr.msk.f32.mxu0 %vm169_vm0, %v24_v24  ;;  %1995 = vmatprep.mubr.msk.f32.mxu1 %vm169_vm0, %v96_v25  ;;  %v124_v17 = vld [vmem:[%s3214_s0 + $0x370] sm:$0xff]  ;;  %v53_v18 = vld [vmem:[%s3214_s0 + $0x138] sm:$0xff]  ;;  %v54_v20 = vld [vmem:[%s3214_s0 + $0x140] sm:$0xff] }
  0x1d   :  { %v125_v19 = vld [vmem:[%s3214_s0 + $0x378] sm:$0xff]  ;;  %v126_v21 = vld [vmem:[%s3214_s0 + $0x380] sm:$0xff]  ;;  %v55_v22 = vld [vmem:[%s3214_s0 + $0x148] sm:$0xff] }
  0x1e   :  { %v127_v23 = vld [vmem:[%s3214_s0 + $0x388] sm:$0xff]  ;;  %v56_v24 = vld [vmem:[%s3214_s0 + $0x150] sm:$0xff] }
  0x1f   :  { %1888 = vmatmul.mubr.msk.f32.gmra.mxu0 %vm169_vm0, %v25_v26  ;;  %1996 = vmatmul.mubr.msk.f32.gmra.mxu1 %vm169_vm0, %v97_v27  ;;  %v128_v25 = vld [vmem:[%s3214_s0 + $0x390] sm:$0xff]  ;;  %v57_v26 = vld [vmem:[%s3214_s0 + $0x158] sm:$0xff] }
  0x20   :  { %1890 = vmatprep.mubr.msk.f32.mxu0 %vm169_vm0, %v26_v28  ;;  %1998 = vmatprep.mubr.msk.f32.mxu1 %vm169_vm0, %v98_v29  ;;  %v129_v27 = vld [vmem:[%s3214_s0 + $0x398] sm:$0xff]  ;;  %v58_v28 = vld [vmem:[%s3214_s0 + $0x160] sm:$0xff] }
  0x21   :  { %v130_v29 = vld [vmem:[%s3214_s0 + $0x3a0] sm:$0xff] }
  0x23   :  { %1891 = vmatmul.mubr.msk.f32.gmra.mxu0 %vm169_vm0, %v27_v30  ;;  %1999 = vmatmul.mubr.msk.f32.gmra.mxu1 %vm169_vm0, %v99_v31  ;;  %v59_v30 = vld [vmem:[%s3214_s0 + $0x168] sm:$0xff] }
  0x24   :  { %1893 = vmatprep.mubr.msk.f32.mxu0 %vm169_vm0, %v28_v32  ;;  %2001 = vmatprep.mubr.msk.f32.mxu1 %vm169_vm0, %v100_v33  ;;  %v131_v31 = vld [vmem:[%s3214_s0 + $0x3a8] sm:$0xff]  ;;  %v60_v32 = vld [vmem:[%s3214_s0 + $0x170] sm:$0xff] }
  0x25   :  { %v132_v33 = vld [vmem:[%s3214_s0 + $0x3b0] sm:$0xff] }
  0x27   :  { %1894 = vmatmul.mubr.msk.f32.gmra.mxu0 %vm169_vm0, %v29_v34  ;;  %2002 = vmatmul.mubr.msk.f32.gmra.mxu1 %vm169_vm0, %v101_v35  ;;  %v61_v34 = vld [vmem:[%s3214_s0 + $0x178] sm:$0xff] }
  0x28   :  { %1896 = vmatprep.mubr.msk.f32.mxu0 %vm169_vm0, %v30_v36  ;;  %2004 = vmatprep.mubr.msk.f32.mxu1 %vm169_vm0, %v102_v37  ;;  %v133_v35 = vld [vmem:[%s3214_s0 + $0x3b8] sm:$0xff]  ;;  %v62_v36 = vld [vmem:[%s3214_s0 + $0x180] sm:$0xff] }
  0x29   :  { %v134_v37 = vld [vmem:[%s3214_s0 + $0x3c0] sm:$0xff] }
  0x2b   :  { %1897 = vmatmul.mubr.msk.f32.gmra.mxu0 %vm169_vm0, %v31_v38  ;;  %2005 = vmatmul.mubr.msk.f32.gmra.mxu1 %vm169_vm0, %v103_v39  ;;  %v63_v38 = vld [vmem:[%s3214_s0 + $0x188] sm:$0xff] }
  0x2c   :  { %1899 = vmatprep.mubr.msk.f32.mxu0 %vm169_vm0, %v32_v40  ;;  %2007 = vmatprep.mubr.msk.f32.mxu1 %vm169_vm0, %v104_v41  ;;  %v135_v39 = vld [vmem:[%s3214_s0 + $0x3c8] sm:$0xff]  ;;  %v64_v40 = vld [vmem:[%s3214_s0 + $0x190] sm:$0xff] }
  0x2d   :  { %v136_v41 = vld [vmem:[%s3214_s0 + $0x3d0] sm:$0xff] }
  0x2f   :  { %1900 = vmatmul.mubr.msk.f32.gmra.mxu0 %vm169_vm0, %v33_v42  ;;  %2008 = vmatmul.mubr.msk.f32.gmra.mxu1 %vm169_vm0, %v105_v43  ;;  %v65_v42 = vld [vmem:[%s3214_s0 + $0x198] sm:$0xff] }
  0x30   :  { %1902 = vmatprep.mubr.msk.f32.mxu0 %vm169_vm0, %v34_v44  ;;  %2010 = vmatprep.mubr.msk.f32.mxu1 %vm169_vm0, %v106_v45  ;;  %v137_v43 = vld [vmem:[%s3214_s0 + $0x3d8] sm:$0xff]  ;;  %v66_v44 = vld [vmem:[%s3214_s0 + $0x1a0] sm:$0xff] }
  0x31   :  { %v138_v45 = vld [vmem:[%s3214_s0 + $0x3e0] sm:$0xff] }
  0x33   :  { %1903 = vmatmul.mubr.msk.f32.gmra.mxu0 %vm169_vm0, %v35_v46  ;;  %2011 = vmatmul.mubr.msk.f32.gmra.mxu1 %vm169_vm0, %v107_v47  ;;  %v67_v46 = vld [vmem:[%s3214_s0 + $0x1a8] sm:$0xff] }
  0x34   :  { %1905 = vmatprep.mubr.msk.f32.mxu0 %vm169_vm0, %v36_v48  ;;  %2013 = vmatprep.mubr.msk.f32.mxu1 %vm169_vm0, %v108_v49  ;;  %v139_v47 = vld [vmem:[%s3214_s0 + $0x3e8] sm:$0xff]  ;;  %v68_v48 = vld [vmem:[%s3214_s0 + $0x1b0] sm:$0xff] }
  0x35   :  { %v140_v49 = vld [vmem:[%s3214_s0 + $0x3f0] sm:$0xff] }
  0x37   :  { %1906 = vmatmul.mubr.msk.f32.gmra.mxu0 %vm169_vm0, %v37_v50  ;;  %2014 = vmatmul.mubr.msk.f32.gmra.mxu1 %vm169_vm0, %v109_v51  ;;  %v69_v50 = vld [vmem:[%s3214_s0 + $0x1b8] sm:$0xff] }
  0x38   :  { %1908 = vmatprep.mubr.msk.f32.mxu0 %vm169_vm0, %v38_v52  ;;  %2016 = vmatprep.mubr.msk.f32.mxu1 %vm169_vm0, %v110_v53  ;;  %v141_v51 = vld [vmem:[%s3214_s0 + $0x3f8] sm:$0xff]  ;;  %v70_v52 = vld [vmem:[%s3214_s0 + $0x1c0] sm:$0xff] }
  0x39   :  { %v142_v53 = vld [vmem:[%s3214_s0 + $0x400] sm:$0xff] }
  0x3b   :  { %1909 = vmatmul.mubr.msk.f32.gmra.mxu0 %vm169_vm0, %v39_v54  ;;  %2017 = vmatmul.mubr.msk.f32.gmra.mxu1 %vm169_vm0, %v111_v55  ;;  %v71_v54 = vld [vmem:[%s3214_s0 + $0x1c8] sm:$0xff] }
  0x3c   :  { %1911 = vmatprep.mubr.msk.f32.mxu0 %vm169_vm0, %v40_v56  ;;  %2019 = vmatprep.mubr.msk.f32.mxu1 %vm169_vm0, %v112_v57  ;;  %v143_v55 = vld [vmem:[%s3214_s0 + $0x408] sm:$0xff]  ;;  %v72_v56 = vld [vmem:[%s3214_s0 + $0x1d0] sm:$0xff] }
  0x3d   :  { %v144_v57 = vld [vmem:[%s3214_s0 + $0x410] sm:$0xff] }
  0x3f   :  { %1912 = vmatmul.mubr.msk.f32.gmra.mxu0 %vm169_vm0, %v41_v58  ;;  %2020 = vmatmul.mubr.msk.f32.gmra.mxu1 %vm169_vm0, %v113_v59  ;;  %v73_v58 = vld [vmem:[%s3214_s0 + $0x1d8] sm:$0xff] }
  0x40   :  { %1914 = vmatprep.mubr.msk.f32.mxu0 %vm169_vm0, %v42_v60  ;;  %2022 = vmatprep.mubr.msk.f32.mxu1 %vm169_vm0, %v114_v61  ;;  %v145_v59 = vld [vmem:[%s3214_s0 + $0x418] sm:$0xff]  ;;  %v74_v60 = vld [vmem:[%s3214_s0 + $0x1e0] sm:$0xff] }
  0x41   :  { %v146_v61 = vld [vmem:[%s3214_s0 + $0x420] sm:$0xff] }
  0x43   :  { %1915 = vmatmul.mubr.msk.f32.gmra.mxu0 %vm169_vm0, %v43_v62  ;;  %2023 = vmatmul.mubr.msk.f32.gmra.mxu1 %vm169_vm0, %v115_v63  ;;  %v75_v62 = vld [vmem:[%s3214_s0 + $0x1e8] sm:$0xff] }
  0x44   :  { %1917 = vmatprep.mubr.msk.f32.mxu0 %vm169_vm0, %v44_v0  ;;  %2025 = vmatprep.mubr.msk.f32.mxu1 %vm169_vm0, %v116_v1  ;;  %v147_v63 = vld [vmem:[%s3214_s0 + $0x428] sm:$0xff]  ;;  %v76_v0 = vld [vmem:[%s3214_s0 + $0x1f0] sm:$0xff] }
  0x45   :  { %v148_v1 = vld [vmem:[%s3214_s0 + $0x430] sm:$0xff] }
  0x47   :  { %1918 = vmatmul.mubr.msk.f32.gmra.mxu0 %vm169_vm0, %v45_v2  ;;  %2026 = vmatmul.mubr.msk.f32.gmra.mxu1 %vm169_vm0, %v117_v3  ;;  %v77_v2 = vld [vmem:[%s3214_s0 + $0x1f8] sm:$0xff] }
  0x48   :  { %1920 = vmatprep.mubr.msk.f32.mxu0 %vm169_vm0, %v46_v4  ;;  %2028 = vmatprep.mubr.msk.f32.mxu1 %vm169_vm0, %v118_v5  ;;  %v149_v3 = vld [vmem:[%s3214_s0 + $0x438] sm:$0xff]  ;;  %v78_v4 = vld [vmem:[%s3214_s0 + $0x200] sm:$0xff] }
  0x49   :  { %v150_v5 = vld [vmem:[%s3214_s0 + $0x440] sm:$0xff] }
  0x4b   :  { %1921 = vmatmul.mubr.msk.f32.gmra.mxu0 %vm169_vm0, %v47_v6  ;;  %2029 = vmatmul.mubr.msk.f32.gmra.mxu1 %vm169_vm0, %v119_v7  ;;  %v79_v6 = vld [vmem:[%s3214_s0 + $0x208] sm:$0xff] }
  0x4c   :  { %1923 = vmatprep.mubr.msk.f32.mxu0 %vm169_vm0, %v48_v8  ;;  %2031 = vmatprep.mubr.msk.f32.mxu1 %vm169_vm0, %v120_v9  ;;  %v151_v7 = vld [vmem:[%s3214_s0 + $0x448] sm:$0xff]  ;;  %v80_v8 = vld [vmem:[%s3214_s0 + $0x210] sm:$0xff] }
  0x4d   :  { %v152_v9 = vld [vmem:[%s3214_s0 + $0x450] sm:$0xff] }
  0x4f   :  { %1924 = vmatmul.mubr.msk.f32.gmra.mxu0 %vm169_vm0, %v49_v10  ;;  %2032 = vmatmul.mubr.msk.f32.gmra.mxu1 %vm169_vm0, %v121_v11  ;;  %v81_v10 = vld [vmem:[%s3214_s0 + $0x218] sm:$0xff] }
  0x50   :  { %1926 = vmatprep.mubr.msk.f32.mxu0 %vm169_vm0, %v50_v12  ;;  %2034 = vmatprep.mubr.msk.f32.mxu1 %vm169_vm0, %v122_v13  ;;  %v153_v11 = vld [vmem:[%s3214_s0 + $0x458] sm:$0xff]  ;;  %v82_v12 = vld [vmem:[%s3214_s0 + $0x220] sm:$0xff] }
  0x51   :  { %v154_v13 = vld [vmem:[%s3214_s0 + $0x460] sm:$0xff] }
  0x53   :  { %1927 = vmatmul.mubr.msk.f32.gmra.mxu0 %vm169_vm0, %v51_v14  ;;  %2035 = vmatmul.mubr.msk.f32.gmra.mxu1 %vm169_vm0, %v123_v15  ;;  %v83_v14 = vld [vmem:[%s3214_s0 + $0x228] sm:$0xff] }
  0x54   :  { %1929 = vmatprep.mubr.msk.f32.mxu0 %vm169_vm0, %v52_v16  ;;  %2037 = vmatprep.mubr.msk.f32.mxu1 %vm169_vm0, %v124_v17  ;;  %v155_v15 = vld [vmem:[%s3214_s0 + $0x468] sm:$0xff]  ;;  %v84_v16 = vld [vmem:[%s3214_s0 + $0x230] sm:$0xff] }
  0x55   :  { %v156_v17 = vld [vmem:[%s3214_s0 + $0x470] sm:$0xff] }
  0x57   :  { %1930 = vmatmul.mubr.msk.f32.gmra.mxu0 %vm169_vm0, %v53_v18  ;;  %2038 = vmatmul.mubr.msk.f32.gmra.mxu1 %vm169_vm0, %v125_v19  ;;  %v85_v18 = vld [vmem:[%s3214_s0 + $0x238] sm:$0xff] }
  0x58   :  { %1932 = vmatprep.mubr.msk.f32.mxu0 %vm169_vm0, %v54_v20  ;;  %2040 = vmatprep.mubr.msk.f32.mxu1 %vm169_vm0, %v126_v21  ;;  %v157_v19 = vld [vmem:[%s3214_s0 + $0x478] sm:$0xff] }
  0x5b   :  { %1933 = vmatmul.mubr.msk.f32.gmra.mxu0 %vm169_vm0, %v55_v22  ;;  %2041 = vmatmul.mubr.msk.f32.gmra.mxu1 %vm169_vm0, %v127_v23 }
  0x5c   :  { %1935 = vmatprep.mubr.msk.f32.mxu0 %vm169_vm0, %v56_v24  ;;  %2043 = vmatprep.mubr.msk.f32.mxu1 %vm169_vm0, %v128_v25 }
  0x5f   :  { %1936 = vmatmul.mubr.msk.f32.gmra.mxu0 %vm169_vm0, %v57_v26  ;;  %2044 = vmatmul.mubr.msk.f32.gmra.mxu1 %vm169_vm0, %v129_v27 }
  0x60   :  { %1938 = vmatprep.mubr.msk.f32.mxu0 %vm169_vm0, %v58_v28  ;;  %2046 = vmatprep.mubr.msk.f32.mxu1 %vm169_vm0, %v130_v29 }
  0x63   :  { %1939 = vmatmul.mubr.msk.f32.gmra.mxu0 %vm169_vm0, %v59_v30  ;;  %2047 = vmatmul.mubr.msk.f32.gmra.mxu1 %vm169_vm0, %v131_v31 }
  0x64   :  { %1941 = vmatprep.mubr.msk.f32.mxu0 %vm169_vm0, %v60_v32  ;;  %2049 = vmatprep.mubr.msk.f32.mxu1 %vm169_vm0, %v132_v33 }
  0x67   :  { %1942 = vmatmul.mubr.msk.f32.gmra.mxu0 %vm169_vm0, %v61_v34  ;;  %2050 = vmatmul.mubr.msk.f32.gmra.mxu1 %vm169_vm0, %v133_v35 }
  0x68   :  { %1944 = vmatprep.mubr.msk.f32.mxu0 %vm169_vm0, %v62_v36  ;;  %2052 = vmatprep.mubr.msk.f32.mxu1 %vm169_vm0, %v134_v37 }
  0x6b   :  { %1945 = vmatmul.mubr.msk.f32.gmra.mxu0 %vm169_vm0, %v63_v38  ;;  %2053 = vmatmul.mubr.msk.f32.gmra.mxu1 %vm169_vm0, %v135_v39 }
  0x6c   :  { %1947 = vmatprep.mubr.msk.f32.mxu0 %vm169_vm0, %v64_v40  ;;  %2055 = vmatprep.mubr.msk.f32.mxu1 %vm169_vm0, %v136_v41 }
  0x6f   :  { %1948 = vmatmul.mubr.msk.f32.gmra.mxu0 %vm169_vm0, %v65_v42  ;;  %2056 = vmatmul.mubr.msk.f32.gmra.mxu1 %vm169_vm0, %v137_v43 }
  0x70   :  { %1950 = vmatprep.mubr.msk.f32.mxu0 %vm169_vm0, %v66_v44  ;;  %2058 = vmatprep.mubr.msk.f32.mxu1 %vm169_vm0, %v138_v45 }
  0x73   :  { %1951 = vmatmul.mubr.msk.f32.gmra.mxu0 %vm169_vm0, %v67_v46  ;;  %2059 = vmatmul.mubr.msk.f32.gmra.mxu1 %vm169_vm0, %v139_v47 }
  0x74   :  { %1953 = vmatprep.mubr.msk.f32.mxu0 %vm169_vm0, %v68_v48  ;;  %2061 = vmatprep.mubr.msk.f32.mxu1 %vm169_vm0, %v140_v49 }
  0x77   :  { %1954 = vmatmul.mubr.msk.f32.gmra.mxu0 %vm169_vm0, %v69_v50  ;;  %2062 = vmatmul.mubr.msk.f32.gmra.mxu1 %vm169_vm0, %v141_v51 }
  0x78   :  { %1956 = vmatprep.mubr.msk.f32.mxu0 %vm169_vm0, %v70_v52  ;;  %2064 = vmatprep.mubr.msk.f32.mxu1 %vm169_vm0, %v142_v53 }
  0x7b   :  { %1957 = vmatmul.mubr.msk.f32.gmra.mxu0 %vm169_vm0, %v71_v54  ;;  %2065 = vmatmul.mubr.msk.f32.gmra.mxu1 %vm169_vm0, %v143_v55 }
  0x7c   :  { %1959 = vmatprep.mubr.msk.f32.mxu0 %vm169_vm0, %v72_v56  ;;  %2067 = vmatprep.mubr.msk.f32.mxu1 %vm169_vm0, %v144_v57 }
  0x7f   :  { %1960 = vmatmul.mubr.msk.f32.gmra.mxu0 %vm169_vm0, %v73_v58  ;;  %2068 = vmatmul.mubr.msk.f32.gmra.mxu1 %vm169_vm0, %v145_v59 }
  0x80   :  { %1962 = vmatprep.mubr.msk.f32.mxu0 %vm169_vm0, %v74_v60  ;;  %2070 = vmatprep.mubr.msk.f32.mxu1 %vm169_vm0, %v146_v61 }
  0x83   :  { %1963 = vmatmul.mubr.msk.f32.gmra.mxu0 %vm169_vm0, %v75_v62  ;;  %2071 = vmatmul.mubr.msk.f32.gmra.mxu1 %vm169_vm0, %v147_v63 }
  0x84   :  { %1965 = vmatprep.mubr.msk.f32.mxu0 %vm169_vm0, %v76_v0  ;;  %2073 = vmatprep.mubr.msk.f32.mxu1 %vm169_vm0, %v148_v1 }
  0x87   :  { %1966 = vmatmul.mubr.msk.f32.gmra.mxu0 %vm169_vm0, %v77_v2  ;;  %2074 = vmatmul.mubr.msk.f32.gmra.mxu1 %vm169_vm0, %v149_v3 }
  0x88   :  { %1968 = vmatprep.mubr.msk.f32.mxu0 %vm169_vm0, %v78_v4  ;;  %2076 = vmatprep.mubr.msk.f32.mxu1 %vm169_vm0, %v150_v5 }
  0x8b   :  { %1969 = vmatmul.mubr.msk.f32.gmra.mxu0 %vm169_vm0, %v79_v6  ;;  %2077 = vmatmul.mubr.msk.f32.gmra.mxu1 %vm169_vm0, %v151_v7 }
  0x8c   :  { %1971 = vmatprep.mubr.msk.f32.mxu0 %vm169_vm0, %v80_v8  ;;  %2079 = vmatprep.mubr.msk.f32.mxu1 %vm169_vm0, %v152_v9 }
  0x8f   :  { %1972 = vmatmul.mubr.msk.f32.gmra.mxu0 %vm169_vm0, %v81_v10  ;;  %2080 = vmatmul.mubr.msk.f32.gmra.mxu1 %vm169_vm0, %v153_v11 }
  0x90   :  { %1974 = vmatprep.mubr.msk.f32.mxu0 %vm169_vm0, %v82_v12  ;;  %2082 = vmatprep.mubr.msk.f32.mxu1 %vm169_vm0, %v154_v13 }
  0x93   :  { %1975 = vmatmul.mubr.msk.f32.gmra.mxu0 %vm169_vm0, %v83_v14  ;;  %2083 = vmatmul.mubr.msk.f32.gmra.mxu1 %vm169_vm0, %v155_v15 }
  0x94   :  { %1977 = vmatprep.mubr.msk.f32.mxu0 %vm169_vm0, %v84_v16  ;;  %2085 = vmatprep.mubr.msk.f32.mxu1 %vm169_vm0, %v156_v17 }
  0x97   :  { %1978 = vmatmul.mubr.msk.f32.gmra.mxu0 %vm169_vm0, %v85_v18  ;;  %2086 = vmatmul.mubr.msk.f32.gmra.mxu1 %vm169_vm0, %v157_v19 }
  0xcb   :  { %v2704_v20 = vpop.f32.mrf.mxu0  ;;  %v2706_v21 = vpop.f32.mrf.mxu1 }
  0xcd   :  { %v2708_v22 = vpop.f32.mrf.mxu0  ;;  %v2710_v23 = vpop.f32.mrf.mxu1 }
  0xcf   :  { %v2712_v24 = vpop.f32.mrf.mxu0  ;;  %v2714_v25 = vpop.f32.mrf.mxu1 }
  0xd1   :  { %v2716_v26 = vpop.f32.mrf.mxu0  ;;  %v2718_v27 = vpop.f32.mrf.mxu1 }
  0xd3   :  { %v2720_v28 = vpop.f32.mrf.mxu0  ;;  %v2722_v29 = vpop.f32.mrf.mxu1 }
  0xd5   :  { %v2724_v30 = vpop.f32.mrf.mxu0  ;;  %v2726_v31 = vpop.f32.mrf.mxu1 }
  0xd7   :  { %v2728_v32 = vpop.f32.mrf.mxu0  ;;  %v2730_v33 = vpop.f32.mrf.mxu1 }
  0xd9   :  { %v2732_v34 = vpop.f32.mrf.mxu0  ;;  %v2734_v35 = vpop.f32.mrf.mxu1 }
  0xdb   :  { %v2736_v36 = vpop.f32.mrf.mxu0  ;;  %v2738_v37 = vpop.f32.mrf.mxu1 }
  0xdd   :  { %v2740_v38 = vpop.f32.mrf.mxu0  ;;  %v2742_v39 = vpop.f32.mrf.mxu1 }
  0xdf   :  { %v2744_v40 = vpop.f32.mrf.mxu0  ;;  %v2746_v41 = vpop.f32.mrf.mxu1 }
  0xe1   :  { %v2748_v42 = vpop.f32.mrf.mxu0  ;;  %v2750_v43 = vpop.f32.mrf.mxu1 }
  0xe3   :  { %v2752_v44 = vpop.f32.mrf.mxu0  ;;  %v2754_v45 = vpop.f32.mrf.mxu1 }
  0xe5   :  { %v2756_v46 = vpop.f32.mrf.mxu0  ;;  %v2758_v47 = vpop.f32.mrf.mxu1 }
  0xe7   :  { %v2760_v48 = vpop.f32.mrf.mxu0  ;;  %v2762_v49 = vpop.f32.mrf.mxu1 }
  0xe9   :  { %v2764_v50 = vpop.f32.mrf.mxu0  ;;  %v2766_v51 = vpop.f32.mrf.mxu1 }
  0xeb   :  { %v2768_v52 = vpop.f32.mrf.mxu0  ;;  %v2770_v53 = vpop.f32.mrf.mxu1 }
  0xed   :  { %v2772_v54 = vpop.f32.mrf.mxu0  ;;  %v2774_v55 = vpop.f32.mrf.mxu1 }
  0xef   :  { %v2776_v56 = vpop.f32.mrf.mxu0  ;;  %v2778_v57 = vpop.f32.mrf.mxu1 }
  0xf1   :  { %v2780_v58 = vpop.f32.mrf.mxu0  ;;  %v2782_v59 = vpop.f32.mrf.mxu1 }
  0xf3   :  { %v2784_v60 = vpop.f32.mrf.mxu0  ;;  %v2786_v61 = vpop.f32.mrf.mxu1 }
  0xf5   :  { %v2788_v62 = vpop.f32.mrf.mxu0  ;;  %v2790_v63 = vpop.f32.mrf.mxu1 }
  0xf7   :  { %v2792_v0 = vpop.f32.mrf.mxu0  ;;  %v2794_v1 = vpop.f32.mrf.mxu1 }
  0xf9   :  { %v2796_v2 = vpop.f32.mrf.mxu0  ;;  %v2798_v3 = vpop.f32.mrf.mxu1 }
  0xfa   :  { %3217 = vst [vmem:[#allocation2_spill] sm:$0xff] %v2798_v3 }
  0xfb   :  { %v2800_v4 = vpop.f32.mrf.mxu0  ;;  %v2802_v5 = vpop.f32.mrf.mxu1 }
  0xfc   :  { %3218 = vst [vmem:[#allocation3_spill] sm:$0xff] %v2800_v4  ;;  %3219 = vst [vmem:[#allocation4_spill] sm:$0xff] %v2802_v5 }
  0xfd   :  { %v2804_v6 = vpop.f32.mrf.mxu0  ;;  %v2806_v7 = vpop.f32.mrf.mxu1 }
  0xfe   :  { %3220 = vst [vmem:[#allocation5_spill] sm:$0xff] %v2804_v6  ;;  %3221 = vst [vmem:[#allocation6_spill] sm:$0xff] %v2806_v7 }
  0xff   :  { %v2808_v8 = vpop.f32.mrf.mxu0  ;;  %v2810_v9 = vpop.f32.mrf.mxu1 }
 0x100   :  { %3222 = vst [vmem:[#allocation7_spill] sm:$0xff] %v2808_v8  ;;  %3223 = vst [vmem:[#allocation8_spill] sm:$0xff] %v2810_v9 }
 0x101   :  { %v2812_v10 = vpop.f32.mrf.mxu0  ;;  %v2814_v11 = vpop.f32.mrf.mxu1 }
 0x102   :  { %3224 = vst [vmem:[#allocation9_spill] sm:$0xff] %v2812_v10  ;;  %3225 = vst [vmem:[#allocation10_spill] sm:$0xff] %v2814_v11 }
 0x103   :  { %v2816_v12 = vpop.f32.mrf.mxu0  ;;  %v2818_v13 = vpop.f32.mrf.mxu1 }
 0x104   :  { %3226 = vst [vmem:[#allocation11_spill] sm:$0xff] %v2816_v12  ;;  %3227 = vst [vmem:[#allocation12_spill] sm:$0xff] %v2818_v13 }
 0x105   :  { %v2820_v14 = vpop.f32.mrf.mxu0  ;;  %v2822_v15 = vpop.f32.mrf.mxu1 }
 0x106   :  { %3228 = vst [vmem:[#allocation13_spill] sm:$0xff] %v2820_v14  ;;  %3229 = vst [vmem:[#allocation14_spill] sm:$0xff] %v2822_v15 }
 0x107   :  { %v2824_v16 = vpop.f32.mrf.mxu0  ;;  %v2826_v17 = vpop.f32.mrf.mxu1 }
 0x108   :  { %3230 = vst [vmem:[#allocation15_spill] sm:$0xff] %v2824_v16  ;;  %3231 = vst [vmem:[#allocation16_spill] sm:$0xff] %v2826_v17  ;;  %v2847_v17 = vld [vmem:[%s3215_s2] ss:$0 sm:$0xff] }
 0x109   :  { %v2828_v18 = vpop.f32.mrf.mxu0  ;;  %v2830_v19 = vpop.f32.mrf.mxu1 }
 0x10a   :  { %3232 = vst [vmem:[#allocation17_spill] sm:$0xff] %v2828_v18  ;;  %3233 = vst [vmem:[#allocation18_spill] sm:$0xff] %v2830_v19 }
 0x10b   :  { %v2832_v9 = vpop.f32.mrf.mxu0  ;;  %v2834_v10 = vpop.f32.mrf.mxu1 }
 0x10c   :  { %3234 = vst [vmem:[#allocation19_spill] sm:$0xff] %v2832_v9  ;;  %3235 = vst [vmem:[#allocation20_spill] sm:$0xff] %v2834_v10  ;;  %v669_v10 = vadd.f32 %v2847_v17, %v2708_v22 }
 0x10d   :  { %v2836_v11 = vpop.f32.mrf.mxu0  ;;  %v2838_v12 = vpop.f32.mrf.mxu1 }
 0x10e   :  { %3236 = vst [vmem:[#allocation21_spill] sm:$0xff] %v2836_v11  ;;  %3237 = vst [vmem:[#allocation22_spill] sm:$0xff] %v2838_v12  ;;  %v674_v11 = vadd.f32 %v2704_v20, %v2847_v17  ;;  %v1034_v12 = vadd.f32 %v2706_v21, %v2847_v17  ;;  %v684_v21 = vadd.f32 %v2712_v24, %v2847_v17 }
 0x10f   :  { %v2840_v13 = vpop.f32.mrf.mxu0  ;;  %v2842_v14 = vpop.f32.mrf.mxu1 }
 0x110   :  { %3238 = vst [vmem:[#allocation23_spill] sm:$0xff] %v2840_v13  ;;  %3239 = vst [vmem:[#allocation24_spill] sm:$0xff] %v2842_v14 }
 0x111   :  { %v2849_v18 = vpop.f32.mrf.mxu0  ;;  %v2851_v19 = vpop.f32.mrf.mxu1 }
 0x112   :  { %3240 = vst [vmem:[#allocation25_spill] sm:$0xff] %v2849_v18  ;;  %3241 = vst [vmem:[#allocation26_spill] sm:$0xff] %v2851_v19  ;;  %v1029_v18 = vadd.f32 %v2847_v17, %v2710_v23  ;;  %v1044_v23 = vadd.f32 %v2714_v25, %v2847_v17  ;;  %v1054_v25 = vadd.f32 %v2722_v29, %v2847_v17 }
 0x113   :  { %v1928_v9 = vpop.f32.mrf.mxu0  ;;  %v2036_v16 = vpop.f32.mrf.mxu1  ;;  %v1049_v29 = vadd.f32 %v2847_v17, %v2726_v31  ;;  %v1064_v31 = vadd.f32 %v2730_v33, %v2847_v17 }
 0x114   :  { %v854_v13 = vadd.f32 %v1928_v9, %v2847_v17  ;;  %v1214_v14 = vadd.f32 %v2036_v16, %v2847_v17 }
 0x115   :  { %v848_v15 = vpop.f32.mrf.mxu0  ;;  %v1208_v19 = vpop.f32.mrf.mxu1 }
 0x116   :  { %v1388_v8 = vmax.f32 %v674_v11, %v854_v13  ;;  %v1424_v7 = vmax.f32 %v1034_v12, %v1214_v14  ;;  %v849_v6 = vadd.f32 %v2847_v17, %v848_v15  ;;  %v1209_v20 = vadd.f32 %v2847_v17, %v1208_v19 }
 0x117   :  { %v1931_v9 = vpop.f32.mrf.mxu0  ;;  %v2039_v5 = vpop.f32.mrf.mxu1  ;;  %v679_v11 = vadd.f32 %v2847_v17, %v2716_v26  ;;  %v1039_v12 = vadd.f32 %v2847_v17, %v2718_v27 }
 0x118   :  { %v1460_v16 = vmax.f32 %v1388_v8, %v1424_v7  ;;  %v1387_v4 = vmax.f32 %v669_v10, %v849_v6  ;;  %v1423_v3 = vmax.f32 %v1029_v18, %v1209_v20  ;;  %v864_v22 = vadd.f32 %v1931_v9, %v2847_v17 }
 0x119   :  { %v1224_v13 = vadd.f32 %v2039_v5, %v2847_v17  ;;  %v858_v14 = vpop.f32.mrf.mxu0  ;;  %v1218_v24 = vpop.f32.mrf.mxu1  ;;  %v694_v8 = vadd.f32 %v2720_v28, %v2847_v17  ;;  %v689_v28 = vadd.f32 %v2847_v17, %v2724_v30  ;;  %v704_v30 = vadd.f32 %v2728_v32, %v2847_v17 }
 0x11a   :  { %v1496_v15 = vmax.f32 %v1460_v16, 0.0  ;;  %v1459_v19 = vmax.f32 %v1387_v4, %v1423_v3  ;;  %v1390_v7 = vmax.f32 %v684_v21, %v864_v22  ;;  %v859_v6 = vadd.f32 %v2847_v17, %v858_v14 }
 0x11b   :  { %v1426_v10 = vmax.f32 %v1044_v23, %v1224_v13  ;;  %v1219_v26 = vadd.f32 %v2847_v17, %v1218_v24  ;;  %v1934_v18 = vpop.f32.mrf.mxu0  ;;  %v2042_v27 = vpop.f32.mrf.mxu1 }
 0x11c   :  { %1532 = vst.msk [vmem:[%s3216_s3 + $0x8] sm:$0xff] %vm169_vm0, %v1496_v15  ;;  %v1495_v3 = vmax.f32 %v1459_v19, 0.0  ;;  %v1389_v4 = vmax.f32 %v679_v11, %v859_v6  ;;  %v874_v5 = vadd.f32 %v1934_v18, %v2847_v17  ;;  %v1234_v20 = vadd.f32 %v2042_v27, %v2847_v17 }
 0x11d   :  { %v1462_v21 = vmax.f32 %v1390_v7, %v1426_v10  ;;  %v1425_v9 = vmax.f32 %v1039_v12, %v1219_v26  ;;  %v868_v16 = vpop.f32.mrf.mxu0  ;;  %v1228_v22 = vpop.f32.mrf.mxu1  ;;  %v1059_v26 = vadd.f32 %v2847_v17, %v2734_v35  ;;  %v1074_v35 = vadd.f32 %v2738_v37, %v2847_v17 }
 0x11e   :  { %1531 = vst.msk [vmem:[%s3216_s3] sm:$0xff] %vm169_vm0, %v1495_v3  ;;  %v1392_v23 = vmax.f32 %v694_v8, %v874_v5  ;;  %v1428_v11 = vmax.f32 %v1054_v25, %v1234_v20  ;;  %v869_v13 = vadd.f32 %v2847_v17, %v868_v16  ;;  %v1229_v14 = vadd.f32 %v2847_v17, %v1228_v22 }
 0x11f   :  { %v1498_v12 = vmax.f32 %v1462_v21, 0.0  ;;  %v1461_v24 = vmax.f32 %v1389_v4, %v1425_v9  ;;  %v1937_v15 = vpop.f32.mrf.mxu0  ;;  %v2045_v19 = vpop.f32.mrf.mxu1  ;;  %v699_v25 = vadd.f32 %v2847_v17, %v2732_v34  ;;  %v714_v34 = vadd.f32 %v2736_v36, %v2847_v17 }
 0x120   :  { %v1464_v7 = vmax.f32 %v1392_v23, %v1428_v11  ;;  %v1391_v6 = vmax.f32 %v689_v28, %v869_v13  ;;  %v1427_v10 = vmax.f32 %v1049_v29, %v1229_v14  ;;  %v884_v8 = vadd.f32 %v1937_v15, %v2847_v17 }
 0x121   :  { %1534 = vst.msk [vmem:[%s3216_s3 + $0x18] sm:$0xff] %vm169_vm0, %v1498_v12  ;;  %v1497_v32 = vmax.f32 %v1461_v24, 0.0  ;;  %v1244_v33 = vadd.f32 %v2045_v19, %v2847_v17  ;;  %v878_v18 = vpop.f32.mrf.mxu0  ;;  %v1238_v27 = vpop.f32.mrf.mxu1  ;;  %v709_v23 = vadd.f32 %v2847_v17, %v2740_v38  ;;  %v1069_v11 = vadd.f32 %v2847_v17, %v2742_v39 }
 0x122   :  { %v1500_v3 = vmax.f32 %v1464_v7, 0.0  ;;  %v1463_v4 = vmax.f32 %v1391_v6, %v1427_v10  ;;  %v1394_v5 = vmax.f32 %v704_v30, %v884_v8  ;;  %v879_v20 = vadd.f32 %v2847_v17, %v878_v18 }
 0x123   :  { %1533 = vst.msk [vmem:[%s3216_s3 + $0x10] sm:$0xff] %vm169_vm0, %v1497_v32  ;;  %v1430_v28 = vmax.f32 %v1064_v31, %v1244_v33  ;;  %v1239_v29 = vadd.f32 %v2847_v17, %v1238_v27  ;;  %v1940_v21 = vpop.f32.mrf.mxu0  ;;  %v2048_v9 = vpop.f32.mrf.mxu1  ;;  %v724_v38 = vadd.f32 %v2744_v40, %v2847_v17  ;;  %v1084_v39 = vadd.f32 %v2746_v41, %v2847_v17 }
 0x124   :  { %1536 = vst.msk [vmem:[%s3216_s3 + $0x28] sm:$0xff] %vm169_vm0, %v1500_v3  ;;  %v1499_v16 = vmax.f32 %v1463_v4, 0.0  ;;  %v1393_v36 = vmax.f32 %v699_v25, %v879_v20  ;;  %v894_v22 = vadd.f32 %v1940_v21, %v2847_v17  ;;  %v1254_v37 = vadd.f32 %v2048_v9, %v2847_v17 }
 0x125   :  { %v1466_v13 = vmax.f32 %v1394_v5, %v1430_v28  ;;  %v1429_v14 = vmax.f32 %v1059_v26, %v1239_v29  ;;  %v888_v30 = vpop.f32.mrf.mxu0  ;;  %v1248_v31 = vpop.f32.mrf.mxu1  ;;  %v719_v18 = vadd.f32 %v2847_v17, %v2748_v42  ;;  %v1079_v27 = vadd.f32 %v2847_v17, %v2750_v43 }
 0x126   :  { %1535 = vst.msk [vmem:[%s3216_s3 + $0x20] sm:$0xff] %vm169_vm0, %v1499_v16  ;;  %v1396_v12 = vmax.f32 %v714_v34, %v894_v22  ;;  %v1432_v24 = vmax.f32 %v1074_v35, %v1254_v37  ;;  %v889_v15 = vadd.f32 %v2847_v17, %v888_v30  ;;  %v1249_v19 = vadd.f32 %v2847_v17, %v1248_v31 }
 0x127   :  { %v1502_v7 = vmax.f32 %v1466_v13, 0.0  ;;  %v1465_v6 = vmax.f32 %v1393_v36, %v1429_v14  ;;  %v1943_v10 = vpop.f32.mrf.mxu0  ;;  %v2051_v8 = vpop.f32.mrf.mxu1  ;;  %v734_v42 = vadd.f32 %v2752_v44, %v2847_v17  ;;  %v1094_v43 = vadd.f32 %v2754_v45, %v2847_v17 }
 0x128   :  { %v1468_v25 = vmax.f32 %v1396_v12, %v1432_v24  ;;  %v1395_v26 = vmax.f32 %v709_v23, %v889_v15  ;;  %v1431_v32 = vmax.f32 %v1069_v11, %v1249_v19  ;;  %v904_v33 = vadd.f32 %v1943_v10, %v2847_v17 }
 0x129   :  { %1538 = vst.msk [vmem:[%s3216_s3 + $0x38] sm:$0xff] %vm169_vm0, %v1502_v7  ;;  %v1501_v40 = vmax.f32 %v1465_v6, 0.0  ;;  %v1264_v41 = vadd.f32 %v2051_v8, %v2847_v17  ;;  %v898_v3 = vpop.f32.mrf.mxu0  ;;  %v1258_v4 = vpop.f32.mrf.mxu1  ;;  %v729_v22 = vadd.f32 %v2847_v17, %v2756_v46  ;;  %v1089_v37 = vadd.f32 %v2847_v17, %v2758_v47 }
 0x12a   :  { %v1504_v5 = vmax.f32 %v1468_v25, 0.0  ;;  %v1467_v20 = vmax.f32 %v1395_v26, %v1431_v32  ;;  %v1398_v34 = vmax.f32 %v724_v38, %v904_v33  ;;  %v899_v35 = vadd.f32 %v2847_v17, %v898_v3 }
 0x12b   :  { %1537 = vst.msk [vmem:[%s3216_s3 + $0x30] sm:$0xff] %vm169_vm0, %v1501_v40  ;;  %v1434_v28 = vmax.f32 %v1084_v39, %v1264_v41  ;;  %v1259_v29 = vadd.f32 %v2847_v17, %v1258_v4  ;;  %v1946_v21 = vpop.f32.mrf.mxu0  ;;  %v2054_v9 = vpop.f32.mrf.mxu1  ;;  %v744_v46 = vadd.f32 %v2760_v48, %v2847_v17  ;;  %v1104_v47 = vadd.f32 %v2762_v49, %v2847_v17 }
 0x12c   :  { %1540 = vst.msk [vmem:[%s3216_s3 + $0x48] sm:$0xff] %vm169_vm0, %v1504_v5  ;;  %v1503_v16 = vmax.f32 %v1467_v20, 0.0  ;;  %v1397_v44 = vmax.f32 %v719_v18, %v899_v35  ;;  %v914_v36 = vadd.f32 %v1946_v21, %v2847_v17  ;;  %v1274_v45 = vadd.f32 %v2054_v9, %v2847_v17 }
 0x12d   :  { %v1470_v23 = vmax.f32 %v1398_v34, %v1434_v28  ;;  %v1433_v11 = vmax.f32 %v1079_v27, %v1259_v29  ;;  %v908_v13 = vpop.f32.mrf.mxu0  ;;  %v1268_v14 = vpop.f32.mrf.mxu1  ;;  %v739_v25 = vadd.f32 %v2847_v17, %v2764_v50  ;;  %v1099_v26 = vadd.f32 %v2847_v17, %v2766_v51 }
 0x12e   :  { %1539 = vst.msk [vmem:[%s3216_s3 + $0x40] sm:$0xff] %vm169_vm0, %v1503_v16  ;;  %v1400_v30 = vmax.f32 %v734_v42, %v914_v36  ;;  %v1436_v31 = vmax.f32 %v1094_v43, %v1274_v45  ;;  %v909_v12 = vadd.f32 %v2847_v17, %v908_v13  ;;  %v1269_v24 = vadd.f32 %v2847_v17, %v1268_v14 }
 0x12f   :  { %v1506_v15 = vmax.f32 %v1470_v23, 0.0  ;;  %v1469_v19 = vmax.f32 %v1397_v44, %v1433_v11  ;;  %v1949_v38 = vpop.f32.mrf.mxu0  ;;  %v2057_v39 = vpop.f32.mrf.mxu1  ;;  %v754_v50 = vadd.f32 %v2768_v52, %v2847_v17  ;;  %v1114_v51 = vadd.f32 %v2770_v53, %v2847_v17 }
 0x130   :  { %v1472_v7 = vmax.f32 %v1400_v30, %v1436_v31  ;;  %v1399_v6 = vmax.f32 %v729_v22, %v909_v12  ;;  %v1435_v10 = vmax.f32 %v1089_v37, %v1269_v24  ;;  %v924_v8 = vadd.f32 %v1949_v38, %v2847_v17 }
 0x131   :  { %1542 = vst.msk [vmem:[%s3216_s3 + $0x58] sm:$0xff] %vm169_vm0, %v1506_v15  ;;  %v1505_v48 = vmax.f32 %v1469_v19, 0.0  ;;  %v1284_v49 = vadd.f32 %v2057_v39, %v2847_v17  ;;  %v918_v32 = vpop.f32.mrf.mxu0  ;;  %v1278_v33 = vpop.f32.mrf.mxu1  ;;  %v749_v42 = vadd.f32 %v2847_v17, %v2772_v54  ;;  %v1109_v43 = vadd.f32 %v2847_v17, %v2774_v55 }
 0x132   :  { %v1508_v18 = vmax.f32 %v1472_v7, 0.0  ;;  %v1471_v27 = vmax.f32 %v1399_v6, %v1435_v10  ;;  %v1402_v40 = vmax.f32 %v744_v46, %v924_v8  ;;  %v919_v41 = vadd.f32 %v2847_v17, %v918_v32 }
 0x133   :  { %1541 = vst.msk [vmem:[%s3216_s3 + $0x50] sm:$0xff] %vm169_vm0, %v1505_v48  ;;  %v1438_v3 = vmax.f32 %v1104_v47, %v1284_v49  ;;  %v1279_v4 = vadd.f32 %v2847_v17, %v1278_v33  ;;  %v1952_v5 = vpop.f32.mrf.mxu0  ;;  %v2060_v20 = vpop.f32.mrf.mxu1  ;;  %v764_v54 = vadd.f32 %v2776_v56, %v2847_v17  ;;  %v1124_v55 = vadd.f32 %v2778_v57, %v2847_v17 }
 0x134   :  { %1544 = vst.msk [vmem:[%s3216_s3 + $0x68] sm:$0xff] %vm169_vm0, %v1508_v18  ;;  %v1507_v34 = vmax.f32 %v1471_v27, 0.0  ;;  %v1401_v52 = vmax.f32 %v739_v25, %v919_v41  ;;  %v934_v35 = vadd.f32 %v1952_v5, %v2847_v17  ;;  %v1294_v53 = vadd.f32 %v2060_v20, %v2847_v17 }
 0x135   :  { %v1474_v28 = vmax.f32 %v1402_v40, %v1438_v3  ;;  %v1437_v29 = vmax.f32 %v1099_v26, %v1279_v4  ;;  %v928_v21 = vpop.f32.mrf.mxu0  ;;  %v1288_v9 = vpop.f32.mrf.mxu1  ;;  %v759_v12 = vadd.f32 %v2847_v17, %v2780_v58  ;;  %v1119_v24 = vadd.f32 %v2847_v17, %v2782_v59 }
 0x136   :  { %1543 = vst.msk [vmem:[%s3216_s3 + $0x60] sm:$0xff] %vm169_vm0, %v1507_v34  ;;  %v1404_v16 = vmax.f32 %v754_v50, %v934_v35  ;;  %v1440_v44 = vmax.f32 %v1114_v51, %v1294_v53  ;;  %v929_v36 = vadd.f32 %v2847_v17, %v928_v21  ;;  %v1289_v45 = vadd.f32 %v2847_v17, %v1288_v9 }
 0x137   :  { %v1510_v22 = vmax.f32 %v1474_v28, 0.0  ;;  %v1473_v37 = vmax.f32 %v1401_v52, %v1437_v29  ;;  %v1955_v23 = vpop.f32.mrf.mxu0  ;;  %v2063_v11 = vpop.f32.mrf.mxu1  ;;  %v774_v58 = vadd.f32 %v2784_v60, %v2847_v17  ;;  %v1134_v59 = vadd.f32 %v2786_v61, %v2847_v17 }
 0x138   :  { %v1476_v13 = vmax.f32 %v1404_v16, %v1440_v44  ;;  %v1403_v14 = vmax.f32 %v749_v42, %v929_v36  ;;  %v1439_v30 = vmax.f32 %v1109_v43, %v1289_v45  ;;  %v944_v31 = vadd.f32 %v1955_v23, %v2847_v17  ;;  %v3242_v43 = vld [vmem:[#allocation2_spill] sm:$0xff] }
 0x139   :  { %1546 = vst.msk [vmem:[%s3216_s3 + $0x78] sm:$0xff] %vm169_vm0, %v1510_v22  ;;  %v1509_v56 = vmax.f32 %v1473_v37, 0.0  ;;  %v1304_v57 = vadd.f32 %v2063_v11, %v2847_v17  ;;  %v938_v46 = vpop.f32.mrf.mxu0  ;;  %v1298_v47 = vpop.f32.mrf.mxu1  ;;  %v769_v48 = vadd.f32 %v2847_v17, %v2788_v62  ;;  %v1129_v49 = vadd.f32 %v2847_v17, %v2790_v63 }
 0x13a   :  { %v1512_v15 = vmax.f32 %v1476_v13, 0.0  ;;  %v1475_v19 = vmax.f32 %v1403_v14, %v1439_v30  ;;  %v1406_v38 = vmax.f32 %v764_v54, %v944_v31  ;;  %v939_v39 = vadd.f32 %v2847_v17, %v938_v46  ;;  %v3244_v54 = vld [vmem:[#allocation4_spill] sm:$0xff] }
 0x13b   :  { %1545 = vst.msk [vmem:[%s3216_s3 + $0x70] sm:$0xff] %vm169_vm0, %v1509_v56  ;;  %v1442_v7 = vmax.f32 %v1124_v55, %v1304_v57  ;;  %v1299_v6 = vadd.f32 %v2847_v17, %v1298_v47  ;;  %v1958_v10 = vpop.f32.mrf.mxu0  ;;  %v2066_v8 = vpop.f32.mrf.mxu1  ;;  %v784_v62 = vadd.f32 %v2792_v0, %v2847_v17  ;;  %v1144_v63 = vadd.f32 %v2794_v1, %v2847_v17  ;;  %v3246_v56 = vld [vmem:[#allocation6_spill] sm:$0xff] }
 0x13c   :  { %1548 = vst.msk [vmem:[%s3216_s3 + $0x88] sm:$0xff] %vm169_vm0, %v1512_v15  ;;  %v1511_v25 = vmax.f32 %v1475_v19, 0.0  ;;  %v1405_v60 = vmax.f32 %v759_v12, %v939_v39  ;;  %v954_v26 = vadd.f32 %v1958_v10, %v2847_v17  ;;  %v1314_v61 = vadd.f32 %v2066_v8, %v2847_v17  ;;  %v3245_v12 = vld [vmem:[#allocation5_spill] sm:$0xff]  ;;  %v3248_v10 = vld [vmem:[#allocation8_spill] sm:$0xff] }
 0x13d   :  { %v1478_v32 = vmax.f32 %v1406_v38, %v1442_v7  ;;  %v1441_v33 = vmax.f32 %v1119_v24, %v1299_v6  ;;  %v948_v18 = vpop.f32.mrf.mxu0  ;;  %v1308_v27 = vpop.f32.mrf.mxu1  ;;  %v779_v42 = vadd.f32 %v2847_v17, %v2796_v2  ;;  %v1139_v28 = vadd.f32 %v2847_v17, %v3242_v43  ;;  %v3243_v2 = vld [vmem:[#allocation3_spill] sm:$0xff] }
 0x13e   :  { %1547 = vst.msk [vmem:[%s3216_s3 + $0x80] sm:$0xff] %vm169_vm0, %v1511_v25  ;;  %v1408_v40 = vmax.f32 %v774_v58, %v954_v26  ;;  %v1444_v41 = vmax.f32 %v1134_v59, %v1314_v61  ;;  %v949_v50 = vadd.f32 %v2847_v17, %v948_v18  ;;  %v1309_v51 = vadd.f32 %v2847_v17, %v1308_v27  ;;  %v3247_v7 = vld [vmem:[#allocation7_spill] sm:$0xff]  ;;  %v3249_v18 = vld [vmem:[#allocation9_spill] sm:$0xff] }
 0x13f   :  { %v1514_v3 = vmax.f32 %v1478_v32, 0.0  ;;  %v1477_v4 = vmax.f32 %v1405_v60, %v1441_v33  ;;  %v1961_v5 = vpop.f32.mrf.mxu0  ;;  %v2069_v20 = vpop.f32.mrf.mxu1  ;;  %v794_v45 = vadd.f32 %v3243_v2, %v2847_v17  ;;  %v1154_v55 = vadd.f32 %v3244_v54, %v2847_v17 }
 0x140   :  { %v1480_v34 = vmax.f32 %v1408_v40, %v1444_v41  ;;  %v1407_v52 = vmax.f32 %v769_v48, %v949_v50  ;;  %v1443_v35 = vmax.f32 %v1129_v49, %v1309_v51  ;;  %v964_v53 = vadd.f32 %v1961_v5, %v2847_v17  ;;  %v3250_v40 = vld [vmem:[#allocation10_spill] sm:$0xff] }
 0x141   :  { %1550 = vst.msk [vmem:[%s3216_s3 + $0x98] sm:$0xff] %vm169_vm0, %v1514_v3  ;;  %v1513_v0 = vmax.f32 %v1477_v4, 0.0  ;;  %v1324_v1 = vadd.f32 %v2069_v20, %v2847_v17  ;;  %v958_v29 = vpop.f32.mrf.mxu0  ;;  %v1318_v21 = vpop.f32.mrf.mxu1  ;;  %v789_v24 = vadd.f32 %v2847_v17, %v3245_v12  ;;  %v1149_v57 = vadd.f32 %v2847_v17, %v3246_v56 }
 0x142   :  { %v1516_v9 = vmax.f32 %v1480_v34, 0.0  ;;  %v1479_v16 = vmax.f32 %v1407_v52, %v1443_v35  ;;  %v1410_v44 = vmax.f32 %v784_v62, %v964_v53  ;;  %v959_v36 = vadd.f32 %v2847_v17, %v958_v29  ;;  %v3251_v34 = vld [vmem:[#allocation11_spill] sm:$0xff]  ;;  %v3252_v35 = vld [vmem:[#allocation12_spill] sm:$0xff] }
 0x143   :  { %1549 = vst.msk [vmem:[%s3216_s3 + $0x90] sm:$0xff] %vm169_vm0, %v1513_v0  ;;  %v1446_v22 = vmax.f32 %v1144_v63, %v1324_v1  ;;  %v1319_v37 = vadd.f32 %v2847_v17, %v1318_v21  ;;  %v1964_v23 = vpop.f32.mrf.mxu0  ;;  %v2072_v11 = vpop.f32.mrf.mxu1  ;;  %v804_v6 = vadd.f32 %v3247_v7, %v2847_v17  ;;  %v1164_v8 = vadd.f32 %v3248_v10, %v2847_v17 }
 0x144   :  { %1552 = vst.msk [vmem:[%s3216_s3 + $0xa8] sm:$0xff] %vm169_vm0, %v1516_v9  ;;  %v1515_v13 = vmax.f32 %v1479_v16, 0.0  ;;  %v1409_v14 = vmax.f32 %v779_v42, %v959_v36  ;;  %v974_v30 = vadd.f32 %v1964_v23, %v2847_v17  ;;  %v1334_v31 = vadd.f32 %v2072_v11, %v2847_v17  ;;  %v3253_v16 = vld [vmem:[#allocation13_spill] sm:$0xff]  ;;  %v3254_v36 = vld [vmem:[#allocation14_spill] sm:$0xff] }
 0x145   :  { %v1482_v46 = vmax.f32 %v1410_v44, %v1446_v22  ;;  %v1445_v47 = vmax.f32 %v1139_v28, %v1319_v37  ;;  %v968_v15 = vpop.f32.mrf.mxu0  ;;  %v1328_v19 = vpop.f32.mrf.mxu1  ;;  %v799_v27 = vadd.f32 %v2847_v17, %v3249_v18  ;;  %v1159_v41 = vadd.f32 %v2847_v17, %v3250_v40 }
 0x146   :  { %1551 = vst.msk [vmem:[%s3216_s3 + $0xa0] sm:$0xff] %vm169_vm0, %v1515_v13  ;;  %v1412_v38 = vmax.f32 %v794_v45, %v974_v30  ;;  %v1448_v39 = vmax.f32 %v1154_v55, %v1334_v31  ;;  %v969_v58 = vadd.f32 %v2847_v17, %v968_v15  ;;  %v1329_v59 = vadd.f32 %v2847_v17, %v1328_v19  ;;  %v3256_v31 = vld [vmem:[#allocation16_spill] sm:$0xff] }
 0x147   :  { %v1518_v25 = vmax.f32 %v1482_v46, 0.0  ;;  %v1481_v60 = vmax.f32 %v1409_v14, %v1445_v47  ;;  %v1967_v26 = vpop.f32.mrf.mxu0  ;;  %v2075_v61 = vpop.f32.mrf.mxu1  ;;  %v814_v52 = vadd.f32 %v3251_v34, %v2847_v17  ;;  %v1174_v53 = vadd.f32 %v3252_v35, %v2847_v17  ;;  %v3255_v14 = vld [vmem:[#allocation15_spill] sm:$0xff] }
 0x148   :  { %v1484_v48 = vmax.f32 %v1412_v38, %v1448_v39  ;;  %v1411_v49 = vmax.f32 %v789_v24, %v969_v58  ;;  %v1447_v32 = vmax.f32 %v1149_v57, %v1329_v59  ;;  %v984_v33 = vadd.f32 %v1967_v26, %v2847_v17  ;;  %v3257_v39 = vld [vmem:[#allocation17_spill] sm:$0xff]  ;;  %v3258_v59 = vld [vmem:[#allocation18_spill] sm:$0xff] }
 0x149   :  { %1554 = vst.msk [vmem:[%s3216_s3 + $0xb8] sm:$0xff] %vm169_vm0, %v1518_v25  ;;  %v1517_v50 = vmax.f32 %v1481_v60, 0.0  ;;  %v1344_v51 = vadd.f32 %v2075_v61, %v2847_v17  ;;  %v978_v62 = vpop.f32.mrf.mxu0  ;;  %v1338_v63 = vpop.f32.mrf.mxu1  ;;  %v809_v44 = vadd.f32 %v2847_v17, %v3253_v16  ;;  %v1169_v2 = vadd.f32 %v2847_v17, %v3254_v36 }
 0x14a   :  { %v1520_v3 = vmax.f32 %v1484_v48, 0.0  ;;  %v1483_v4 = vmax.f32 %v1411_v49, %v1447_v32  ;;  %v1414_v5 = vmax.f32 %v804_v6, %v984_v33  ;;  %v979_v20 = vadd.f32 %v2847_v17, %v978_v62  ;;  %v3259_v49 = vld [vmem:[#allocation19_spill] sm:$0xff]  ;;  %v3260_v33 = vld [vmem:[#allocation20_spill] sm:$0xff] }
 0x14b   :  { %1553 = vst.msk [vmem:[%s3216_s3 + $0xb0] sm:$0xff] %vm169_vm0, %v1517_v50  ;;  %v1450_v42 = vmax.f32 %v1164_v8, %v1344_v51  ;;  %v1339_v43 = vadd.f32 %v2847_v17, %v1338_v63  ;;  %v1970_v28 = vpop.f32.mrf.mxu0  ;;  %v2078_v0 = vpop.f32.mrf.mxu1  ;;  %v824_v30 = vadd.f32 %v3255_v14, %v2847_v17  ;;  %v1184_v12 = vadd.f32 %v3256_v31, %v2847_v17 }
 0x14c   :  { %1556 = vst.msk [vmem:[%s3216_s3 + $0xc8] sm:$0xff] %vm169_vm0, %v1520_v3  ;;  %v1519_v1 = vmax.f32 %v1483_v4, 0.0  ;;  %v1413_v29 = vmax.f32 %v799_v27, %v979_v20  ;;  %v994_v21 = vadd.f32 %v1970_v28, %v2847_v17  ;;  %v1354_v9 = vadd.f32 %v2078_v0, %v2847_v17  ;;  %v3261_v4 = vld [vmem:[#allocation21_spill] sm:$0xff]  ;;  %v3262_v20 = vld [vmem:[#allocation22_spill] sm:$0xff] }
 0x14d   :  { %v1486_v45 = vmax.f32 %v1414_v5, %v1450_v42  ;;  %v1449_v54 = vmax.f32 %v1159_v41, %v1339_v43  ;;  %v988_v55 = vpop.f32.mrf.mxu0  ;;  %v1348_v22 = vpop.f32.mrf.mxu1  ;;  %v819_v58 = vadd.f32 %v2847_v17, %v3257_v39  ;;  %v1179_v7 = vadd.f32 %v2847_v17, %v3258_v59 }
 0x14e   :  { %1555 = vst.msk [vmem:[%s3216_s3 + $0xc0] sm:$0xff] %vm169_vm0, %v1519_v1  ;;  %v1416_v37 = vmax.f32 %v814_v52, %v994_v21  ;;  %v1452_v23 = vmax.f32 %v1174_v53, %v1354_v9  ;;  %v989_v11 = vadd.f32 %v2847_v17, %v988_v55  ;;  %v1349_v13 = vadd.f32 %v2847_v17, %v1348_v22  ;;  %v3264_v22 = vld [vmem:[#allocation24_spill] sm:$0xff] }
 0x14f   :  { %v1522_v24 = vmax.f32 %v1486_v45, 0.0  ;;  %v1485_v56 = vmax.f32 %v1413_v29, %v1449_v54  ;;  %v1973_v57 = vpop.f32.mrf.mxu0  ;;  %v2081_v46 = vpop.f32.mrf.mxu1  ;;  %v834_v32 = vadd.f32 %v3259_v49, %v2847_v17  ;;  %v1194_v18 = vadd.f32 %v3260_v33, %v2847_v17  ;;  %v3263_v29 = vld [vmem:[#allocation23_spill] sm:$0xff] }
 0x150   :  { %v1488_v47 = vmax.f32 %v1416_v37, %v1452_v23  ;;  %v1415_v15 = vmax.f32 %v809_v44, %v989_v11  ;;  %v1451_v19 = vmax.f32 %v1169_v2, %v1349_v13  ;;  %v1004_v38 = vadd.f32 %v1973_v57, %v2847_v17  ;;  %v3265_v23 = vld [vmem:[#allocation25_spill] sm:$0xff] }
 0x151   :  { %1558 = vst.msk [vmem:[%s3216_s3 + $0xd8] sm:$0xff] %vm169_vm0, %v1522_v24  ;;  %v1521_v6 = vmax.f32 %v1485_v56, 0.0  ;;  %v1364_v10 = vadd.f32 %v2081_v46, %v2847_v17  ;;  %v998_v8 = vpop.f32.mrf.mxu0  ;;  %v1358_v25 = vpop.f32.mrf.mxu1  ;;  %v829_v5 = vadd.f32 %v2847_v17, %v3261_v4  ;;  %v1189_v34 = vadd.f32 %v2847_v17, %v3262_v20  ;;  %v3266_v46 = vld [vmem:[#allocation26_spill] sm:$0xff] }
 0x152   :  { %v1524_v60 = vmax.f32 %v1488_v47, 0.0  ;;  %v1487_v26 = vmax.f32 %v1415_v15, %v1451_v19  ;;  %v1418_v61 = vmax.f32 %v824_v30, %v1004_v38  ;;  %v999_v48 = vadd.f32 %v2847_v17, %v998_v8 }
 0x153   :  { %1557 = vst.msk [vmem:[%s3216_s3 + $0xd0] sm:$0xff] %vm169_vm0, %v1521_v6  ;;  %v1454_v27 = vmax.f32 %v1184_v12, %v1364_v10  ;;  %v1359_v40 = vadd.f32 %v2847_v17, %v1358_v25  ;;  %v1976_v41 = vpop.f32.mrf.mxu0  ;;  %v2084_v50 = vpop.f32.mrf.mxu1  ;;  %v844_v21 = vadd.f32 %v3263_v29, %v2847_v17  ;;  %v1204_v37 = vadd.f32 %v3264_v22, %v2847_v17 }
 0x154   :  { %1560 = vst.msk [vmem:[%s3216_s3 + $0xe8] sm:$0xff] %vm169_vm0, %v1524_v60  ;;  %v1523_v51 = vmax.f32 %v1487_v26, 0.0  ;;  %v1417_v62 = vmax.f32 %v819_v58, %v999_v48  ;;  %v1014_v63 = vadd.f32 %v1976_v41, %v2847_v17  ;;  %v1374_v3 = vadd.f32 %v2084_v50, %v2847_v17 }
 0x155   :  { %v1490_v52 = vmax.f32 %v1418_v61, %v1454_v27  ;;  %v1453_v35 = vmax.f32 %v1179_v7, %v1359_v40  ;;  %v1008_v53 = vpop.f32.mrf.mxu0  ;;  %v1368_v42 = vpop.f32.mrf.mxu1  ;;  %v839_v11 = vadd.f32 %v2847_v17, %v3265_v23  ;;  %v1199_v47 = vadd.f32 %v2847_v17, %v3266_v46 }
 0x156   :  { %1559 = vst.msk [vmem:[%s3216_s3 + $0xe0] sm:$0xff] %vm169_vm0, %v1523_v51  ;;  %v1420_v43 = vmax.f32 %v834_v32, %v1014_v63  ;;  %v1456_v28 = vmax.f32 %v1194_v18, %v1374_v3  ;;  %v1009_v0 = vadd.f32 %v2847_v17, %v1008_v53  ;;  %v1369_v1 = vadd.f32 %v2847_v17, %v1368_v42 }
 0x157   :  { %v1526_v9 = vmax.f32 %v1490_v52, 0.0  ;;  %v1489_v16 = vmax.f32 %v1417_v62, %v1453_v35  ;;  %v1979_v44 = vpop.f32.mrf.mxu0  ;;  %v2087_v36 = vpop.f32.mrf.mxu1 }
 0x158   :  { %v1492_v2 = vmax.f32 %v1420_v43, %v1456_v28  ;;  %v1419_v45 = vmax.f32 %v829_v5, %v1009_v0  ;;  %v1455_v54 = vmax.f32 %v1189_v34, %v1369_v1  ;;  %v1024_v55 = vadd.f32 %v1979_v44, %v2847_v17 }
 0x159   :  { %1562 = vst.msk [vmem:[%s3216_s3 + $0xf8] sm:$0xff] %vm169_vm0, %v1526_v9  ;;  %v1525_v13 = vmax.f32 %v1489_v16, 0.0  ;;  %v1384_v14 = vadd.f32 %v2087_v36, %v2847_v17  ;;  %v1018_v30 = vpop.f32.mrf.mxu0  ;;  %v1378_v31 = vpop.f32.mrf.mxu1 }
 0x15a   :  { %v1528_v12 = vmax.f32 %v1492_v2, 0.0  ;;  %v1491_v24 = vmax.f32 %v1419_v45, %v1455_v54  ;;  %v1422_v56 = vmax.f32 %v844_v21, %v1024_v55  ;;  %v1019_v57 = vadd.f32 %v2847_v17, %v1018_v30 }
 0x15b   :  { %1561 = vst.msk [vmem:[%s3216_s3 + $0xf0] sm:$0xff] %vm169_vm0, %v1525_v13  ;;  %v1458_v15 = vmax.f32 %v1204_v37, %v1384_v14  ;;  %v1379_v19 = vadd.f32 %v2847_v17, %v1378_v31 }
 0x15c   :  { %1564 = vst.msk [vmem:[%s3216_s3 + $0x108] sm:$0xff] %vm169_vm0, %v1528_v12  ;;  %v1527_v38 = vmax.f32 %v1491_v24, 0.0  ;;  %v1421_v39 = vmax.f32 %v839_v11, %v1019_v57 }
 0x15d   :  { %v1494_v58 = vmax.f32 %v1422_v56, %v1458_v15  ;;  %v1457_v59 = vmax.f32 %v1199_v47, %v1379_v19 }
 0x15e   :  { %1563 = vst.msk [vmem:[%s3216_s3 + $0x100] sm:$0xff] %vm169_vm0, %v1527_v38 }
 0x15f   :  { %v1530_v7 = vmax.f32 %v1494_v58, 0.0  ;;  %v1493_v6 = vmax.f32 %v1421_v39, %v1457_v59 }
 0x161   :  { %1566 = vst.msk [vmem:[%s3216_s3 + $0x118] sm:$0xff] %vm169_vm0, %v1530_v7  ;;  %v1529_v17 = vmax.f32 %v1493_v6, 0.0 }
 0x163   :  { %1565 = vst.msk [vmem:[%s3216_s3 + $0x110] sm:$0xff] %vm169_vm0, %v1529_v17 }

// kernel: classification_forward.3
= control target key start
LH: loop header
LB: loop body
LE: loop exit
PB: predicated region body
PF: predicated region fallthrough
CT: control target
= control target key end

     0   :  { %vm912_vm0 = vcmask 130048   ;;  %s3960_s1 = inlined_call_operand.vmem [shape: f32[896,64], index: 1, kind: input, shape index: {}]   ;;  %s3961_s0 = inlined_call_operand.vmem [shape: f32[128,896], index: 0, kind: input, shape index: {}]   ;;  %s3962_s2 = inlined_call_operand.vmem [shape: f32[1,64], index: 2, kind: input, shape index: {}]   ;;  %s3963_s3 = inlined_call_operand.vmem [shape: f32[16,512], index: 3, kind: input, shape index: {}]   ;;  %s3964_s5 = inlined_call_operand.vmem [shape: f32[16,256], index: 5, kind: input, shape index: {}]   ;;  %s3965_s4 = inlined_call_operand.vmem [shape: f32[1,128], index: 4, kind: input, shape index: {}]   ;;  %s3966_s8 = inlined_call_operand.vmem [shape: f32[128,256], index: 8, kind: input, shape index: {}]   ;;  %s3967_s10 = inlined_call_operand.vmem [shape: f32[256,128], index: 10, kind: input, shape index: {}]   ;;  %s3968_s6 = inlined_call_operand.vmem [shape: f32[1,128], index: 6, kind: input, shape index: {}]   ;;  %s3969_s7 = inlined_call_operand.vmem [shape: f32[1,128], index: 7, kind: input, shape index: {}]   ;;  %s3970_s9 = inlined_call_operand.vmem [shape: f32[1,256], index: 9, kind: input, shape index: {}]   ;;  %s3971_s11 = inlined_call_operand.vmem [shape: f32[1,128], index: 11, kind: input, shape index: {}]   ;;  %s3972_s12 = inlined_call_operand.vmem [shape: f32[32,128], index: 12, kind: output, shape index: {}]  }
   0x1   :  { %v184_v0 = vld [vmem:[%s3960_s1 + $0xf8] sm:$0xff]  ;;  %v183_v2 = vld [vmem:[%s3960_s1 + $0xf0] sm:$0xff]  ;;  %v182_v6 = vld [vmem:[%s3960_s1 + $0xe8] sm:$0xff] }
   0x2   :  { %v168_v1 = vld [vmem:[%s3960_s1 + $0x78] sm:$0xff]  ;;  %2015 = vmatprep.subr.mxu0 %v184_v0  ;;  %v167_v4 = vld [vmem:[%s3960_s1 + $0x70] sm:$0xff]  ;;  %v166_v8 = vld [vmem:[%s3960_s1 + $0x68] sm:$0xff] }
   0x3   :  { %v216_v3 = vld [vmem:[%s3960_s1 + $0x1f8] sm:$0xff]  ;;  %2016 = vmatpush3.msra.mxu0 %v168_v1  ;;  %v215_v7 = vld [vmem:[%s3960_s1 + $0x1f0] sm:$0xff]  ;;  %v214_v10 = vld [vmem:[%s3960_s1 + $0x1e8] sm:$0xff] }
   0x4   :  { %v200_v5 = vld [vmem:[%s3960_s1 + $0x178] sm:$0xff]  ;;  %2095 = vmatprep.subr.mxu1 %v216_v3  ;;  %2017 = vmatprep.subr.mxu0 %v183_v2  ;;  %v199_v9 = vld [vmem:[%s3960_s1 + $0x170] sm:$0xff]  ;;  %v181_v11 = vld [vmem:[%s3960_s1 + $0xe0] sm:$0xff] }
   0x5   :  { %2096 = vmatpush3.msra.mxu1 %v200_v5  ;;  %2018 = vmatpush3.msra.mxu0 %v167_v4  ;;  %v198_v12 = vld [vmem:[%s3960_s1 + $0x168] sm:$0xff]  ;;  %v165_v13 = vld [vmem:[%s3960_s1 + $0x60] sm:$0xff]  ;;  %v180_v15 = vld [vmem:[%s3960_s1 + $0xd8] sm:$0xff] }
   0x6   :  { %2097 = vmatprep.subr.mxu1 %v215_v7  ;;  %2019 = vmatprep.subr.mxu0 %v182_v6  ;;  %v213_v14 = vld [vmem:[%s3960_s1 + $0x1e0] sm:$0xff]  ;;  %v164_v17 = vld [vmem:[%s3960_s1 + $0x58] sm:$0xff]  ;;  %v179_v19 = vld [vmem:[%s3960_s1 + $0xd0] sm:$0xff] }
   0x7   :  { %2098 = vmatpush3.msra.mxu1 %v199_v9  ;;  %2020 = vmatpush3.msra.mxu0 %v166_v8  ;;  %v197_v16 = vld [vmem:[%s3960_s1 + $0x160] sm:$0xff]  ;;  %v212_v18 = vld [vmem:[%s3960_s1 + $0x1d8] sm:$0xff]  ;;  %v163_v21 = vld [vmem:[%s3960_s1 + $0x50] sm:$0xff] }
   0x8   :  { %2099 = vmatprep.subr.mxu1 %v214_v10  ;;  %2021 = vmatprep.subr.mxu0 %v181_v11  ;;  %v196_v20 = vld [vmem:[%s3960_s1 + $0x158] sm:$0xff]  ;;  %v211_v22 = vld [vmem:[%s3960_s1 + $0x1d0] sm:$0xff]  ;;  %v178_v23 = vld [vmem:[%s3960_s1 + $0xc8] sm:$0xff] }
   0x9   :  { %2100 = vmatpush3.msra.mxu1 %v198_v12  ;;  %2022 = vmatpush3.msra.mxu0 %v165_v13  ;;  %v195_v24 = vld [vmem:[%s3960_s1 + $0x150] sm:$0xff]  ;;  %v162_v25 = vld [vmem:[%s3960_s1 + $0x48] sm:$0xff]  ;;  %v177_v27 = vld [vmem:[%s3960_s1 + $0xc0] sm:$0xff] }
   0xa   :  { %2101 = vmatprep.subr.mxu1 %v213_v14  ;;  %2023 = vmatprep.subr.mxu0 %v180_v15  ;;  %v210_v26 = vld [vmem:[%s3960_s1 + $0x1c8] sm:$0xff]  ;;  %v161_v29 = vld [vmem:[%s3960_s1 + $0x40] sm:$0xff]  ;;  %v176_v31 = vld [vmem:[%s3960_s1 + $0xb8] sm:$0xff] }
   0xb   :  { %2102 = vmatpush3.msra.mxu1 %v197_v16  ;;  %2024 = vmatpush3.msra.mxu0 %v164_v17  ;;  %v194_v28 = vld [vmem:[%s3960_s1 + $0x148] sm:$0xff]  ;;  %v209_v30 = vld [vmem:[%s3960_s1 + $0x1c0] sm:$0xff]  ;;  %v160_v33 = vld [vmem:[%s3960_s1 + $0x38] sm:$0xff] }
   0xc   :  { %2103 = vmatprep.subr.mxu1 %v212_v18  ;;  %2025 = vmatprep.subr.mxu0 %v179_v19  ;;  %v193_v32 = vld [vmem:[%s3960_s1 + $0x140] sm:$0xff]  ;;  %v208_v34 = vld [vmem:[%s3960_s1 + $0x1b8] sm:$0xff]  ;;  %v175_v35 = vld [vmem:[%s3960_s1 + $0xb0] sm:$0xff] }
   0xd   :  { %2104 = vmatpush3.msra.mxu1 %v196_v20  ;;  %2026 = vmatpush3.msra.mxu0 %v163_v21  ;;  %v192_v36 = vld [vmem:[%s3960_s1 + $0x138] sm:$0xff]  ;;  %v159_v37 = vld [vmem:[%s3960_s1 + $0x30] sm:$0xff]  ;;  %v174_v39 = vld [vmem:[%s3960_s1 + $0xa8] sm:$0xff] }
   0xe   :  { %2105 = vmatprep.subr.mxu1 %v211_v22  ;;  %2027 = vmatprep.subr.mxu0 %v178_v23  ;;  %v207_v38 = vld [vmem:[%s3960_s1 + $0x1b0] sm:$0xff]  ;;  %v158_v41 = vld [vmem:[%s3960_s1 + $0x28] sm:$0xff]  ;;  %v173_v43 = vld [vmem:[%s3960_s1 + $0xa0] sm:$0xff] }
   0xf   :  { %2106 = vmatpush3.msra.mxu1 %v195_v24  ;;  %2028 = vmatpush3.msra.mxu0 %v162_v25  ;;  %v191_v40 = vld [vmem:[%s3960_s1 + $0x130] sm:$0xff]  ;;  %v206_v42 = vld [vmem:[%s3960_s1 + $0x1a8] sm:$0xff]  ;;  %v157_v45 = vld [vmem:[%s3960_s1 + $0x20] sm:$0xff] }
  0x10   :  { %2107 = vmatprep.subr.mxu1 %v210_v26  ;;  %2029 = vmatprep.subr.mxu0 %v177_v27  ;;  %v190_v44 = vld [vmem:[%s3960_s1 + $0x128] sm:$0xff]  ;;  %v205_v46 = vld [vmem:[%s3960_s1 + $0x1a0] sm:$0xff]  ;;  %v172_v47 = vld [vmem:[%s3960_s1 + $0x98] sm:$0xff] }
  0x11   :  { %2108 = vmatpush3.msra.mxu1 %v194_v28  ;;  %2030 = vmatpush3.msra.mxu0 %v161_v29  ;;  %v189_v48 = vld [vmem:[%s3960_s1 + $0x120] sm:$0xff]  ;;  %v156_v49 = vld [vmem:[%s3960_s1 + $0x18] sm:$0xff]  ;;  %v171_v51 = vld [vmem:[%s3960_s1 + $0x90] sm:$0xff] }
  0x12   :  { %2109 = vmatprep.subr.mxu1 %v209_v30  ;;  %2031 = vmatprep.subr.mxu0 %v176_v31  ;;  %v204_v50 = vld [vmem:[%s3960_s1 + $0x198] sm:$0xff]  ;;  %v155_v53 = vld [vmem:[%s3960_s1 + $0x10] sm:$0xff]  ;;  %v170_v55 = vld [vmem:[%s3960_s1 + $0x88] sm:$0xff] }
  0x13   :  { %2110 = vmatpush3.msra.mxu1 %v193_v32  ;;  %2032 = vmatpush3.msra.mxu0 %v160_v33  ;;  %v188_v52 = vld [vmem:[%s3960_s1 + $0x118] sm:$0xff]  ;;  %v203_v54 = vld [vmem:[%s3960_s1 + $0x190] sm:$0xff]  ;;  %v154_v57 = vld [vmem:[%s3960_s1 + $0x8] sm:$0xff] }
  0x14   :  { %2111 = vmatprep.subr.mxu1 %v208_v34  ;;  %2033 = vmatprep.subr.mxu0 %v175_v35  ;;  %v187_v56 = vld [vmem:[%s3960_s1 + $0x110] sm:$0xff]  ;;  %v202_v58 = vld [vmem:[%s3960_s1 + $0x188] sm:$0xff]  ;;  %v169_v59 = vld [vmem:[%s3960_s1 + $0x80] sm:$0xff] }
  0x15   :  { %2112 = vmatpush3.msra.mxu1 %v192_v36  ;;  %2034 = vmatpush3.msra.mxu0 %v159_v37  ;;  %v42_v60 = vld [vmem:[%s3961_s0 + $0x8] sm:$0xff]  ;;  %v153_v61 = vld [vmem:[%s3960_s1] sm:$0xff]  ;;  %v248_v1 = vld [vmem:[%s3960_s1 + $0x2f8] sm:$0xff] }
  0x16   :  { %2113 = vmatprep.subr.mxu1 %v207_v38  ;;  %2035 = vmatprep.subr.mxu0 %v174_v39  ;;  %v186_v62 = vld [vmem:[%s3960_s1 + $0x108] sm:$0xff]  ;;  %v41_v63 = vld [vmem:[%s3961_s0] sm:$0xff]  ;;  %v44_v3 = vld [vmem:[%s3961_s0 + $0x18] sm:$0xff] }
  0x17   :  { %2114 = vmatpush3.msra.mxu1 %v191_v40  ;;  %2036 = vmatpush3.msra.mxu0 %v158_v41  ;;  %v201_v0 = vld [vmem:[%s3960_s1 + $0x180] sm:$0xff]  ;;  %v232_v4 = vld [vmem:[%s3960_s1 + $0x278] sm:$0xff]  ;;  %v43_v5 = vld [vmem:[%s3961_s0 + $0x10] sm:$0xff] }
  0x18   :  { %2115 = vmatprep.subr.mxu1 %v206_v42  ;;  %2037 = vmatprep.subr.mxu0 %v173_v43  ;;  %v185_v2 = vld [vmem:[%s3960_s1 + $0x100] sm:$0xff]  ;;  %v48_v7 = vld [vmem:[%s3961_s0 + $0x38] sm:$0xff]  ;;  %v247_v8 = vld [vmem:[%s3960_s1 + $0x2f0] sm:$0xff] }
  0x19   :  { %2116 = vmatpush3.msra.mxu1 %v190_v44  ;;  %2038 = vmatpush3.msra.mxu0 %v157_v45  ;;  %v49_v6 = vld [vmem:[%s3961_s0 + $0x40] sm:$0xff]  ;;  %v51_v9 = vld [vmem:[%s3961_s0 + $0x50] sm:$0xff]  ;;  %v56_v11 = vld [vmem:[%s3961_s0 + $0x78] sm:$0xff] }
  0x1a   :  { %2117 = vmatprep.subr.mxu1 %v205_v46  ;;  %2039 = vmatprep.subr.mxu0 %v172_v47  ;;  %v231_v10 = vld [vmem:[%s3960_s1 + $0x270] sm:$0xff]  ;;  %v246_v12 = vld [vmem:[%s3960_s1 + $0x2e8] sm:$0xff]  ;;  %v245_v18 = vld [vmem:[%s3960_s1 + $0x2e0] sm:$0xff] }
  0x1b   :  { %2118 = vmatpush3.msra.mxu1 %v189_v48  ;;  %2040 = vmatpush3.msra.mxu0 %v156_v49  ;;  %v50_v13 = vld [vmem:[%s3961_s0 + $0x48] sm:$0xff]  ;;  %v55_v15 = vld [vmem:[%s3961_s0 + $0x70] sm:$0xff]  ;;  %v229_v19 = vld [vmem:[%s3960_s1 + $0x260] sm:$0xff] }
  0x1c   :  { %2119 = vmatprep.subr.mxu1 %v204_v50  ;;  %2041 = vmatprep.subr.mxu0 %v171_v51  ;;  %v230_v14 = vld [vmem:[%s3960_s1 + $0x268] sm:$0xff]  ;;  %v63_v17 = vld [vmem:[%s3961_s0 + $0xb0] sm:$0xff]  ;;  %v57_v20 = vld [vmem:[%s3961_s0 + $0x80] sm:$0xff] }
  0x1d   :  { %2120 = vmatpush3.msra.mxu1 %v188_v52  ;;  %2042 = vmatpush3.msra.mxu0 %v155_v53  ;;  %v58_v16 = vld [vmem:[%s3961_s0 + $0x88] sm:$0xff]  ;;  %v244_v21 = vld [vmem:[%s3960_s1 + $0x2d8] sm:$0xff]  ;;  %v65_v23 = vld [vmem:[%s3961_s0 + $0xc0] sm:$0xff] }
  0x1e   :  { %2121 = vmatprep.subr.mxu1 %v203_v54  ;;  %2043 = vmatprep.subr.mxu0 %v170_v55  ;;  %v62_v22 = vld [vmem:[%s3961_s0 + $0xa8] sm:$0xff]  ;;  %v228_v25 = vld [vmem:[%s3960_s1 + $0x258] sm:$0xff]  ;;  %v243_v26 = vld [vmem:[%s3960_s1 + $0x2d0] sm:$0xff] }
  0x1f   :  { %2122 = vmatpush3.msra.mxu1 %v187_v56  ;;  %2044 = vmatpush3.msra.mxu0 %v154_v57  ;;  %v70_v24 = vld [vmem:[%s3961_s0 + $0xe8] sm:$0xff]  ;;  %v2856_v27 = vld [vmem:[%s3960_s1 + $0x378] sm:$0xff]  ;;  %v227_v29 = vld [vmem:[%s3960_s1 + $0x250] sm:$0xff] }
  0x20   :  { %2123 = vmatprep.subr.mxu1 %v202_v58  ;;  %2045 = vmatprep.subr.mxu0 %v169_v59  ;;  %v64_v28 = vld [vmem:[%s3961_s0 + $0xb8] sm:$0xff]  ;;  %v69_v30 = vld [vmem:[%s3961_s0 + $0xe0] sm:$0xff]  ;;  %v242_v33 = vld [vmem:[%s3960_s1 + $0x2c8] sm:$0xff] }
  0x21   :  { %336 = vmatprep.mubr.f32.mxu0 %v42_v60  ;;  %2046 = vmatpush3.msra.mxu0 %v153_v61  ;;  %v72_v31 = vld [vmem:[%s3961_s0 + $0xf8] sm:$0xff]  ;;  %v77_v32 = vld [vmem:[%s3961_s0 + $0x120] sm:$0xff]  ;;  %v226_v34 = vld [vmem:[%s3960_s1 + $0x248] sm:$0xff] }
  0x22   :  { %2124 = vmatpush3.msra.mxu1 %v186_v62  ;;  %337 = vmatmul.mubr.f32.vlgmr.msra.gmra.mxu0 %v41_v63  ;;  %v71_v35 = vld [vmem:[%s3961_s0 + $0xf0] sm:$0xff]  ;;  %v241_v36 = vld [vmem:[%s3960_s1 + $0x2c0] sm:$0xff]  ;;  %v76_v37 = vld [vmem:[%s3961_s0 + $0x118] sm:$0xff] }
  0x23   :  { %2125 = vmatprep.subr.mxu1 %v201_v0  ;;  %2175 = vmatprep.subr.mxu0 %v248_v1  ;;  %v79_v38 = vld [vmem:[%s3961_s0 + $0x130] sm:$0xff]  ;;  %v84_v39 = vld [vmem:[%s3961_s0 + $0x158] sm:$0xff]  ;;  %v225_v40 = vld [vmem:[%s3960_s1 + $0x240] sm:$0xff] }
  0x24   :  { %2126 = vmatpush3.msra.mxu1 %v185_v2  ;;  %481 = vmatprep.mubr.f32.mxu1 %v44_v3  ;;  %v240_v41 = vld [vmem:[%s3960_s1 + $0x2b8] sm:$0xff]  ;;  %v2905_v42 = vld [vmem:[%s3960_s1 + $0x370] sm:$0xff]  ;;  %v78_v43 = vld [vmem:[%s3961_s0 + $0x128] sm:$0xff] }
  0x25   :  { %2176 = vmatpush3.msra.mxu0 %v232_v4  ;;  %482 = vmatmul.mubr.f32.vlgmr.msra.gmra.mxu1 %v43_v5  ;;  %v224_v44 = vld [vmem:[%s3960_s1 + $0x238] sm:$0xff]  ;;  %v83_v45 = vld [vmem:[%s3961_s0 + $0x150] sm:$0xff]  ;;  %v86_v46 = vld [vmem:[%s3961_s0 + $0x168] sm:$0xff] }
  0x26   :  { %341 = vmatprep.mubr.f32.mxu0 %v49_v6  ;;  %2177 = vmatprep.subr.mxu0 %v247_v8  ;;  %v91_v47 = vld [vmem:[%s3961_s0 + $0x190] sm:$0xff]  ;;  %v85_v50 = vld [vmem:[%s3961_s0 + $0x160] sm:$0xff]  ;;  %v238_v51 = vld [vmem:[%s3960_s1 + $0x2a8] sm:$0xff] }
  0x27   :  { %342 = vmatmul.mubr.f32.gmra.mxu0 %v48_v7  ;;  %486 = vmatprep.mubr.f32.mxu1 %v51_v9  ;;  %v239_v48 = vld [vmem:[%s3960_s1 + $0x2b0] sm:$0xff]  ;;  %v90_v52 = vld [vmem:[%s3961_s0 + $0x188] sm:$0xff]  ;;  %v93_v53 = vld [vmem:[%s3961_s0 + $0x1a0] sm:$0xff] }
  0x28   :  { %2178 = vmatpush3.msra.mxu0 %v231_v10  ;;  %346 = vmatprep.mubr.f32.mxu0 %v56_v11  ;;  %v223_v49 = vld [vmem:[%s3960_s1 + $0x230] sm:$0xff]  ;;  %v98_v54 = vld [vmem:[%s3961_s0 + $0x1c8] sm:$0xff]  ;;  %v237_v56 = vld [vmem:[%s3960_s1 + $0x2a0] sm:$0xff] }
  0x29   :  { %2179 = vmatprep.subr.mxu0 %v246_v12  ;;  %487 = vmatmul.mubr.f32.gmra.mxu1 %v50_v13  ;;  %v222_v55 = vld [vmem:[%s3960_s1 + $0x228] sm:$0xff]  ;;  %v92_v58 = vld [vmem:[%s3961_s0 + $0x198] sm:$0xff]  ;;  %v221_v59 = vld [vmem:[%s3960_s1 + $0x220] sm:$0xff] }
  0x2a   :  { %2180 = vmatpush3.msra.mxu0 %v230_v14  ;;  %491 = vmatprep.mubr.f32.mxu1 %v58_v16  ;;  %v2954_v57 = vld [vmem:[%s3960_s1 + $0x368] sm:$0xff]  ;;  %v97_v60 = vld [vmem:[%s3961_s0 + $0x1c0] sm:$0xff]  ;;  %v100_v61 = vld [vmem:[%s3961_s0 + $0x1d8] sm:$0xff] }
  0x2b   :  { %347 = vmatmul.mubr.f32.gmra.mxu0 %v55_v15  ;;  %2181 = vmatprep.subr.mxu0 %v245_v18  ;;  %v105_v62 = vld [vmem:[%s3961_s0 + $0x200] sm:$0xff]  ;;  %v236_v63 = vld [vmem:[%s3960_s1 + $0x298] sm:$0xff]  ;;  %v99_v1 = vld [vmem:[%s3961_s0 + $0x1d0] sm:$0xff] }
  0x2c   :  { %351 = vmatprep.mubr.f32.mxu0 %v63_v17  ;;  %2182 = vmatpush3.msra.mxu0 %v229_v19  ;;  %v220_v0 = vld [vmem:[%s3960_s1 + $0x218] sm:$0xff]  ;;  %v2984_v2 = vld [vmem:[%s3960_s1 + $0x360] sm:$0xff]  ;;  %v107_v4 = vld [vmem:[%s3961_s0 + $0x210] sm:$0xff] }
  0x2d   :  { %492 = vmatmul.mubr.f32.gmra.mxu1 %v57_v20  ;;  %2183 = vmatprep.subr.mxu0 %v244_v21  ;;  %v104_v3 = vld [vmem:[%s3961_s0 + $0x1f8] sm:$0xff]  ;;  %v235_v6 = vld [vmem:[%s3960_s1 + $0x290] sm:$0xff]  ;;  %v106_v8 = vld [vmem:[%s3961_s0 + $0x208] sm:$0xff] }
  0x2e   :  { %496 = vmatprep.mubr.f32.mxu1 %v65_v23  ;;  %2184 = vmatpush3.msra.mxu0 %v228_v25  ;;  %v112_v5 = vld [vmem:[%s3961_s0 + $0x238] sm:$0xff]  ;;  %v219_v9 = vld [vmem:[%s3960_s1 + $0x210] sm:$0xff]  ;;  %v114_v11 = vld [vmem:[%s3961_s0 + $0x248] sm:$0xff] }
  0x2f   :  { %352 = vmatmul.mubr.f32.gmra.mxu0 %v62_v22  ;;  %2185 = vmatprep.subr.mxu0 %v243_v26  ;;  %v3003_v7 = vld [vmem:[%s3960_s1 + $0x358] sm:$0xff]  ;;  %v111_v10 = vld [vmem:[%s3961_s0 + $0x230] sm:$0xff]  ;;  %v234_v14 = vld [vmem:[%s3960_s1 + $0x288] sm:$0xff] }
  0x30   :  { %356 = vmatprep.mubr.f32.mxu0 %v70_v24  ;;  %2463 = vmatprep.subr.mxu1 %v2856_v27  ;;  %v119_v12 = vld [vmem:[%s3961_s0 + $0x270] sm:$0xff]  ;;  %v113_v15 = vld [vmem:[%s3961_s0 + $0x240] sm:$0xff]  ;;  %v218_v16 = vld [vmem:[%s3960_s1 + $0x208] sm:$0xff] }
  0x31   :  { %497 = vmatmul.mubr.f32.gmra.mxu1 %v64_v28  ;;  %2186 = vmatpush3.msra.mxu0 %v227_v29  ;;  %v3025_v13 = vld [vmem:[%s3960_s1 + $0x350] sm:$0xff]  ;;  %v118_v17 = vld [vmem:[%s3961_s0 + $0x268] sm:$0xff]  ;;  %v121_v18 = vld [vmem:[%s3961_s0 + $0x280] sm:$0xff] }
  0x32   :  { %501 = vmatprep.mubr.f32.mxu1 %v72_v31  ;;  %2187 = vmatprep.subr.mxu0 %v242_v33  ;;  %v126_v19 = vld [vmem:[%s3961_s0 + $0x2a8] sm:$0xff]  ;;  %v233_v21 = vld [vmem:[%s3960_s1 + $0x280] sm:$0xff]  ;;  %v120_v22 = vld [vmem:[%s3961_s0 + $0x278] sm:$0xff] }
  0x33   :  { %357 = vmatmul.mubr.f32.gmra.mxu0 %v69_v30  ;;  %2479 = vmatpush3.msra.mxu1 %v2856_v27  ;;  %v3050_v20 = vld [vmem:[%s3960_s1 + $0x348] sm:$0xff]  ;;  %v217_v23 = vld [vmem:[%s3960_s1 + $0x200] sm:$0xff]  ;;  %v128_v25 = vld [vmem:[%s3961_s0 + $0x2b8] sm:$0xff] }
  0x34   :  { %361 = vmatprep.mubr.f32.mxu0 %v77_v32  ;;  %2188 = vmatpush3.msra.mxu0 %v226_v34  ;;  %v125_v24 = vld [vmem:[%s3961_s0 + $0x2a0] sm:$0xff]  ;;  %v127_v29 = vld [vmem:[%s3961_s0 + $0x2b0] sm:$0xff]  ;;  %v132_v30 = vld [vmem:[%s3961_s0 + $0x2d8] sm:$0xff] }
  0x35   :  { %502 = vmatmul.mubr.f32.gmra.mxu1 %v71_v35  ;;  %2189 = vmatprep.subr.mxu0 %v241_v36  ;;  %v133_v26 = vld [vmem:[%s3961_s0 + $0x2e0] sm:$0xff]  ;;  %v135_v31 = vld [vmem:[%s3961_s0 + $0x2f0] sm:$0xff]  ;;  %v140_v32 = vld [vmem:[%s3961_s0 + $0x318] sm:$0xff] }
  0x36   :  { %506 = vmatprep.mubr.f32.mxu1 %v79_v38  ;;  %2190 = vmatpush3.msra.mxu0 %v225_v40  ;;  %v3075_v28 = vld [vmem:[%s3960_s1 + $0x340] sm:$0xff]  ;;  %v3095_v33 = vld [vmem:[%s3960_s1 + $0x338] sm:$0xff]  ;;  %v134_v34 = vld [vmem:[%s3961_s0 + $0x2e8] sm:$0xff] }
  0x37   :  { %362 = vmatmul.mubr.f32.gmra.mxu0 %v76_v37  ;;  %2191 = vmatprep.subr.mxu0 %v240_v41  ;;  %v139_v35 = vld [vmem:[%s3961_s0 + $0x310] sm:$0xff]  ;;  %v142_v36 = vld [vmem:[%s3961_s0 + $0x328] sm:$0xff]  ;;  %v149_v41 = vld [vmem:[%s3961_s0 + $0x360] sm:$0xff] }
  0x38   :  { %366 = vmatprep.mubr.f32.mxu0 %v84_v39  ;;  %2464 = vmatprep.subr.mxu1 %v2905_v42  ;;  %v147_v37 = vld [vmem:[%s3961_s0 + $0x350] sm:$0xff]  ;;  %v141_v39 = vld [vmem:[%s3961_s0 + $0x320] sm:$0xff]  ;;  %v146_v40 = vld [vmem:[%s3961_s0 + $0x348] sm:$0xff] }
  0x39   :  { %507 = vmatmul.mubr.f32.gmra.mxu1 %v78_v43  ;;  %2192 = vmatpush3.msra.mxu0 %v224_v44  ;;  %v3114_v38 = vld [vmem:[%s3960_s1 + $0x330] sm:$0xff]  ;;  %v46_v43 = vld [vmem:[%s3961_s0 + $0x28] sm:$0xff] }
  0x3a   :  { %511 = vmatprep.mubr.f32.mxu1 %v86_v46  ;;  %2193 = vmatprep.subr.mxu0 %v239_v48  ;;  %v3133_v44 = vld [vmem:[%s3960_s1 + $0x328] sm:$0xff]  ;;  %v45_v46 = vld [vmem:[%s3961_s0 + $0x20] sm:$0xff] }
  0x3b   :  { %367 = vmatmul.mubr.f32.gmra.mxu0 %v83_v45  ;;  %2480 = vmatpush3.msra.mxu1 %v2905_v42  ;;  %v148_v45 = vld [vmem:[%s3961_s0 + $0x358] sm:$0xff]  ;;  %v53_v48 = vld [vmem:[%s3961_s0 + $0x60] sm:$0xff] }
  0x3c   :  { %371 = vmatprep.mubr.f32.mxu0 %v91_v47  ;;  %2194 = vmatpush3.msra.mxu0 %v223_v49  ;;  %v3146_v47 = vld [vmem:[%s3960_s1 + $0x320] sm:$0xff]  ;;  %v3155_v49 = vld [vmem:[%s3960_s1 + $0x318] sm:$0xff] }
  0x3d   :  { %512 = vmatmul.mubr.f32.gmra.mxu1 %v85_v50  ;;  %2195 = vmatprep.subr.mxu0 %v238_v51  ;;  %v52_v50 = vld [vmem:[%s3961_s0 + $0x58] sm:$0xff]  ;;  %v3166_v51 = vld [vmem:[%s3960_s1 + $0x310] sm:$0xff] }
  0x3e   :  { %516 = vmatprep.mubr.f32.mxu1 %v93_v53  ;;  %2196 = vmatpush3.msra.mxu0 %v222_v55  ;;  %v59_v53 = vld [vmem:[%s3961_s0 + $0x90] sm:$0xff]  ;;  %v61_v55 = vld [vmem:[%s3961_s0 + $0xa0] sm:$0xff] }
  0x3f   :  { %372 = vmatmul.mubr.f32.gmra.mxu0 %v90_v52  ;;  %2197 = vmatprep.subr.mxu0 %v237_v56  ;;  %v3177_v52 = vld [vmem:[%s3960_s1 + $0x308] sm:$0xff] }
  0x40   :  { %376 = vmatprep.mubr.f32.mxu0 %v98_v54  ;;  %2465 = vmatprep.subr.mxu1 %v2954_v57  ;;  %v3188_v54 = vld [vmem:[%s3960_s1 + $0x300] sm:$0xff]  ;;  %v66_v56 = vld [vmem:[%s3961_s0 + $0xc8] sm:$0xff] }
  0x41   :  { %517 = vmatmul.mubr.f32.gmra.mxu1 %v92_v58  ;;  %2198 = vmatpush3.msra.mxu0 %v221_v59  ;;  %v68_v58 = vld [vmem:[%s3961_s0 + $0xd8] sm:$0xff]  ;;  %v74_v59 = vld [vmem:[%s3961_s0 + $0x108] sm:$0xff] }
  0x42   :  { %521 = vmatprep.mubr.f32.mxu1 %v100_v61  ;;  %2199 = vmatprep.subr.mxu0 %v236_v63  ;;  %v81_v61 = vld [vmem:[%s3961_s0 + $0x140] sm:$0xff] }
  0x43   :  { %377 = vmatmul.mubr.f32.gmra.mxu0 %v97_v60  ;;  %2481 = vmatpush3.msra.mxu1 %v2954_v57  ;;  %v73_v60 = vld [vmem:[%s3961_s0 + $0x100] sm:$0xff] }
  0x44   :  { %381 = vmatprep.mubr.f32.mxu0 %v105_v62  ;;  %2200 = vmatpush3.msra.mxu0 %v220_v0  ;;  %v82_v62 = vld [vmem:[%s3961_s0 + $0x148] sm:$0xff]  ;;  %v89_v63 = vld [vmem:[%s3961_s0 + $0x180] sm:$0xff]  ;;  %v80_v0 = vld [vmem:[%s3961_s0 + $0x138] sm:$0xff] }
  0x45   :  { %522 = vmatmul.mubr.f32.gmra.mxu1 %v99_v1  ;;  %2466 = vmatprep.subr.mxu1 %v2984_v2  ;;  %v88_v1 = vld [vmem:[%s3961_s0 + $0x178] sm:$0xff] }
  0x46   :  { %526 = vmatprep.mubr.f32.mxu1 %v107_v4  ;;  %2482 = vmatpush3.msra.mxu1 %v2984_v2  ;;  %v87_v4 = vld [vmem:[%s3961_s0 + $0x170] sm:$0xff] }
  0x47   :  { %382 = vmatmul.mubr.f32.gmra.mxu0 %v104_v3  ;;  %2201 = vmatprep.subr.mxu0 %v235_v6  ;;  %v103_v3 = vld [vmem:[%s3961_s0 + $0x1f0] sm:$0xff]  ;;  %v110_v6 = vld [vmem:[%s3961_s0 + $0x228] sm:$0xff] }
  0x48   :  { %386 = vmatprep.mubr.f32.mxu0 %v112_v5  ;;  %2467 = vmatprep.subr.mxu1 %v3003_v7  ;;  %v95_v5 = vld [vmem:[%s3961_s0 + $0x1b0] sm:$0xff] }
  0x49   :  { %527 = vmatmul.mubr.f32.gmra.mxu1 %v106_v8  ;;  %2202 = vmatpush3.msra.mxu0 %v219_v9  ;;  %v94_v8 = vld [vmem:[%s3961_s0 + $0x1a8] sm:$0xff] }
  0x4a   :  { %531 = vmatprep.mubr.f32.mxu1 %v114_v11  ;;  %2483 = vmatpush3.msra.mxu1 %v3003_v7  ;;  %v102_v9 = vld [vmem:[%s3961_s0 + $0x1e8] sm:$0xff]  ;;  %v131_v11 = vld [vmem:[%s3961_s0 + $0x2d0] sm:$0xff] }
  0x4b   :  { %387 = vmatmul.mubr.f32.gmra.mxu0 %v111_v10  ;;  %2468 = vmatprep.subr.mxu1 %v3025_v13  ;;  %v124_v10 = vld [vmem:[%s3961_s0 + $0x298] sm:$0xff] }
  0x4c   :  { %391 = vmatprep.mubr.f32.mxu0 %v119_v12  ;;  %2203 = vmatprep.subr.mxu0 %v234_v14  ;;  %v101_v12 = vld [vmem:[%s3961_s0 + $0x1e0] sm:$0xff]  ;;  %v138_v14 = vld [vmem:[%s3961_s0 + $0x308] sm:$0xff] }
  0x4d   :  { %532 = vmatmul.mubr.f32.gmra.mxu1 %v113_v15  ;;  %2204 = vmatpush3.msra.mxu0 %v218_v16  ;;  %v145_v15 = vld [vmem:[%s3961_s0 + $0x340] sm:$0xff]  ;;  %v108_v16 = vld [vmem:[%s3961_s0 + $0x218] sm:$0xff] }
  0x4e   :  { %536 = vmatprep.mubr.f32.mxu1 %v121_v18  ;;  %2484 = vmatpush3.msra.mxu1 %v3025_v13  ;;  %v152_v18 = vld [vmem:[%s3961_s0 + $0x378] sm:$0xff] }
  0x4f   :  { %392 = vmatmul.mubr.f32.gmra.mxu0 %v118_v17  ;;  %2469 = vmatprep.subr.mxu1 %v3050_v20  ;;  %v116_v17 = vld [vmem:[%s3961_s0 + $0x258] sm:$0xff] }
  0x50   :  { %396 = vmatprep.mubr.f32.mxu0 %v126_v19  ;;  %2205 = vmatprep.subr.mxu0 %v233_v21  ;;  %v115_v19 = vld [vmem:[%s3961_s0 + $0x250] sm:$0xff]  ;;  %v122_v21 = vld [vmem:[%s3961_s0 + $0x288] sm:$0xff] }
  0x51   :  { %537 = vmatmul.mubr.f32.gmra.mxu1 %v120_v22  ;;  %2206 = vmatpush3.msra.mxu0 %v217_v23  ;;  %v130_v22 = vld [vmem:[%s3961_s0 + $0x2c8] sm:$0xff]  ;;  %v129_v23 = vld [vmem:[%s3961_s0 + $0x2c0] sm:$0xff] }
  0x52   :  { %541 = vmatprep.mubr.f32.mxu1 %v128_v25  ;;  %2485 = vmatpush3.msra.mxu1 %v3050_v20  ;;  %v136_v25 = vld [vmem:[%s3961_s0 + $0x2f8] sm:$0xff] }
  0x53   :  { %397 = vmatmul.mubr.f32.gmra.mxu0 %v125_v24  ;;  %2470 = vmatprep.subr.mxu1 %v3075_v28  ;;  %v137_v24 = vld [vmem:[%s3961_s0 + $0x300] sm:$0xff] }
  0x54   :  { %401 = vmatprep.mubr.f32.mxu0 %v133_v26  ;;  %2407 = vmatprep.subr.mxu0 %v2856_v27  ;;  %v144_v26 = vld [vmem:[%s3961_s0 + $0x338] sm:$0xff] }
  0x55   :  { %542 = vmatmul.mubr.f32.gmra.mxu1 %v127_v29  ;;  %v151_v29 = vld [vmem:[%s3961_s0 + $0x370] sm:$0xff] }
  0x56   :  { %546 = vmatprep.mubr.f32.mxu1 %v135_v31  ;;  %2486 = vmatpush3.msra.mxu1 %v3075_v28  ;;  %v47_v31 = vld [vmem:[%s3961_s0 + $0x30] sm:$0xff] }
  0x57   :  { %402 = vmatmul.mubr.f32.gmra.mxu0 %v132_v30  ;;  %2471 = vmatprep.subr.mxu1 %v3095_v33  ;;  %v150_v30 = vld [vmem:[%s3961_s0 + $0x368] sm:$0xff] }
  0x58   :  { %406 = vmatprep.mubr.f32.mxu0 %v140_v32  ;;  %2487 = vmatpush3.msra.mxu1 %v3095_v33  ;;  %v54_v32 = vld [vmem:[%s3961_s0 + $0x68] sm:$0xff] }
  0x59   :  { %547 = vmatmul.mubr.f32.gmra.mxu1 %v134_v34  ;;  %2472 = vmatprep.subr.mxu1 %v3114_v38  ;;  %v3351_v34 = vld [vmem:[%s3962_s2] ss:$0 sm:$0xff] }
  0x5a   :  { %551 = vmatprep.mubr.f32.mxu1 %v142_v36  ;;  %2488 = vmatpush3.msra.mxu1 %v3114_v38 }
  0x5b   :  { %407 = vmatmul.mubr.f32.gmra.mxu0 %v139_v35  ;;  %2473 = vmatprep.subr.mxu1 %v3133_v44 }
  0x5c   :  { %411 = vmatprep.mubr.f32.mxu0 %v147_v37  ;;  %2489 = vmatpush3.msra.mxu1 %v3133_v44 }
  0x5d   :  { %552 = vmatmul.mubr.f32.gmra.mxu1 %v141_v39  ;;  %2474 = vmatprep.subr.mxu1 %v3146_v47 }
  0x5e   :  { %556 = vmatprep.mubr.f32.mxu1 %v149_v41  ;;  %2490 = vmatpush3.msra.mxu1 %v3146_v47 }
  0x5f   :  { %412 = vmatmul.mubr.f32.gmra.mxu0 %v146_v40  ;;  %2475 = vmatprep.subr.mxu1 %v3155_v49 }
  0x60   :  { %626 = vmatprep.mubr.f32.mxu0 %v46_v43  ;;  %2491 = vmatpush3.msra.mxu1 %v3155_v49 }
  0x61   :  { %557 = vmatmul.mubr.f32.gmra.mxu1 %v148_v45  ;;  %2476 = vmatprep.subr.mxu1 %v3166_v51 }
  0x62   :  { %2492 = vmatpush3.msra.mxu1 %v3166_v51  ;;  %2442 = vmatprep.mubr.f32.mxu1 %v61_v55 }
  0x63   :  { %627 = vmatmul.mubr.f32.vlgmr.msra.gmra.mxu0 %v45_v46  ;;  %2477 = vmatprep.subr.mxu1 %v3177_v52 }
  0x64   :  { %2408 = vmatpush3.msra.mxu0 %v2856_v27  ;;  %631 = vmatprep.mubr.f32.mxu0 %v53_v48  ;;  %v60_v27 = vld [vmem:[%s3961_s0 + $0x98] sm:$0xff] }
  0x65   :  { %2409 = vmatprep.subr.mxu0 %v2905_v42  ;;  %2493 = vmatpush3.msra.mxu1 %v3177_v52 }
  0x66   :  { %2410 = vmatpush3.msra.mxu0 %v2905_v42  ;;  %v67_v42 = vld [vmem:[%s3961_s0 + $0xd0] sm:$0xff]  ;;  %2478 = vmatprep.subr.mxu1 %v3188_v54 }
  0x67   :  { %632 = vmatmul.mubr.f32.gmra.mxu0 %v52_v50  ;;  %2411 = vmatprep.subr.mxu0 %v2954_v57 }
  0x68   :  { %636 = vmatprep.mubr.f32.mxu0 %v60_v27  ;;  %2412 = vmatpush3.msra.mxu0 %v2954_v57  ;;  %v75_v57 = vld [vmem:[%s3961_s0 + $0x110] sm:$0xff] }
  0x69   :  { %2494 = vmatpush3.msra.mxu1 %v3188_v54  ;;  %2413 = vmatprep.subr.mxu0 %v2984_v2 }
  0x6a   :  { %2443 = vmatmul.mubr.f32.vlgmr.msra.gmra.mxu1 %v68_v58  ;;  %2414 = vmatpush3.msra.mxu0 %v2984_v2  ;;  %v96_v2 = vld [vmem:[%s3961_s0 + $0x1b8] sm:$0xff] }
  0x6b   :  { %637 = vmatmul.mubr.f32.gmra.mxu0 %v59_v53  ;;  %2415 = vmatprep.subr.mxu0 %v3003_v7 }
  0x6c   :  { %641 = vmatprep.mubr.f32.mxu0 %v67_v42  ;;  %2445 = vmatprep.mubr.f32.mxu1 %v75_v57 }
  0x6d   :  { %2416 = vmatpush3.msra.mxu0 %v3003_v7  ;;  %v117_v7 = vld [vmem:[%s3961_s0 + $0x260] sm:$0xff] }
  0x6e   :  { %2417 = vmatprep.subr.mxu0 %v3025_v13  ;;  %2446 = vmatmul.mubr.f32.gmra.mxu1 %v82_v62  ;;  %v3365_v62 = vld [vmem:[%s3963_s3 + $0x28] sm:$0xff] }
  0x6f   :  { %642 = vmatmul.mubr.f32.gmra.mxu0 %v66_v56  ;;  %2448 = vmatprep.mubr.f32.mxu1 %v89_v63  ;;  %3984 = vst [vmem:[#allocation4_spill] sm:$0xff] %v3365_v62  ;;  %v3370_v63 = vld [vmem:[%s3963_s3 + $0x20] sm:$0xff] }
  0x70   :  { %646 = vmatprep.mubr.f32.mxu0 %v74_v59  ;;  %2418 = vmatpush3.msra.mxu0 %v3025_v13  ;;  %v109_v13 = vld [vmem:[%s3961_s0 + $0x220] sm:$0xff]  ;;  %3985 = vst [vmem:[#allocation5_spill] sm:$0xff] %v3370_v63 }
  0x71   :  { %2419 = vmatprep.subr.mxu0 %v3050_v20  ;;  %965 = vmatprep.subr.mxu1 %v3365_v62 }
  0x72   :  { %2420 = vmatpush3.msra.mxu0 %v3050_v20  ;;  %2449 = vmatmul.mubr.f32.gmra.mxu1 %v96_v2  ;;  %v123_v20 = vld [vmem:[%s3961_s0 + $0x290] sm:$0xff] }
  0x73   :  { %647 = vmatmul.mubr.f32.gmra.mxu0 %v73_v60  ;;  %2421 = vmatprep.subr.mxu0 %v3075_v28 }
  0x74   :  { %651 = vmatprep.mubr.f32.mxu0 %v81_v61  ;;  %2422 = vmatpush3.msra.mxu0 %v3075_v28  ;;  %v143_v28 = vld [vmem:[%s3961_s0 + $0x330] sm:$0xff] }
  0x75   :  { %2451 = vmatprep.mubr.f32.mxu1 %v103_v3  ;;  %2423 = vmatprep.subr.mxu0 %v3095_v33 }
  0x76   :  { %2424 = vmatpush3.msra.mxu0 %v3095_v33  ;;  %2452 = vmatmul.mubr.f32.gmra.mxu1 %v110_v6  ;;  %v3392_v6 = vld [vmem:[%s3963_s3 + $0x30] sm:$0xff] }
  0x77   :  { %652 = vmatmul.mubr.f32.gmra.mxu0 %v80_v0  ;;  %2425 = vmatprep.subr.mxu0 %v3114_v38  ;;  %v3375_v0 = vld [vmem:[%s3963_s3 + $0x8] sm:$0xff]  ;;  %3988 = vst [vmem:[#allocation8_spill] sm:$0xff] %v3392_v6 }
  0x78   :  { %656 = vmatprep.mubr.f32.mxu0 %v88_v1  ;;  %2426 = vmatpush3.msra.mxu0 %v3114_v38  ;;  %3986 = vst [vmem:[#allocation6_spill] sm:$0xff] %v3375_v0  ;;  %v3973_v1 = vmov 0.0  }
  0x79   :  { %2454 = vmatprep.mubr.f32.mxu1 %v117_v7  ;;  %2427 = vmatprep.subr.mxu0 %v3133_v44 }
  0x7a   :  { %2428 = vmatpush3.msra.mxu0 %v3133_v44  ;;  %2455 = vmatmul.mubr.f32.gmra.mxu1 %v124_v10  ;;  %v3403_v10 = vld [vmem:[%s3963_s3 + $0x10] sm:$0xff] }
  0x7b   :  { %657 = vmatmul.mubr.f32.gmra.mxu0 %v87_v4  ;;  %2429 = vmatprep.subr.mxu0 %v3146_v47  ;;  %v3384_v4 = vld [vmem:[%s3963_s3] sm:$0xff]  ;;  %3990 = vst [vmem:[#allocation10_spill] sm:$0xff] %v3403_v10 }
  0x7c   :  { %661 = vmatprep.mubr.f32.mxu0 %v95_v5  ;;  %2430 = vmatpush3.msra.mxu0 %v3146_v47  ;;  %3987 = vst [vmem:[#allocation7_spill] sm:$0xff] %v3384_v4  ;;  %v875_v5 = vld [vmem:[%s3963_s3 + $0x38] sm:$0xff] }
  0x7d   :  { %2457 = vmatprep.mubr.f32.mxu1 %v131_v11  ;;  %2431 = vmatprep.subr.mxu0 %v3155_v49 }
  0x7e   :  { %2432 = vmatpush3.msra.mxu0 %v3155_v49  ;;  %2458 = vmatmul.mubr.f32.gmra.mxu1 %v138_v14 }
  0x7f   :  { %662 = vmatmul.mubr.f32.gmra.mxu0 %v94_v8  ;;  %2433 = vmatprep.subr.mxu0 %v3166_v51 }
  0x80   :  { %666 = vmatprep.mubr.f32.mxu0 %v102_v9  ;;  %2434 = vmatpush3.msra.mxu0 %v3166_v51  ;;  %v3398_v9 = vld [vmem:[%s3963_s3 + $0x18] sm:$0xff] }
  0x81   :  { %2460 = vmatprep.mubr.f32.mxu1 %v145_v15  ;;  %2435 = vmatprep.subr.mxu0 %v3177_v52  ;;  %3989 = vst [vmem:[#allocation9_spill] sm:$0xff] %v3398_v9 }
  0x82   :  { %2436 = vmatpush3.msra.mxu0 %v3177_v52  ;;  %2461 = vmatmul.mubr.f32.gmra.mxu1 %v152_v18 }
  0x83   :  { %667 = vmatmul.mubr.f32.gmra.mxu0 %v101_v12  ;;  %2437 = vmatprep.subr.mxu0 %v3188_v54 }
  0x84   :  { %671 = vmatprep.mubr.f32.mxu0 %v109_v13  ;;  %2438 = vmatpush3.msra.mxu0 %v3188_v54 }
  0x85   :  { %1001 = vmatprep.mubr.f32.mxu1 %v3973_v1  ;;  %966 = vmatpush1.msra.mxu1 %v3370_v63 }
  0x86   :  { %1078 = vmatprep.subr.mxu0 %v875_v5  ;;  %967 = vmatprep.subr.mxu1 %v3375_v0 }
  0x87   :  { %672 = vmatmul.mubr.f32.gmra.mxu0 %v108_v16  ;;  %968 = vmatpush1.msra.mxu1 %v3384_v4 }
  0x88   :  { %676 = vmatprep.mubr.f32.mxu0 %v116_v17 }
  0x8b   :  { %677 = vmatmul.mubr.f32.gmra.mxu0 %v115_v19 }
  0x8c   :  { %681 = vmatprep.mubr.f32.mxu0 %v123_v20 }
  0x8f   :  { %682 = vmatmul.mubr.f32.gmra.mxu0 %v122_v21 }
  0x90   :  { %686 = vmatprep.mubr.f32.mxu0 %v130_v22 }
  0x93   :  { %687 = vmatmul.mubr.f32.gmra.mxu0 %v129_v23 }
  0x94   :  { %691 = vmatprep.mubr.f32.mxu0 %v137_v24 }
  0x97   :  { %692 = vmatmul.mubr.f32.gmra.mxu0 %v136_v25 }
  0x98   :  { %696 = vmatprep.mubr.f32.mxu0 %v144_v26 }
  0x9b   :  { %697 = vmatmul.mubr.f32.gmra.mxu0 %v143_v28 }
  0x9c   :  { %701 = vmatprep.mubr.f32.mxu0 %v151_v29 }
  0x9f   :  { %702 = vmatmul.mubr.f32.gmra.mxu0 %v150_v30 }
  0xa0   :  { %2439 = vmatprep.mubr.f32.mxu0 %v47_v31 }
  0xa3   :  { %2440 = vmatmul.mubr.f32.vlgmr.msra.gmra.mxu0 %v54_v32 }
  0xa4   :  { %1114 = vmatprep.mubr.f32.mxu0 %v3973_v1  ;;  %1079 = vmatpush1.msra.mxu0 %v3392_v6 }
  0xa5   :  { %1080 = vmatprep.subr.mxu0 %v3398_v9 }
  0xa6   :  { %1081 = vmatpush1.msra.mxu0 %v3403_v10 }
  0xa7   :  { %1435 = vmatprep.subr.mxu0 %v875_v5 }
  0xe2   :  { %v2047_v33 = vpop.f32.mrf.mxu0 }
  0xe4   :  { %v2048_v35 = vpop.f32.mrf.mxu0 }
  0xe5   :  { %v2049_v36 = vadd.f32 %v2048_v35, %v2047_v33  ;;  %v2127_v37 = vpop.f32.mrf.mxu1 }
  0xe7   :  { %v2050_v38 = vpop.f32.mrf.mxu0  ;;  %v339_v39 = vadd.f32 %v2049_v36, %v3351_v34  ;;  %v2128_v40 = vpop.f32.mrf.mxu1 }
  0xe8   :  { %v2129_v41 = vadd.f32 %v2128_v40, %v2127_v37 }
  0xe9   :  { %v2051_v43 = vpop.f32.mrf.mxu0  ;;  %v2130_v45 = vpop.f32.mrf.mxu1 }
  0xea   :  { %v2052_v44 = vadd.f32 %v2051_v43, %v2050_v38  ;;  %v3354_v46 = vadd.f32 %v2129_v41, %v339_v39 }
  0xeb   :  { %v2053_v47 = vpop.f32.mrf.mxu0  ;;  %v2131_v49 = vpop.f32.mrf.mxu1 }
  0xec   :  { %3982 = vst [vmem:[#allocation2_spill] sm:$0xff] %v3354_v46  ;;  %v344_v48 = vadd.f32 %v2052_v44, %v3351_v34  ;;  %v2132_v50 = vadd.f32 %v2131_v49, %v2130_v45 }
  0xed   :  { %v2054_v51 = vpop.f32.mrf.mxu0  ;;  %v2133_v52 = vpop.f32.mrf.mxu1 }
  0xee   :  { %v2055_v27 = vadd.f32 %v2054_v51, %v2053_v47  ;;  %v3357_v53 = vadd.f32 %v2132_v50, %v344_v48 }
  0xef   :  { %v2056_v54 = vpop.f32.mrf.mxu0  ;;  %v2134_v55 = vpop.f32.mrf.mxu1 }
  0xf0   :  { %3983 = vst [vmem:[#allocation3_spill] sm:$0xff] %v3357_v53  ;;  %v349_v42 = vadd.f32 %v2055_v27, %v3351_v34  ;;  %v2135_v56 = vadd.f32 %v2134_v55, %v2133_v52 }
  0xf1   :  { %v2057_v58 = vpop.f32.mrf.mxu0  ;;  %v2136_v57 = vpop.f32.mrf.mxu1 }
  0xf2   :  { %v2058_v59 = vadd.f32 %v2057_v58, %v2056_v54  ;;  %v3360_v60 = vadd.f32 %v2135_v56, %v349_v42 }
  0xf3   :  { %v2059_v61 = vpop.f32.mrf.mxu0  ;;  %v2137_v3 = vpop.f32.mrf.mxu1 }
  0xf4   :  { %v354_v2 = vadd.f32 %v2058_v59, %v3351_v34  ;;  %v2138_v7 = vadd.f32 %v2137_v3, %v2136_v57 }
  0xf5   :  { %v2060_v8 = vpop.f32.mrf.mxu0  ;;  %v2139_v12 = vpop.f32.mrf.mxu1 }
  0xf6   :  { %v2061_v11 = vadd.f32 %v2060_v8, %v2059_v61  ;;  %v3407_v13 = vadd.f32 %v2138_v7, %v354_v2 }
  0xf7   :  { %v2062_v14 = vpop.f32.mrf.mxu0  ;;  %v2140_v16 = vpop.f32.mrf.mxu1 }
  0xf8   :  { %v359_v15 = vadd.f32 %v2061_v11, %v3351_v34  ;;  %v2141_v17 = vadd.f32 %v2140_v16, %v2139_v12 }
  0xf9   :  { %v2063_v18 = vpop.f32.mrf.mxu0  ;;  %v2142_v20 = vpop.f32.mrf.mxu1 }
  0xfa   :  { %v2064_v19 = vadd.f32 %v2063_v18, %v2062_v14  ;;  %v3413_v21 = vadd.f32 %v2141_v17, %v359_v15 }
  0xfb   :  { %v2065_v22 = vpop.f32.mrf.mxu0  ;;  %v2143_v24 = vpop.f32.mrf.mxu1 }
  0xfc   :  { %3991 = vst [vmem:[#allocation11_spill] sm:$0xff] %v3413_v21  ;;  %v364_v23 = vadd.f32 %v2064_v19, %v3351_v34  ;;  %v2144_v25 = vadd.f32 %v2143_v24, %v2142_v20 }
  0xfd   :  { %v2066_v26 = vpop.f32.mrf.mxu0  ;;  %v3418_v29 = vpop.f32.mrf.mxu1 }
  0xfe   :  { %v3416_v28 = vadd.f32 %v2066_v26, %v2065_v22  ;;  %v3420_v30 = vadd.f32 %v2144_v25, %v364_v23 }
  0xff   :  { %v2068_v31 = vpop.f32.mrf.mxu0  ;;  %v2146_v32 = vpop.f32.mrf.mxu1 }
 0x100   :  { %3992 = vst [vmem:[#allocation12_spill] sm:$0xff] %v3420_v30  ;;  %v2147_v1 = vadd.f32 %v2146_v32, %v3418_v29 }
 0x101   :  { %v2069_v33 = vpop.f32.mrf.mxu0  ;;  %v2148_v36 = vpop.f32.mrf.mxu1 }
 0x102   :  { %v2070_v35 = vadd.f32 %v2069_v33, %v2068_v31 }
 0x103   :  { %v2071_v37 = vpop.f32.mrf.mxu0  ;;  %v2149_v38 = vpop.f32.mrf.mxu1 }
 0x104   :  { %v374_v62 = vadd.f32 %v2070_v35, %v3351_v34  ;;  %v2150_v10 = vadd.f32 %v2149_v38, %v2148_v36 }
 0x105   :  { %v2072_v39 = vpop.f32.mrf.mxu0  ;;  %v3424_v41 = vpop.f32.mrf.mxu1 }
 0x106   :  { %v3422_v40 = vadd.f32 %v2072_v39, %v2071_v37 }
 0x107   :  { %v2074_v43 = vpop.f32.mrf.mxu0  ;;  %v3426_v44 = vpop.f32.mrf.mxu1 }
 0x109   :  { %v2075_v45 = vpop.f32.mrf.mxu0  ;;  %v3430_v48 = vpop.f32.mrf.mxu1 }
 0x10a   :  { %v3428_v47 = vadd.f32 %v2075_v45, %v2074_v43 }
 0x10b   :  { %v2077_v49 = vpop.f32.mrf.mxu0  ;;  %v3432_v50 = vpop.f32.mrf.mxu1 }
 0x10d   :  { %v2078_v51 = vpop.f32.mrf.mxu0  ;;  %v3436_v52 = vpop.f32.mrf.mxu1 }
 0x10e   :  { %v3434_v27 = vadd.f32 %v2078_v51, %v2077_v49 }
 0x10f   :  { %v2080_v54 = vpop.f32.mrf.mxu0  ;;  %v3438_v42 = vpop.f32.mrf.mxu1 }
 0x111   :  { %v2081_v55 = vpop.f32.mrf.mxu0  ;;  %v3442_v58 = vpop.f32.mrf.mxu1 }
 0x112   :  { %v3440_v56 = vadd.f32 %v2081_v55, %v2080_v54 }
 0x113   :  { %v2083_v59 = vpop.f32.mrf.mxu0  ;;  %v3444_v57 = vpop.f32.mrf.mxu1 }
 0x115   :  { %v2084_v61 = vpop.f32.mrf.mxu0  ;;  %v3448_v3 = vpop.f32.mrf.mxu1 }
 0x116   :  { %v3446_v2 = vadd.f32 %v2084_v61, %v2083_v59 }
 0x117   :  { %v2086_v5 = vpop.f32.mrf.mxu0  ;;  %v3450_v7 = vpop.f32.mrf.mxu1 }
 0x119   :  { %v2087_v8 = vpop.f32.mrf.mxu0  ;;  %v3454_v12 = vpop.f32.mrf.mxu1 }
 0x11a   :  { %v3452_v11 = vadd.f32 %v2087_v8, %v2086_v5  ;;  %v369_v8 = vadd.f32 %v3416_v28, %v3351_v34 }
 0x11b   :  { %v3456_v14 = vpop.f32.mrf.mxu0  ;;  %v3458_v15 = vpop.f32.mrf.mxu1 }
 0x11c   :  { %v514_v6 = vadd.f32 %v2147_v1, %v369_v8 }
 0x11d   :  { %v3460_v16 = vpop.f32.mrf.mxu0  ;;  %v3464_v18 = vpop.f32.mrf.mxu1 }
 0x11f   :  { %v3462_v17 = vpop.f32.mrf.mxu0  ;;  %v3470_v22 = vpop.f32.mrf.mxu1 }
 0x121   :  { %v3466_v19 = vpop.f32.mrf.mxu0  ;;  %v3476_v25 = vpop.f32.mrf.mxu1 }
 0x123   :  { %v3468_v20 = vpop.f32.mrf.mxu0  ;;  %v3480_v33 = vpop.f32.mrf.mxu1 }
 0x124   :  { %3993 = vst [vmem:[#allocation13_spill] sm:$0xff] %v3468_v20 }
 0x125   :  { %v3472_v23 = vpop.f32.mrf.mxu0 }
 0x126   :  { %3994 = vst [vmem:[#allocation14_spill] sm:$0xff] %v3472_v23  ;;  %v519_v23 = vadd.f32 %v2150_v10, %v374_v62 }
 0x127   :  { %v3474_v24 = vpop.f32.mrf.mxu0 }
 0x129   :  { %v3478_v26 = vpop.f32.mrf.mxu0 }
 0x12a   :  { %v2444_v43 = vpop.f32.mrf.mxu1 }
 0x12b   :  { %v2213_v31 = vpop.f32.mrf.mxu0 }
 0x12c   :  { %v783_v49 = vpop.f32.mrf.mxu1 }
 0x12d   :  { %v2214_v37 = vpop.f32.mrf.mxu0 }
 0x12e   :  { %v3486_v55 = vpop.f32.mrf.mxu1  ;;  %v2215_v4 = vadd.f32 %v2214_v37, %v2213_v31 }
 0x12f   :  { %v2216_v39 = vpop.f32.mrf.mxu0  ;;  %3995 = vst [vmem:[#allocation15_spill] sm:$0xff] %v3486_v55 }
 0x130   :  { %v3492_v5 = vpop.f32.mrf.mxu1  ;;  %v639_v46 = vadd.f32 %v2215_v4, %v3360_v60 }
 0x131   :  { %v2217_v45 = vpop.f32.mrf.mxu0  ;;  %3996 = vst [vmem:[#allocation16_spill] sm:$0xff] %v3492_v5 }
 0x132   :  { %v2450_v63 = vpop.f32.mrf.mxu1  ;;  %v2218_v55 = vadd.f32 %v2217_v45, %v2216_v39  ;;  %v3500_v29 = vadd.f32 %v783_v49, %v639_v46  ;;  %v399_v39 = vadd.f32 %v3446_v2, %v3351_v34  ;;  %v2091_v49 = vadd.f32 %v3460_v16, %v3456_v14 }
 0x133   :  { %v3482_v51 = vpop.f32.mrf.mxu0  ;;  %v2168_v2 = vadd.f32 %v3458_v15, %v3454_v12  ;;  %v389_v14 = vadd.f32 %v3434_v27, %v3351_v34  ;;  %v2094_v12 = vadd.f32 %v3466_v19, %v3462_v17 }
 0x134   :  { %v803_v30 = vpop.f32.mrf.mxu1  ;;  %v644_v28 = vadd.f32 %v2218_v55, %v3407_v13  ;;  %v409_v16 = vadd.f32 %v2091_v49, %v3351_v34 }
 0x135   :  { %v3484_v54 = vpop.f32.mrf.mxu0  ;;  %v414_v17 = vadd.f32 %v2094_v12, %v3351_v34 }
 0x136   :  { %v3506_v60 = vadd.f32 %v2444_v43, %v644_v28  ;;  %v2453_v62 = vpop.f32.mrf.mxu1  ;;  %v2165_v43 = vadd.f32 %v3450_v7, %v3448_v3 }
 0x137   :  { %v3488_v59 = vpop.f32.mrf.mxu0 }
 0x138   :  { %v544_v7 = vadd.f32 %v2165_v43, %v399_v39  ;;  %v4004_v12 = vld [vmem:[#allocation16_spill] sm:$0xff] }
 0x139   :  { %v3490_v61 = vpop.f32.mrf.mxu0 }
 0x13a   :  { %v2224_v19 = vadd.f32 %v3490_v61, %v3488_v59  ;;  %v3998_v59 = vld [vmem:[#allocation14_spill] sm:$0xff] }
 0x13b   :  { %v2225_v0 = vpop.f32.mrf.mxu0 }
 0x13d   :  { %v2226_v9 = vpop.f32.mrf.mxu0 }
 0x13e   :  { %v2227_v53 = vadd.f32 %v2226_v9, %v2225_v0 }
 0x13f   :  { %v2228_v21 = vpop.f32.mrf.mxu0 }
 0x140   :  { %v659_v5 = vadd.f32 %v2227_v53, %v514_v6  ;;  %v813_v6 = vpop.f32.mrf.mxu1 }
 0x141   :  { %v2229_v20 = vpop.f32.mrf.mxu0 }
 0x142   :  { %v2230_v32 = vadd.f32 %v2229_v20, %v2228_v21  ;;  %v3502_v31 = vadd.f32 %v803_v30, %v659_v5  ;;  %v3512_v13 = vpop.f32.mrf.mxu1  ;;  %v379_v21 = vadd.f32 %v3422_v40, %v3351_v34  ;;  %v2153_v30 = vadd.f32 %v3426_v44, %v3424_v41 }
 0x143   :  { %v2231_v35 = vpop.f32.mrf.mxu0  ;;  %v384_v40 = vadd.f32 %v3428_v47, %v3351_v34  ;;  %v2156_v41 = vadd.f32 %v3432_v50, %v3430_v48  ;;  %v404_v44 = vadd.f32 %v3452_v11, %v3351_v34  ;;  %v2159_v47 = vadd.f32 %v3438_v42, %v3436_v52 }
 0x144   :  { %v664_v36 = vadd.f32 %v2230_v32, %v519_v23  ;;  %v854_v1 = vmax.f32 %v3500_v29, %v3502_v31  ;;  %v823_v37 = vpop.f32.mrf.mxu1  ;;  %v524_v45 = vadd.f32 %v2153_v30, %v379_v21  ;;  %v2171_v48 = vadd.f32 %v3470_v22, %v3464_v18  ;;  %v4006_v31 = vld [vmem:[#allocation8_spill] sm:$0xff] }
 0x145   :  { %v2232_v38 = vpop.f32.mrf.mxu0  ;;  %v534_v52 = vadd.f32 %v2159_v47, %v389_v14  ;;  %v394_v42 = vadd.f32 %v3440_v56, %v3351_v34  ;;  %v2162_v18 = vadd.f32 %v3444_v57, %v3442_v58  ;;  %v2221_v56 = vadd.f32 %v3484_v54, %v3482_v51  ;;  %v4002_v14 = vld [vmem:[#allocation2_spill] sm:$0xff] }
 0x146   :  { %v3508_v0 = vadd.f32 %v2450_v63, %v664_v36  ;;  %v2233_v63 = vadd.f32 %v2232_v38, %v2231_v35  ;;  %v2459_v5 = vpop.f32.mrf.mxu1  ;;  %v529_v35 = vadd.f32 %v2156_v41, %v384_v40  ;;  %v549_v36 = vadd.f32 %v2168_v2, %v404_v44  ;;  %v3997_v41 = vld [vmem:[#allocation13_spill] sm:$0xff] }
 0x147   :  { %v2234_v53 = vpop.f32.mrf.mxu0  ;;  %v554_v22 = vadd.f32 %v2171_v48, %v409_v16  ;;  %v539_v40 = vadd.f32 %v2162_v18, %v394_v42  ;;  %v2209_v61 = vadd.f32 %v3998_v59, %v3997_v41  ;;  %v4005_v29 = vmov 0.0  }
 0x148   :  { %v855_v4 = vmax.f32 %v3506_v60, %v3508_v0  ;;  %v669_v8 = vadd.f32 %v2233_v63, %v524_v45  ;;  %v833_v11 = vpop.f32.mrf.mxu1  ;;  %v4007_v60 = vld [vmem:[#allocation9_spill] sm:$0xff]  ;;  %v4008_v0 = vld [vmem:[#allocation10_spill] sm:$0xff] }
 0x149   :  { %v2235_v46 = vpop.f32.mrf.mxu0  ;;  %v629_v47 = vadd.f32 %v2209_v61, %v4002_v14 }
 0x14a   :  { %v2236_v28 = vadd.f32 %v2235_v46, %v2234_v53  ;;  %v814_v38 = vadd.f32 %v813_v6, %v669_v8  ;;  %v2462_v39 = vpop.f32.mrf.mxu1  ;;  %v3999_v8 = vld [vmem:[#allocation12_spill] sm:$0xff] }
 0x14b   :  { %v2237_v9 = vpop.f32.mrf.mxu0 }
 0x14c   :  { %v674_v46 = vadd.f32 %v2236_v28, %v529_v35  ;;  %v843_v2 = vpop.f32.mrf.mxu1 }
 0x14d   :  { %v2238_v10 = vpop.f32.mrf.mxu0 }
 0x14e   :  { %v2239_v27 = vadd.f32 %v2238_v10, %v2237_v9  ;;  %v2174_v9 = vadd.f32 %v3480_v33, %v3476_v25  ;;  %v2212_v10 = vadd.f32 %v3478_v26, %v3474_v24  ;;  %v819_v45 = vadd.f32 %v2453_v62, %v674_v46  ;;  %v4000_v26 = vld [vmem:[#allocation11_spill] sm:$0xff] }
 0x14f   :  { %v2240_v20 = vpop.f32.mrf.mxu0  ;;  %v654_v25 = vadd.f32 %v2224_v19, %v3999_v8 }
 0x150   :  { %v679_v49 = vadd.f32 %v2239_v27, %v534_v52  ;;  %v559_v24 = vadd.f32 %v2174_v9, %v414_v17 }
 0x151   :  { %v2241_v23 = vpop.f32.mrf.mxu0 }
 0x152   :  { %v2242_v58 = vadd.f32 %v2241_v23, %v2240_v20  ;;  %v824_v20 = vadd.f32 %v823_v37, %v679_v49 }
 0x153   :  { %v2243_v55 = vpop.f32.mrf.mxu0 }
 0x154   :  { %v684_v51 = vadd.f32 %v2242_v58, %v539_v40 }
 0x155   :  { %v2244_v3 = vpop.f32.mrf.mxu0 }
 0x156   :  { %v2245_v32 = vadd.f32 %v2244_v3, %v2243_v55 }
 0x157   :  { %v2246_v50 = vpop.f32.mrf.mxu0 }
 0x158   :  { %v689_v15 = vadd.f32 %v2245_v32, %v544_v7  ;;  %v649_v7 = vadd.f32 %v2221_v56, %v4000_v26  ;;  %v3606_v56 = vld [vmem:[%s3964_s5 + $0x8] sm:$0xff] }
 0x159   :  { %v2247_v53 = vpop.f32.mrf.mxu0 }
 0x15a   :  { %v2248_v21 = vadd.f32 %v2247_v53, %v2246_v50  ;;  %v834_v30 = vadd.f32 %v833_v11, %v689_v15  ;;  %v4003_v50 = vld [vmem:[#allocation15_spill] sm:$0xff]  ;;  %v794_v15 = vadd.f32 %v4004_v12, %v649_v7 }
 0x15b   :  { %v2249_v63 = vpop.f32.mrf.mxu0  ;;  %v799_v11 = vadd.f32 %v4003_v50, %v654_v25 }
 0x15c   :  { %v694_v6 = vadd.f32 %v2248_v21, %v549_v36  ;;  %v856_v43 = vmax.f32 %v814_v38, %v834_v30  ;;  %v829_v36 = vadd.f32 %v3512_v13, %v684_v51 }
 0x15d   :  { %v2250_v57 = vpop.f32.mrf.mxu0 }
 0x15e   :  { %v839_v55 = vadd.f32 %v2459_v5, %v694_v6  ;;  %v2251_v34 = vadd.f32 %v2250_v57, %v2249_v63  ;;  %v4001_v5 = vld [vmem:[#allocation3_spill] sm:$0xff] }
 0x15f   :  { %v2252_v44 = vpop.f32.mrf.mxu0  ;;  %v634_v28 = vadd.f32 %v2212_v10, %v4001_v5 }
 0x160   :  { %v699_v33 = vadd.f32 %v2251_v34, %v554_v22  ;;  %v857_v3 = vmax.f32 %v819_v45, %v839_v55 }
 0x161   :  { %v2253_v54 = vpop.f32.mrf.mxu0 }
 0x162   :  { %v2254_v62 = vadd.f32 %v2253_v54, %v2252_v44  ;;  %v844_v23 = vadd.f32 %v843_v2, %v699_v33 }
 0x163   :  { %v2441_v32 = vpop.f32.mrf.mxu0 }
 0x164   :  { %v704_v16 = vadd.f32 %v2254_v62, %v559_v24  ;;  %v779_v48 = vadd.f32 %v2441_v32, %v634_v28  ;;  %v858_v35 = vmax.f32 %v824_v20, %v844_v23 }
 0x165   :  { %v773_v38 = vpop.f32.mrf.mxu0 }
 0x166   :  { %v849_v53 = vadd.f32 %v2462_v39, %v704_v16  ;;  %v853_v46 = vmax.f32 %v779_v48, %v799_v11  ;;  %v774_v37 = vadd.f32 %v773_v38, %v629_v47  ;;  %v862_v27 = vmax.f32 %v854_v1, %v858_v35 }
 0x168   :  { %v866_v21 = vmax.f32 %v862_v27, 0.0  ;;  %v859_v30 = vmax.f32 %v829_v36, %v849_v53  ;;  %v852_v52 = vmax.f32 %v774_v37, %v794_v15  ;;  %v861_v42 = vmax.f32 %v853_v46, %v857_v3  ;;  %v3654_v37 = vld [vmem:[%s3964_s5] sm:$0xff]  ;;  %v3659_v27 = vld [vmem:[%s3964_s5 + $0x18] sm:$0xff] }
 0x16a   :  { %1238 = vxpose.xlu1.b32.start [1/2] (short) (narrow) %v866_v21, 64  ;;  %v863_v18 = vmax.f32 %v855_v4, %v859_v30  ;;  %v860_v22 = vmax.f32 %v852_v52, %v856_v43  ;;  %v865_v39 = vmax.f32 %v861_v42, 0.0  ;;  %v4009_v21 = vld [vmem:[#allocation4_spill] sm:$0xff]  ;;  %v4010_v30 = vld [vmem:[#allocation5_spill] sm:$0xff]  ;;  %v4011_v42 = vld [vmem:[#allocation6_spill] sm:$0xff] }
 0x16b   :  { %v3669_v52 = vld [vmem:[%s3964_s5 + $0x10] sm:$0xff] }
 0x16c   :  { %v867_v63 = vmax.f32 %v863_v18, 0.0  ;;  %v864_v13 = vmax.f32 %v860_v22, 0.0  ;;  %v4012_v18 = vld [vmem:[#allocation7_spill] sm:$0xff] }
 0x16e   :  { %1239 = vxpose.xlu1.b32.end [2/2] (short) (narrow) %v867_v63, 64  ;;  %880 = vxpose.xlu0.b32.start [1/2] (short) (narrow) %v864_v13, 64 }
 0x172   :  { %881 = vxpose.xlu0.b32.end [2/2] (short) (narrow) %v865_v39, 64 }
 0x1e6   :  { %v3609_v58 = vpop.trf.xlu1 }
 0x1ea   :  { %v896_v17 = vpop.trf.xlu0  ;;  %v3614_v57 = vpop.trf.xlu1 }
 0x1eb   :  { %1979 = vmatmul.mubr.msk.f32.vlgmr.msra.gmra.mxu1 %vm912_vm0, %v896_v17  ;;  %1987 = vmatmul.mubr.msk.f32.vlgmr.msra.gmra.mxu0 %vm912_vm0, %v896_v17 }
 0x1ec   :  { %1007 = vmatprep.mubr.f32.mxu1 %v4005_v29  ;;  %1120 = vmatprep.mubr.f32.mxu0 %v4005_v29 }
 0x1ed   :  { %1436 = vmatpush1.msra.mxu0 %v4006_v31 }
 0x1ee   :  { %v897_v1 = vpop.trf.xlu0  ;;  %1437 = vmatprep.subr.mxu0 %v4007_v60  ;;  %v3619_v45 = vpop.trf.xlu1 }
 0x1ef   :  { %1980 = vmatmul.mubr.msk.f32.gmra.mxu1 %vm912_vm0, %v897_v1  ;;  %1988 = vmatmul.mubr.msk.f32.gmra.mxu0 %vm912_vm0, %v897_v1 }
 0x1f0   :  { %1013 = vmatprep.mubr.f32.mxu1 %v4005_v29  ;;  %1126 = vmatprep.mubr.f32.mxu0 %v4005_v29 }
 0x1f1   :  { %1438 = vmatpush1.msra.mxu0 %v4008_v0 }
 0x1f2   :  { %v898_v4 = vpop.trf.xlu0  ;;  %v3624_v49 = vpop.trf.xlu1 }
 0x1f3   :  { %1981 = vmatmul.mubr.msk.f32.gmra.mxu1 %vm912_vm0, %v898_v4  ;;  %1989 = vmatmul.mubr.msk.f32.gmra.mxu0 %vm912_vm0, %v898_v4 }
 0x1f4   :  { %1019 = vmatprep.mubr.f32.mxu1 %v4005_v29  ;;  %1132 = vmatprep.mubr.f32.mxu0 %v4005_v29 }
 0x1f6   :  { %v899_v19 = vpop.trf.xlu0  ;;  %v3629_v55 = vpop.trf.xlu1 }
 0x1f7   :  { %1982 = vmatmul.mubr.msk.f32.gmra.mxu1 %vm912_vm0, %v899_v19  ;;  %1990 = vmatmul.mubr.msk.f32.gmra.mxu0 %vm912_vm0, %v899_v19 }
 0x1f8   :  { %1025 = vmatprep.mubr.f32.mxu1 %v4005_v29  ;;  %1138 = vmatprep.mubr.f32.mxu0 %v4005_v29 }
 0x1fa   :  { %v900_v6 = vpop.trf.xlu0  ;;  %v3634_v34 = vpop.trf.xlu1 }
 0x1fb   :  { %1983 = vmatmul.mubr.msk.f32.gmra.mxu1 %vm912_vm0, %v900_v6  ;;  %1991 = vmatmul.mubr.msk.f32.gmra.mxu0 %vm912_vm0, %v900_v6 }
 0x1fc   :  { %1031 = vmatprep.mubr.f32.mxu1 %v4005_v29  ;;  %1144 = vmatprep.mubr.f32.mxu0 %v4005_v29 }
 0x1fe   :  { %v901_v43 = vpop.trf.xlu0  ;;  %v3639_v40 = vpop.trf.xlu1 }
 0x1ff   :  { %1984 = vmatmul.mubr.msk.f32.gmra.mxu1 %vm912_vm0, %v901_v43  ;;  %1992 = vmatmul.mubr.msk.f32.gmra.mxu0 %vm912_vm0, %v901_v43 }
 0x200   :  { %1037 = vmatprep.mubr.f32.mxu1 %v4005_v29  ;;  %1150 = vmatprep.mubr.f32.mxu0 %v4005_v29 }
 0x202   :  { %v902_v9 = vpop.trf.xlu0  ;;  %v3644_v41 = vpop.trf.xlu1 }
 0x203   :  { %1985 = vmatmul.mubr.msk.f32.gmra.mxu1 %vm912_vm0, %v902_v9  ;;  %1993 = vmatmul.mubr.msk.f32.gmra.mxu0 %vm912_vm0, %v902_v9 }
 0x204   :  { %1043 = vmatprep.mubr.f32.mxu1 %v4005_v29  ;;  %1156 = vmatprep.mubr.f32.mxu0 %v4005_v29 }
 0x206   :  { %v903_v10 = vpop.trf.xlu0 }
 0x207   :  { %1986 = vmatmul.mubr.msk.f32.gmra.mxu1 %vm912_vm0, %v903_v10  ;;  %1994 = vmatmul.mubr.msk.f32.gmra.mxu0 %vm912_vm0, %v903_v10 }
 0x208   :  { %1471 = vmatprep.mubr.f32.mxu0 %v4005_v29  ;;  %1227 = vmatprep.mubr.f32.mxu1 %v3606_v56 }
 0x20b   :  { %2003 = vmatmul.mubr.msk.f32.vlgmr.msra.gmra.mxu0 %vm912_vm0, %v3609_v58 }
 0x20c   :  { %1477 = vmatprep.mubr.f32.mxu0 %v4005_v29 }
 0x20f   :  { %2004 = vmatmul.mubr.msk.f32.gmra.mxu0 %vm912_vm0, %v3614_v57 }
 0x210   :  { %1483 = vmatprep.mubr.f32.mxu0 %v4005_v29 }
 0x213   :  { %2005 = vmatmul.mubr.msk.f32.gmra.mxu0 %vm912_vm0, %v3619_v45 }
 0x214   :  { %1489 = vmatprep.mubr.f32.mxu0 %v4005_v29 }
 0x217   :  { %2006 = vmatmul.mubr.msk.f32.gmra.mxu0 %vm912_vm0, %v3624_v49 }
 0x218   :  { %1495 = vmatprep.mubr.f32.mxu0 %v4005_v29 }
 0x21b   :  { %2007 = vmatmul.mubr.msk.f32.gmra.mxu0 %vm912_vm0, %v3629_v55 }
 0x21c   :  { %1501 = vmatprep.mubr.f32.mxu0 %v4005_v29 }
 0x21f   :  { %2008 = vmatmul.mubr.msk.f32.gmra.mxu0 %vm912_vm0, %v3634_v34 }
 0x220   :  { %1507 = vmatprep.mubr.f32.mxu0 %v4005_v29 }
 0x223   :  { %2009 = vmatmul.mubr.msk.f32.gmra.mxu0 %vm912_vm0, %v3639_v40 }
 0x224   :  { %1513 = vmatprep.mubr.f32.mxu0 %v4005_v29 }
 0x227   :  { %2010 = vmatmul.mubr.msk.f32.gmra.mxu0 %vm912_vm0, %v3644_v41 }
 0x228   :  { %1777 = vmatprep.mubr.f32.mxu0 %v4005_v29 }
 0x2ab   :  { %v3649_v59 = vpop.f32.mrf.mxu1  ;;  %v1116_v61 = vpop.f32.mrf.mxu0 }
 0x2ad   :  { %v1005_v44 = vpop.f32.mrf.mxu1  ;;  %v1118_v2 = vpop.f32.mrf.mxu0 }
 0x2af   :  { %v1009_v8 = vpop.f32.mrf.mxu1  ;;  %v1122_v25 = vpop.f32.mrf.mxu0 }
 0x2b1   :  { %v1011_v33 = vpop.f32.mrf.mxu1  ;;  %v1124_v3 = vpop.f32.mrf.mxu0 }
 0x2b3   :  { %v1015_v24 = vpop.f32.mrf.mxu1  ;;  %v1128_v26 = vpop.f32.mrf.mxu0 }
 0x2b5   :  { %v1017_v7 = vpop.f32.mrf.mxu1  ;;  %v1130_v51 = vpop.f32.mrf.mxu0 }
 0x2b7   :  { %v1021_v54 = vpop.f32.mrf.mxu1  ;;  %v1134_v20 = vpop.f32.mrf.mxu0 }
 0x2b9   :  { %v1023_v62 = vpop.f32.mrf.mxu1  ;;  %v1136_v23 = vpop.f32.mrf.mxu0 }
 0x2bb   :  { %v1027_v5 = vpop.f32.mrf.mxu1  ;;  %v1140_v28 = vpop.f32.mrf.mxu0 }
 0x2bd   :  { %v1029_v32 = vpop.f32.mrf.mxu1  ;;  %v1142_v14 = vpop.f32.mrf.mxu0 }
 0x2bf   :  { %v1033_v47 = vpop.f32.mrf.mxu1  ;;  %v1146_v16 = vpop.f32.mrf.mxu0 }
 0x2c1   :  { %v1035_v48 = vpop.f32.mrf.mxu1  ;;  %v1148_v50 = vpop.f32.mrf.mxu0 }
 0x2c3   :  { %v1039_v11 = vpop.f32.mrf.mxu1  ;;  %v1152_v35 = vpop.f32.mrf.mxu0 }
 0x2c5   :  { %v1041_v12 = vpop.f32.mrf.mxu1  ;;  %v1154_v15 = vpop.f32.mrf.mxu0 }
 0x2c7   :  { %v1045_v36 = vpop.f32.mrf.mxu1  ;;  %v1158_v38 = vpop.f32.mrf.mxu0 }
 0x2c9   :  { %v1047_v53 = vpop.f32.mrf.mxu1  ;;  %v1160_v46 = vpop.f32.mrf.mxu0 }
 0x2ca   :  { %2287 = vmatprep.subr.mxu1 %v1160_v46  ;;  %v1692_v46 = vld [vmem:[%s3966_s8 + $0xb8] sm:$0xff] }
 0x2cb   :  { %2288 = vmatpush3.msra.mxu1 %v1047_v53  ;;  %v3699_v22 = vpop.f32.mrf.mxu0  ;;  %v1693_v53 = vld [vmem:[%s3966_s8 + $0xc0] sm:$0xff] }
 0x2cc   :  { %2289 = vmatprep.subr.mxu1 %v1154_v15  ;;  %v1696_v15 = vld [vmem:[%s3966_s8 + $0xd8] sm:$0xff] }
 0x2cd   :  { %2290 = vmatpush3.msra.mxu1 %v1041_v12  ;;  %v1475_v63 = vpop.f32.mrf.mxu0  ;;  %v1697_v12 = vld [vmem:[%s3966_s8 + $0xe0] sm:$0xff] }
 0x2ce   :  { %2291 = vmatprep.subr.mxu1 %v1148_v50  ;;  %v1700_v50 = vld [vmem:[%s3966_s8 + $0xf8] sm:$0xff] }
 0x2cf   :  { %2292 = vmatpush3.msra.mxu1 %v1035_v48  ;;  %v3701_v13 = vpop.f32.mrf.mxu0  ;;  %1713 = vmatprep.subr.mxu0 %v1700_v50 }
 0x2d0   :  { %2293 = vmatprep.subr.mxu1 %v1142_v14 }
 0x2d1   :  { %2294 = vmatpush3.msra.mxu1 %v1029_v32  ;;  %v1481_v39 = vpop.f32.mrf.mxu0 }
 0x2d2   :  { %2295 = vmatprep.subr.mxu1 %v1136_v23 }
 0x2d3   :  { %2296 = vmatpush3.msra.mxu1 %v1023_v62  ;;  %v3703_v17 = vpop.f32.mrf.mxu0 }
 0x2d4   :  { %2297 = vmatprep.subr.mxu1 %v1130_v51 }
 0x2d5   :  { %2298 = vmatpush3.msra.mxu1 %v1017_v7  ;;  %v1487_v31 = vpop.f32.mrf.mxu0 }
 0x2d6   :  { %2299 = vmatprep.subr.mxu1 %v1124_v3 }
 0x2d7   :  { %2300 = vmatpush3.msra.mxu1 %v1011_v33  ;;  %v3705_v1 = vpop.f32.mrf.mxu0 }
 0x2d8   :  { %2301 = vmatprep.subr.mxu1 %v1118_v2 }
 0x2d9   :  { %2302 = vmatpush3.msra.mxu1 %v1005_v44  ;;  %v1493_v60 = vpop.f32.mrf.mxu0 }
 0x2da   :  { %2303 = vmatprep.subr.mxu1 %v1158_v38  ;;  %v1694_v38 = vld [vmem:[%s3966_s8 + $0xc8] sm:$0xff] }
 0x2db   :  { %2304 = vmatpush3.msra.mxu1 %v1045_v36  ;;  %v1497_v0 = vpop.f32.mrf.mxu0  ;;  %v1695_v36 = vld [vmem:[%s3966_s8 + $0xd0] sm:$0xff] }
 0x2dc   :  { %2305 = vmatprep.subr.mxu1 %v1152_v35  ;;  %v1698_v35 = vld [vmem:[%s3966_s8 + $0xe8] sm:$0xff] }
 0x2dd   :  { %2306 = vmatpush3.msra.mxu1 %v1039_v11  ;;  %v1499_v4 = vpop.f32.mrf.mxu0  ;;  %v1699_v11 = vld [vmem:[%s3966_s8 + $0xf0] sm:$0xff] }
 0x2de   :  { %2307 = vmatprep.subr.mxu1 %v1146_v16  ;;  %1714 = vmatpush1.msra.mxu0 %v1699_v11 }
 0x2df   :  { %2308 = vmatpush3.msra.mxu1 %v1033_v47  ;;  %v1503_v19 = vpop.f32.mrf.mxu0  ;;  %1715 = vmatprep.subr.mxu0 %v1698_v35 }
 0x2e0   :  { %2309 = vmatprep.subr.mxu1 %v1140_v28  ;;  %1716 = vmatpush1.msra.mxu0 %v1697_v12 }
 0x2e1   :  { %2310 = vmatpush3.msra.mxu1 %v1027_v5  ;;  %v1505_v6 = vpop.f32.mrf.mxu0  ;;  %1717 = vmatprep.subr.mxu0 %v1696_v15 }
 0x2e2   :  { %2311 = vmatprep.subr.mxu1 %v1134_v20  ;;  %1718 = vmatpush1.msra.mxu0 %v1695_v36 }
 0x2e3   :  { %2312 = vmatpush3.msra.mxu1 %v1021_v54  ;;  %v1509_v43 = vpop.f32.mrf.mxu0  ;;  %1719 = vmatprep.subr.mxu0 %v1694_v38 }
 0x2e4   :  { %2313 = vmatprep.subr.mxu1 %v1128_v26  ;;  %1720 = vmatpush1.msra.mxu0 %v1693_v53 }
 0x2e5   :  { %2314 = vmatpush3.msra.mxu1 %v1015_v24  ;;  %v1511_v9 = vpop.f32.mrf.mxu0  ;;  %1721 = vmatprep.subr.mxu0 %v1692_v46 }
 0x2e6   :  { %2315 = vmatprep.subr.mxu1 %v1122_v25 }
 0x2e7   :  { %2316 = vmatpush3.msra.mxu1 %v1009_v8  ;;  %v1515_v10 = vpop.f32.mrf.mxu0 }
 0x2e8   :  { %2317 = vmatprep.subr.mxu1 %v1116_v61 }
 0x2e9   :  { %2318 = vmatpush3.msra.mxu1 %v3649_v59 }
 0x2ea   :  { %1228 = vmatmul.mubr.f32.vlgmr.msra.gmra.mxu1 %v3654_v37  ;;  %1322 = vmatprep.subr.mxu1 %v4009_v21  ;;  %v1689_v21 = vld [vmem:[%s3966_s8 + $0xa0] sm:$0xff] }
 0x2eb   :  { %1323 = vmatpush1.msra.mxu1 %v4010_v30  ;;  %1232 = vmatprep.mubr.f32.mxu1 %v3659_v27  ;;  %v1688_v30 = vld [vmem:[%s3966_s8 + $0x98] sm:$0xff] }
 0x2ec   :  { %1324 = vmatprep.subr.mxu1 %v4011_v42  ;;  %v1686_v42 = vld [vmem:[%s3966_s8 + $0x88] sm:$0xff] }
 0x2ed   :  { %1325 = vmatpush1.msra.mxu1 %v4012_v18  ;;  %v1685_v18 = vld [vmem:[%s3966_s8 + $0x80] sm:$0xff] }
 0x2ee   :  { %1233 = vmatmul.mubr.f32.gmra.mxu1 %v3669_v52 }
 0x2ef   :  { %1358 = vmatprep.mubr.f32.mxu1 %v4005_v29 }
 0x2f2   :  { %1995 = vmatmul.mubr.msk.f32.vlgmr.msra.gmra.mxu1 %vm912_vm0, %v3609_v58 }
 0x2f3   :  { %1364 = vmatprep.mubr.f32.mxu1 %v4005_v29 }
 0x2f6   :  { %1996 = vmatmul.mubr.msk.f32.gmra.mxu1 %vm912_vm0, %v3614_v57 }
 0x2f7   :  { %1370 = vmatprep.mubr.f32.mxu1 %v4005_v29 }
 0x2fa   :  { %1997 = vmatmul.mubr.msk.f32.gmra.mxu1 %vm912_vm0, %v3619_v45  ;;  %v3710_v45 = vld [vmem:[%s3965_s4] ss:$0 sm:$0xff] }
 0x2fb   :  { %1376 = vmatprep.mubr.f32.mxu1 %v4005_v29 }
 0x2fe   :  { %1998 = vmatmul.mubr.msk.f32.gmra.mxu1 %vm912_vm0, %v3624_v49 }
 0x2ff   :  { %1382 = vmatprep.mubr.f32.mxu1 %v4005_v29 }
 0x302   :  { %1999 = vmatmul.mubr.msk.f32.gmra.mxu1 %vm912_vm0, %v3629_v55 }
 0x303   :  { %1388 = vmatprep.mubr.f32.mxu1 %v4005_v29 }
 0x306   :  { %2000 = vmatmul.mubr.msk.f32.gmra.mxu1 %vm912_vm0, %v3634_v34 }
 0x307   :  { %1394 = vmatprep.mubr.f32.mxu1 %v4005_v29 }
 0x30a   :  { %2001 = vmatmul.mubr.msk.f32.gmra.mxu1 %vm912_vm0, %v3639_v40 }
 0x30b   :  { %1400 = vmatprep.mubr.f32.mxu1 %v4005_v29 }
 0x30e   :  { %2002 = vmatmul.mubr.msk.f32.gmra.mxu1 %vm912_vm0, %v3644_v41 }
 0x30f   :  { %1584 = vmatprep.mubr.f32.mxu1 %v3606_v56  ;;  %v1517_v56 = vpop.f32.mrf.mxu0 }
 0x310   :  { %2325 = vmatprep.subr.mxu1 %v1517_v56  ;;  %v1669_v56 = vld [vmem:[%s3966_s8] sm:$0xff] }
 0x3aa   :  { %v2319_v58 = vpop.f32.mrf.mxu1 }
 0x3ac   :  { %v2320_v57 = vpop.f32.mrf.mxu1 }
 0x3ad   :  { %v2321_v49 = vadd.f32 %v2320_v57, %v2319_v58  ;;  %v1841_v58 = vld [vmem:[%s3967_s10 + $0xf8] sm:$0xff] }
 0x3ae   :  { %v2322_v55 = vpop.f32.mrf.mxu1  ;;  %v1825_v57 = vld [vmem:[%s3967_s10 + $0x78] sm:$0xff] }
 0x3af   :  { %v1602_v34 = vadd.f32 %v2321_v49, %v3710_v45  ;;  %v1840_v49 = vld [vmem:[%s3967_s10 + $0xf0] sm:$0xff] }
 0x3b0   :  { %v2323_v40 = vpop.f32.mrf.mxu1 }
 0x3b1   :  { %v2324_v41 = vadd.f32 %v2323_v40, %v2322_v55  ;;  %v3713_v61 = vmax.f32 %v1602_v34, 0.0  ;;  %v1824_v55 = vld [vmem:[%s3967_s10 + $0x70] sm:$0xff]  ;;  %v1839_v34 = vld [vmem:[%s3967_s10 + $0xe8] sm:$0xff] }
 0x3b2   :  { %v1360_v59 = vpop.f32.mrf.mxu1  ;;  %v1823_v40 = vld [vmem:[%s3967_s10 + $0x68] sm:$0xff] }
 0x3b3   :  { %v1603_v44 = vadd.f32 %v2324_v41, %v3710_v45  ;;  %v1621_v33 = vmul.f32 %v3713_v61, %v3713_v61  ;;  %v1838_v41 = vld [vmem:[%s3967_s10 + $0xe0] sm:$0xff] }
 0x3b4   :  { %v1362_v2 = vpop.f32.mrf.mxu1 }
 0x3b5   :  { %v3716_v8 = vmax.f32 %v1603_v44, 0.0  ;;  %v1837_v44 = vld [vmem:[%s3967_s10 + $0xd8] sm:$0xff] }
 0x3b6   :  { %v1366_v25 = vpop.f32.mrf.mxu1 }
 0x3b7   :  { %v3722_v3 = vadd.f32 %v3716_v8, %v3713_v61  ;;  %v1622_v24 = vmul.f32 %v3716_v8, %v3716_v8 }
 0x3b8   :  { %v1368_v26 = vpop.f32.mrf.mxu1 }
 0x3b9   :  { %v3726_v7 = vadd.f32 %v1622_v24, %v1621_v33  ;;  %v1820_v33 = vld [vmem:[%s3967_s10 + $0x50] sm:$0xff]  ;;  %v1835_v24 = vld [vmem:[%s3967_s10 + $0xc8] sm:$0xff] }
 0x3ba   :  { %v1372_v51 = vpop.f32.mrf.mxu1 }
 0x3bc   :  { %v1374_v54 = vpop.f32.mrf.mxu1 }
 0x3be   :  { %v1378_v20 = vpop.f32.mrf.mxu1 }
 0x3c0   :  { %v1380_v62 = vpop.f32.mrf.mxu1 }
 0x3c2   :  { %v1384_v23 = vpop.f32.mrf.mxu1 }
 0x3c4   :  { %v1386_v5 = vpop.f32.mrf.mxu1 }
 0x3c6   :  { %v1390_v28 = vpop.f32.mrf.mxu1 }
 0x3c8   :  { %v1392_v32 = vpop.f32.mrf.mxu1 }
 0x3ca   :  { %v1396_v14 = vpop.f32.mrf.mxu1 }
 0x3cc   :  { %v1398_v47 = vpop.f32.mrf.mxu1 }
 0x3ce   :  { %v1402_v16 = vpop.f32.mrf.mxu1 }
 0x3d0   :  { %v1404_v48 = vpop.f32.mrf.mxu1 }
 0x3d1   :  { %2326 = vmatpush3.msra.mxu1 %v1404_v48 }
 0x3d2   :  { %2327 = vmatprep.subr.mxu1 %v1511_v9  ;;  %v1671_v9 = vld [vmem:[%s3966_s8 + $0x10] sm:$0xff] }
 0x3d3   :  { %2328 = vmatpush3.msra.mxu1 %v1398_v47  ;;  %v1814_v47 = vld [vmem:[%s3967_s10 + $0x20] sm:$0xff] }
 0x3d4   :  { %2329 = vmatprep.subr.mxu1 %v1505_v6  ;;  %v1673_v6 = vld [vmem:[%s3966_s8 + $0x20] sm:$0xff] }
 0x3d5   :  { %2330 = vmatpush3.msra.mxu1 %v1392_v32  ;;  %v1815_v32 = vld [vmem:[%s3967_s10 + $0x28] sm:$0xff] }
 0x3d6   :  { %2331 = vmatprep.subr.mxu1 %v1499_v4  ;;  %v1675_v4 = vld [vmem:[%s3966_s8 + $0x30] sm:$0xff] }
 0x3d7   :  { %2332 = vmatpush3.msra.mxu1 %v1386_v5  ;;  %v1816_v5 = vld [vmem:[%s3967_s10 + $0x30] sm:$0xff] }
 0x3d8   :  { %2333 = vmatprep.subr.mxu1 %v1493_v60  ;;  %v1677_v60 = vld [vmem:[%s3966_s8 + $0x40] sm:$0xff] }
 0x3d9   :  { %2334 = vmatpush3.msra.mxu1 %v1380_v62  ;;  %v1817_v62 = vld [vmem:[%s3967_s10 + $0x38] sm:$0xff] }
 0x3da   :  { %2335 = vmatprep.subr.mxu1 %v1487_v31  ;;  %v1679_v31 = vld [vmem:[%s3966_s8 + $0x50] sm:$0xff] }
 0x3db   :  { %2336 = vmatpush3.msra.mxu1 %v1374_v54  ;;  %v1818_v54 = vld [vmem:[%s3967_s10 + $0x40] sm:$0xff] }
 0x3dc   :  { %2337 = vmatprep.subr.mxu1 %v1481_v39  ;;  %v1681_v39 = vld [vmem:[%s3966_s8 + $0x60] sm:$0xff] }
 0x3dd   :  { %2338 = vmatpush3.msra.mxu1 %v1368_v26  ;;  %v1819_v26 = vld [vmem:[%s3967_s10 + $0x48] sm:$0xff] }
 0x3de   :  { %2339 = vmatprep.subr.mxu1 %v1475_v63  ;;  %v1683_v63 = vld [vmem:[%s3966_s8 + $0x70] sm:$0xff] }
 0x3df   :  { %2340 = vmatpush3.msra.mxu1 %v1362_v2  ;;  %v1821_v2 = vld [vmem:[%s3967_s10 + $0x58] sm:$0xff] }
 0x3e0   :  { %2341 = vmatprep.subr.mxu1 %v1515_v10  ;;  %v1670_v10 = vld [vmem:[%s3966_s8 + $0x8] sm:$0xff] }
 0x3e1   :  { %2342 = vmatpush3.msra.mxu1 %v1402_v16 }
 0x3e2   :  { %2343 = vmatprep.subr.mxu1 %v1509_v43  ;;  %v1672_v43 = vld [vmem:[%s3966_s8 + $0x18] sm:$0xff] }
 0x3e3   :  { %2344 = vmatpush3.msra.mxu1 %v1396_v14  ;;  %v1830_v14 = vld [vmem:[%s3967_s10 + $0xa0] sm:$0xff] }
 0x3e4   :  { %2345 = vmatprep.subr.mxu1 %v1503_v19  ;;  %v1674_v19 = vld [vmem:[%s3966_s8 + $0x28] sm:$0xff] }
 0x3e5   :  { %2346 = vmatpush3.msra.mxu1 %v1390_v28  ;;  %v1831_v28 = vld [vmem:[%s3967_s10 + $0xa8] sm:$0xff] }
 0x3e6   :  { %2347 = vmatprep.subr.mxu1 %v1497_v0  ;;  %v1676_v0 = vld [vmem:[%s3966_s8 + $0x38] sm:$0xff] }
 0x3e7   :  { %2348 = vmatpush3.msra.mxu1 %v1384_v23  ;;  %v1832_v23 = vld [vmem:[%s3967_s10 + $0xb0] sm:$0xff] }
 0x3e8   :  { %2349 = vmatprep.subr.mxu1 %v3705_v1  ;;  %v1678_v1 = vld [vmem:[%s3966_s8 + $0x48] sm:$0xff] }
 0x3e9   :  { %2350 = vmatpush3.msra.mxu1 %v1378_v20  ;;  %v1833_v20 = vld [vmem:[%s3967_s10 + $0xb8] sm:$0xff] }
 0x3ea   :  { %2351 = vmatprep.subr.mxu1 %v3703_v17  ;;  %v1680_v17 = vld [vmem:[%s3966_s8 + $0x58] sm:$0xff] }
 0x3eb   :  { %2352 = vmatpush3.msra.mxu1 %v1372_v51  ;;  %v1834_v51 = vld [vmem:[%s3967_s10 + $0xc0] sm:$0xff] }
 0x3ec   :  { %2353 = vmatprep.subr.mxu1 %v3701_v13  ;;  %v1682_v13 = vld [vmem:[%s3966_s8 + $0x68] sm:$0xff] }
 0x3ed   :  { %2354 = vmatpush3.msra.mxu1 %v1366_v25  ;;  %v1836_v25 = vld [vmem:[%s3967_s10 + $0xd0] sm:$0xff] }
 0x3ee   :  { %2355 = vmatprep.subr.mxu1 %v3699_v22  ;;  %v1684_v22 = vld [vmem:[%s3966_s8 + $0x78] sm:$0xff] }
 0x3ef   :  { %2356 = vmatpush3.msra.mxu1 %v1360_v59  ;;  %v1822_v59 = vld [vmem:[%s3967_s10 + $0x60] sm:$0xff] }
 0x3f0   :  { %1585 = vmatmul.mubr.f32.vlgmr.msra.gmra.mxu1 %v3654_v37  ;;  %v1691_v37 = vld [vmem:[%s3966_s8 + $0xb0] sm:$0xff]  ;;  %2363 = vmatprep.subr.mxu1 %v1841_v58 }
 0x3f1   :  { %1589 = vmatprep.mubr.f32.mxu1 %v3659_v27  ;;  %1722 = vmatpush1.msra.mxu0 %v1691_v37  ;;  %v1690_v27 = vld [vmem:[%s3966_s8 + $0xa8] sm:$0xff] }
 0x3f2   :  { %1723 = vmatprep.subr.mxu0 %v1690_v27  ;;  %2364 = vmatpush3.msra.mxu1 %v1825_v57  ;;  %v2012_v57 = vld [vmem:[%s3968_s6] ss:$0 sm:$0xff] }
 0x3f3   :  { %1724 = vmatpush1.msra.mxu0 %v1689_v21  ;;  %2365 = vmatprep.subr.mxu1 %v1840_v49 }
 0x3f4   :  { %1590 = vmatmul.mubr.f32.gmra.mxu1 %v3669_v52  ;;  %v1687_v52 = vld [vmem:[%s3966_s8 + $0x90] sm:$0xff]  ;;  %1725 = vmatprep.subr.mxu0 %v1688_v30 }
 0x3f5   :  { %1726 = vmatpush1.msra.mxu0 %v1687_v52  ;;  %2366 = vmatpush3.msra.mxu1 %v1824_v55 }
 0x3f6   :  { %1727 = vmatprep.subr.mxu0 %v1686_v42  ;;  %2367 = vmatprep.subr.mxu1 %v1839_v34 }
 0x3f7   :  { %1728 = vmatpush1.msra.mxu0 %v1685_v18  ;;  %2368 = vmatpush3.msra.mxu1 %v1823_v40 }
 0x3f8   :  { %1729 = vmatprep.subr.mxu0 %v1684_v22  ;;  %2369 = vmatprep.subr.mxu1 %v1838_v41 }
 0x3f9   :  { %1730 = vmatpush1.msra.mxu0 %v1683_v63  ;;  %2370 = vmatpush3.msra.mxu1 %v1822_v59 }
 0x3fa   :  { %1731 = vmatprep.subr.mxu0 %v1682_v13  ;;  %2371 = vmatprep.subr.mxu1 %v1837_v44 }
 0x3fb   :  { %1732 = vmatpush1.msra.mxu0 %v1681_v39  ;;  %2372 = vmatpush3.msra.mxu1 %v1821_v2 }
 0x3fc   :  { %1733 = vmatprep.subr.mxu0 %v1680_v17  ;;  %2373 = vmatprep.subr.mxu1 %v1836_v25 }
 0x3fd   :  { %1734 = vmatpush1.msra.mxu0 %v1679_v31  ;;  %2374 = vmatpush3.msra.mxu1 %v1820_v33 }
 0x3fe   :  { %1735 = vmatprep.subr.mxu0 %v1678_v1  ;;  %2375 = vmatprep.subr.mxu1 %v1835_v24 }
 0x3ff   :  { %1736 = vmatpush1.msra.mxu0 %v1677_v60  ;;  %2376 = vmatpush3.msra.mxu1 %v1819_v26  ;;  %v1829_v26 = vld [vmem:[%s3967_s10 + $0x98] sm:$0xff] }
 0x400   :  { %1737 = vmatprep.subr.mxu0 %v1676_v0  ;;  %2377 = vmatprep.subr.mxu1 %v1834_v51  ;;  %v1813_v51 = vld [vmem:[%s3967_s10 + $0x18] sm:$0xff] }
 0x401   :  { %1738 = vmatpush1.msra.mxu0 %v1675_v4  ;;  %2378 = vmatpush3.msra.mxu1 %v1818_v54  ;;  %v1828_v54 = vld [vmem:[%s3967_s10 + $0x90] sm:$0xff] }
 0x402   :  { %1739 = vmatprep.subr.mxu0 %v1674_v19  ;;  %2379 = vmatprep.subr.mxu1 %v1833_v20  ;;  %v1827_v20 = vld [vmem:[%s3967_s10 + $0x88] sm:$0xff] }
 0x403   :  { %1740 = vmatpush1.msra.mxu0 %v1673_v6  ;;  %2380 = vmatpush3.msra.mxu1 %v1817_v62  ;;  %v1811_v62 = vld [vmem:[%s3967_s10 + $0x8] sm:$0xff] }
 0x404   :  { %1741 = vmatprep.subr.mxu0 %v1672_v43  ;;  %2381 = vmatprep.subr.mxu1 %v1832_v23  ;;  %v1826_v23 = vld [vmem:[%s3967_s10 + $0x80] sm:$0xff] }
 0x405   :  { %1742 = vmatpush1.msra.mxu0 %v1671_v9  ;;  %2382 = vmatpush3.msra.mxu1 %v1816_v5  ;;  %v1810_v5 = vld [vmem:[%s3967_s10] sm:$0xff] }
 0x406   :  { %1743 = vmatprep.subr.mxu0 %v1670_v10  ;;  %2383 = vmatprep.subr.mxu1 %v1831_v28  ;;  %v1703_v28 = vlaneseq }
 0x407   :  { %1744 = vmatpush1.msra.mxu0 %v1669_v56  ;;  %2384 = vmatpush3.msra.mxu1 %v1815_v32 }
 0x408   :  { %2385 = vmatprep.subr.mxu1 %v1830_v14  ;;  %v1704_v32 = vshrl.u32 %v1703_v28, 7 }
 0x409   :  { %2386 = vmatpush3.msra.mxu1 %v1814_v47  ;;  %v1701_v47 = vld [vmem:[%s3970_s9] sm:$0x3] }
 0x40a   :  { %2387 = vmatprep.subr.mxu1 %v1829_v26  ;;  %v1705_v14 = vsub.s32 0, %v1704_v32 }
 0x40b   :  { %2388 = vmatpush3.msra.mxu1 %v1813_v51 }
 0x40c   :  { %2389 = vmatprep.subr.mxu1 %v1828_v54 }
 0x4b0   :  { %v2357_v16 = vpop.f32.mrf.mxu1 }
 0x4b2   :  { %v2358_v48 = vpop.f32.mrf.mxu1 }
 0x4b3   :  { %v2359_v50 = vadd.f32 %v2358_v48, %v2357_v16  ;;  %v1709_v16 = vsub.s32 1, %v1704_v32  ;;  %v1706_v48 = vrot.slane %v1701_v47, %v1705_v14 }
 0x4b4   :  { %v2360_v11 = vpop.f32.mrf.mxu1 }
 0x4b5   :  { %v1604_v35 = vadd.f32 %v2359_v50, %v3710_v45  ;;  %v1710_v50 = vrot.slane %v1701_v47, %v1709_v16 }
 0x4b6   :  { %v2361_v12 = vpop.f32.mrf.mxu1 }
 0x4b7   :  { %v1608_v15 = vmax.f32 %v1604_v35, 0.0  ;;  %v2362_v36 = vadd.f32 %v2361_v12, %v2360_v11 }
 0x4b9   :  { %v1623_v38 = vmul.f32 %v1608_v15, %v1608_v15  ;;  %v1605_v53 = vadd.f32 %v2362_v36, %v3710_v45  ;;  %v1611_v46 = vadd.f32 %v3722_v3, %v1608_v15 }
 0x4bb   :  { %v1609_v37 = vmax.f32 %v1605_v53, 0.0  ;;  %v1626_v27 = vadd.f32 %v3726_v7, %v1623_v38 }
 0x4bd   :  { %v1612_v21 = vadd.f32 %v1611_v46, %v1609_v37  ;;  %v1624_v30 = vmul.f32 %v1609_v37, %v1609_v37 }
 0x4bf   :  { %v1613_v52 = vrot.slane %v1612_v21, 4  ;;  %v1627_v42 = vadd.f32 %v1626_v27, %v1624_v30 }
 0x4c1   :  { %v1614_v18 = vadd.f32 %v1613_v52, %v1612_v21  ;;  %v1628_v22 = vrot.slane %v1627_v42, 4 }
 0x4c3   :  { %v1615_v63 = vrot.slane %v1614_v18, 2  ;;  %v1629_v13 = vadd.f32 %v1628_v22, %v1627_v42 }
 0x4c5   :  { %v1616_v39 = vadd.f32 %v1615_v63, %v1614_v18  ;;  %v1630_v17 = vrot.slane %v1629_v13, 2 }
 0x4c7   :  { %v1617_v31 = vrot.slane %v1616_v39, 1  ;;  %v1631_v1 = vadd.f32 %v1630_v17, %v1629_v13 }
 0x4c9   :  { %v1618_v60 = vadd.f32 %v1617_v31, %v1616_v39  ;;  %v1632_v0 = vrot.slane %v1631_v1, 1 }
 0x4cb   :  { %v1620_v45 = vmul.f32 0.03125, %v1618_v60  ;;  %v1633_v4 = vadd.f32 %v1632_v0, %v1631_v1 }
 0x4cd   :  { %v1634_v3 = vmul.f32 0.03125, %v1633_v4  ;;  %v1635_v19 = vmul.f32 %v1620_v45, %v1620_v45  ;;  %v1637_v7 = vsub.f32 %v3713_v61, %v1620_v45  ;;  %v1638_v6 = vsub.f32 %v3716_v8, %v1620_v45  ;;  %v2013_v61 = vld [vmem:[%s3969_s7] ss:$0 sm:$0xff] }
 0x4ce   :  { %v1640_v10 = vsub.f32 %v1609_v37, %v1620_v45  ;;  %v1639_v56 = vsub.f32 %v1608_v15, %v1620_v45 }
 0x4cf   :  { %v1636_v43 = vsub.f32 %v1634_v3, %v1635_v19  ;;  %v2014_v3 = vld [vmem:[%s3971_s11] ss:$0 sm:$0xff] }
 0x4d1   :  { %v1641_v9 = vadd.f32 1e-05, %v1636_v43 }
 0x4d3   :  { %2496 = vrsqrt.f32 %v1641_v9 }
 0x4e0   :  { %v2497_v58 = vpop.eup %2496 }
 0x4e1   :  { %v1643_v49 = vmul.f32 %v2497_v58, %v1637_v7  ;;  %v1644_v55 = vmul.f32 %v2497_v58, %v1638_v6  ;;  %v1645_v34 = vmul.f32 %v2497_v58, %v1639_v56  ;;  %v1646_v40 = vmul.f32 %v2497_v58, %v1640_v10 }
 0x4e3   :  { %v1654_v41 = vmul.f32 %v2012_v57, %v1643_v49  ;;  %v1655_v59 = vmul.f32 %v2012_v57, %v1644_v55  ;;  %v1656_v2 = vmul.f32 %v2012_v57, %v1645_v34  ;;  %v1657_v33 = vmul.f32 %v2012_v57, %v1646_v40 }
 0x4e5   :  { %v1665_v8 = vadd.f32 %v2013_v61, %v1654_v41  ;;  %v1666_v44 = vadd.f32 %v2013_v61, %v1655_v59  ;;  %v1667_v25 = vadd.f32 %v2013_v61, %v1656_v2  ;;  %v1668_v24 = vadd.f32 %v2013_v61, %v1657_v33 }
 0x4e7   :  { %1778 = vmatmul.mubr.f32.vlgmr.msra.gmra.mxu0 %v1665_v8 }
 0x4e8   :  { %1783 = vmatprep.mubr.f32.mxu0 %v4005_v29 }
 0x4eb   :  { %1784 = vmatmul.mubr.f32.gmra.mxu0 %v1666_v44 }
 0x4ec   :  { %1789 = vmatprep.mubr.f32.mxu0 %v4005_v29 }
 0x4ef   :  { %1790 = vmatmul.mubr.f32.gmra.mxu0 %v1667_v25 }
 0x4f0   :  { %1795 = vmatprep.mubr.f32.mxu0 %v4005_v29  ;;  %v1812_v29 = vld [vmem:[%s3967_s10 + $0x10] sm:$0xff] }
 0x4f1   :  { %2390 = vmatpush3.msra.mxu1 %v1812_v29 }
 0x4f2   :  { %2391 = vmatprep.subr.mxu1 %v1827_v20 }
 0x4f3   :  { %1796 = vmatmul.mubr.f32.gmra.mxu0 %v1668_v24  ;;  %2392 = vmatpush3.msra.mxu1 %v1811_v62 }
 0x4f4   :  { %2393 = vmatprep.subr.mxu1 %v1826_v23 }
 0x4f5   :  { %2394 = vmatpush3.msra.mxu1 %v1810_v5 }
 0x5a7   :  { %v1779_v11 = vpop.f32.mrf.mxu0 }
 0x5a8   :  { %v1780_v35 = vadd.f32 %v1779_v11, %v1706_v48 }
 0x5a9   :  { %v1781_v12 = vpop.f32.mrf.mxu0 }
 0x5aa   :  { %v1782_v15 = vadd.f32 %v1781_v12, %v1710_v50  ;;  %v1802_v53 = vmax.f32 %v1780_v35, 0.0 }
 0x5ab   :  { %v1785_v36 = vpop.f32.mrf.mxu0 }
 0x5ac   :  { %v1803_v38 = vmax.f32 %v1782_v15, 0.0  ;;  %v1786_v46 = vadd.f32 %v1785_v36, %v1706_v48 }
 0x5ad   :  { %v1787_v37 = vpop.f32.mrf.mxu0 }
 0x5ae   :  { %v1788_v27 = vadd.f32 %v1787_v37, %v1710_v50  ;;  %1913 = vmatprep.mubr.f32.mxu1 %v1803_v38  ;;  %v1804_v52 = vmax.f32 %v1786_v46, 0.0 }
 0x5af   :  { %v1791_v21 = vpop.f32.mrf.mxu0  ;;  %1914 = vmatmul.mubr.f32.vlgmr.msra.gmra.mxu1 %v1802_v53 }
 0x5b0   :  { %v1805_v30 = vmax.f32 %v1788_v27, 0.0  ;;  %v1792_v42 = vadd.f32 %v1791_v21, %v1706_v48 }
 0x5b1   :  { %v1793_v18 = vpop.f32.mrf.mxu0 }
 0x5b2   :  { %v1794_v22 = vadd.f32 %v1793_v18, %v1710_v50  ;;  %1918 = vmatprep.mubr.f32.mxu1 %v1805_v30  ;;  %v1806_v39 = vmax.f32 %v1792_v42, 0.0 }
 0x5b3   :  { %v1797_v63 = vpop.f32.mrf.mxu0  ;;  %1919 = vmatmul.mubr.f32.gmra.mxu1 %v1804_v52 }
 0x5b4   :  { %v1807_v13 = vmax.f32 %v1794_v22, 0.0  ;;  %v1798_v17 = vadd.f32 %v1797_v63, %v1706_v48 }
 0x5b5   :  { %v1799_v31 = vpop.f32.mrf.mxu0 }
 0x5b6   :  { %v1800_v1 = vadd.f32 %v1799_v31, %v1710_v50  ;;  %1923 = vmatprep.mubr.f32.mxu1 %v1807_v13  ;;  %v1808_v0 = vmax.f32 %v1798_v17, 0.0 }
 0x5b7   :  { %1924 = vmatmul.mubr.f32.gmra.mxu1 %v1806_v39 }
 0x5b8   :  { %v1809_v60 = vmax.f32 %v1800_v1, 0.0 }
 0x5ba   :  { %1928 = vmatprep.mubr.f32.mxu1 %v1809_v60 }
 0x5bb   :  { %1929 = vmatmul.mubr.f32.gmra.mxu1 %v1808_v0 }
 0x66f   :  { %v2395_v45 = vpop.f32.mrf.mxu1 }
 0x671   :  { %v2396_v4 = vpop.f32.mrf.mxu1 }
 0x672   :  { %v2397_v19 = vadd.f32 %v2396_v4, %v2395_v45 }
 0x673   :  { %v2398_v7 = vpop.f32.mrf.mxu1 }
 0x674   :  { %v1916_v6 = vadd.f32 %v2397_v19, %v2014_v3 }
 0x675   :  { %v2399_v43 = vpop.f32.mrf.mxu1 }
 0x676   :  { %v2400_v9 = vadd.f32 %v2399_v43, %v2398_v7  ;;  %1934 = vmax.xlane.f32.xlu0 %v1916_v6 }
 0x677   :  { %v2401_v10 = vpop.f32.mrf.mxu1 }
 0x678   :  { %v1921_v56 = vadd.f32 %v2400_v9, %v2014_v3 }
 0x679   :  { %v2402_v58 = vpop.f32.mrf.mxu1 }
 0x67a   :  { %v2403_v57 = vadd.f32 %v2402_v58, %v2401_v10  ;;  %1936 = vmax.xlane.f32.xlu1 %v1921_v56 }
 0x67b   :  { %v2404_v49 = vpop.f32.mrf.mxu1 }
 0x67c   :  { %v1926_v55 = vadd.f32 %v2403_v57, %v2014_v3 }
 0x67d   :  { %v2405_v34 = vpop.f32.mrf.mxu1 }
 0x67e   :  { %v2406_v40 = vadd.f32 %v2405_v34, %v2404_v49  ;;  %1938 = vmax.xlane.f32.xlu1 %v1926_v55 }
 0x680   :  { %v1931_v61 = vadd.f32 %v2406_v40, %v2014_v3 }
 0x682   :  { %1940 = vmax.xlane.f32.xlu1 %v1931_v61 }
 0x6ff   :  { %v1935_v41 = vpop.xlane.xlu0 %1934 }
 0x700   :  { %v1942_v8 = vsub.f32 %v1916_v6, %v1935_v41 }
 0x702   :  { %v1946_v59 = vmul.f32 1.442695, %v1942_v8 }
 0x703   :  { %v1937_v44 = vpop.xlane.xlu1 %1936 }
 0x704   :  { %2498 = vpow2.f32 %v1946_v59  ;;  %v1943_v2 = vsub.f32 %v1921_v56, %v1937_v44 }
 0x706   :  { %v1948_v25 = vmul.f32 1.442695, %v1943_v2 }
 0x707   :  { %v1939_v33 = vpop.xlane.xlu1 %1938 }
 0x708   :  { %2500 = vpow2.f32 %v1948_v25  ;;  %v1944_v24 = vsub.f32 %v1926_v55, %v1939_v33 }
 0x70a   :  { %v1950_v26 = vmul.f32 1.442695, %v1944_v24 }
 0x70b   :  { %v1941_v51 = vpop.xlane.xlu1 %1940 }
 0x70c   :  { %2502 = vpow2.f32 %v1950_v26  ;;  %v1945_v54 = vsub.f32 %v1931_v61, %v1941_v51 }
 0x70e   :  { %v1952_v29 = vmul.f32 1.442695, %v1945_v54 }
 0x710   :  { %2504 = vpow2.f32 %v1952_v29 }
 0x711   :  { %v2499_v20 = vpop.eup %2498 }
 0x712   :  { %1954 = vadd.xlane.f32.xlu0 %v2499_v20 }
 0x715   :  { %v2501_v62 = vpop.eup %2500 }
 0x716   :  { %1956 = vadd.xlane.f32.xlu1 %v2501_v62 }
 0x719   :  { %v2503_v23 = vpop.eup %2502 }
 0x71a   :  { %1958 = vadd.xlane.f32.xlu0 %v2503_v23 }
 0x71d   :  { %v2505_v5 = vpop.eup %2504 }
 0x71e   :  { %1960 = vadd.xlane.f32.xlu1 %v2505_v5 }
 0x79b   :  { %v1955_v28 = vpop.xlane.xlu0 %1954 }
 0x79c   :  { %2506 = vrcp.f32 %v1955_v28 }
 0x79f   :  { %v1957_v32 = vpop.xlane.xlu1 %1956 }
 0x7a0   :  { %2508 = vrcp.f32 %v1957_v32 }
 0x7a3   :  { %v1959_v14 = vpop.xlane.xlu0 %1958 }
 0x7a4   :  { %2510 = vrcp.f32 %v1959_v14 }
 0x7a7   :  { %v1961_v47 = vpop.xlane.xlu1 %1960 }
 0x7a8   :  { %2512 = vrcp.f32 %v1961_v47 }
 0x7a9   :  { %v2507_v16 = vpop.eup %2506 }
 0x7aa   :  { %v1966_v48 = vmul.f32 %v2507_v16, %v2499_v20 }
 0x7ac   :  { %1970 = vst [vmem:[%s3972_s12] sm:$0xff] %v1966_v48 }
 0x7ad   :  { %v2509_v50 = vpop.eup %2508 }
 0x7ae   :  { %v1967_v11 = vmul.f32 %v2509_v50, %v2501_v62 }
 0x7b0   :  { %1971 = vst [vmem:[%s3972_s12 + $0x8] sm:$0xff] %v1967_v11 }
 0x7b1   :  { %v2511_v35 = vpop.eup %2510 }
 0x7b2   :  { %v1968_v12 = vmul.f32 %v2511_v35, %v2503_v23 }
 0x7b4   :  { %1972 = vst [vmem:[%s3972_s12 + $0x10] sm:$0xff] %v1968_v12 }
 0x7b5   :  { %v2513_v15 = vpop.eup %2512 }
 0x7b6   :  { %v1969_v36 = vmul.f32 %v2513_v15, %v2505_v5 }
 0x7b8   :  { %1973 = vst [vmem:[%s3972_s12 + $0x18] sm:$0xff] %v1969_v36 }

</bundles_post_ra>
